<compile_context>
chip_gen: v7x
topology: tpu7x:2x2x1
jax: 0.10.0
libtpu: 0.0.40
codegen_flags: <defaults>
</compile_context>

<pallas_src>
import math

import jax
import jax.numpy as jnp
from jax import lax
from jax.experimental import pallas as pl
from jax.experimental.pallas import tpu as pltpu


_N1P = 2048   # lane-padded fc1 width (2000 -> 2048)
_N2P = 640    # lane-padded fc2 width (600  -> 640)


# ----------------------------- Pallas kernel --------------------------------

def _fused_mlp_kernel(x_ref, w1_ref, b1_ref, w2_ref, b2_ref, w3_ref, b3_ref,
                      o_ref):
    # Layer 1 (conv1 ∘ conv2 ∘ flatten folded into fc1):
    #   (TB,48) @ (48,2048), f32 operands / f32 accumulation, bias + tanh.
    h1 = jnp.tanh(
        jnp.dot(x_ref[...], w1_ref[...], preferred_element_type=jnp.float32)
        + b1_ref[...]
    )
    # nn.Dropout(p=0.1): identity at inference.
    # Layer 2: (TB,2048) @ (2048,640), bf16 operands, f32 MXU accumulation.
    h2 = jnp.tanh(
        jnp.dot(h1.astype(jnp.bfloat16), w2_ref[...],
                preferred_element_type=jnp.float32)
        + b2_ref[...]
    )
    # fc3 (600 -> 1): lane-wise multiply + cross-lane sum (VPU/XLU) instead of
    # a degenerate (640,1) MXU tile.  Padded lanes of h2/w3 are exactly zero.
    y = jnp.sum(h2 * w3_ref[...], axis=-1, keepdims=True) + b3_ref[0, 0]
    o_ref[...] = jnp.tanh(y)


# ----------------------------- wrapper ---------------------------------------

def model_forward(x, prep):
    """x: (B, 1, 6, 8) batched boards or (1, 6, 8) single board; returns (B,)
    (or (1,)) of per-sample outputs of the original unbatched forward."""
    single = (x.ndim == 3)
    if single:
        x = x[None]
    B = x.shape[0]
    xf = x.reshape(B, 48).astype(jnp.float32)   # CHW row-major flatten

    # Batch tile: 256 MXU rows (v6e/v7x; 2x v5e) once B is large enough,
    # otherwise one block padded up to a sublane multiple of 8.
    if B >= 256:
        tb = 256
    else:
        tb = max(8, ((B + 7) // 8) * 8)
    b_pad = ((B + tb - 1) // tb) * tb
    if b_pad != B:
        xf = jnp.pad(xf, ((0, b_pad - B), (0, 0)))
    nb = b_pad // tb

    out = pl.pallas_call(
        _fused_mlp_kernel,
        out_shape=jax.ShapeDtypeStruct((b_pad, 1), jnp.float32),
        grid=(nb,),
        in_specs=[
            pl.BlockSpec((tb, 48), lambda i: (i, 0)),        # x tile per step
            pl.BlockSpec((48, _N1P), lambda i: (0, 0)),      # w1: VMEM-resident
            pl.BlockSpec((1, _N1P), lambda i: (0, 0)),       # b1
            pl.BlockSpec((_N1P, _N2P), lambda i: (0, 0)),    # w2: VMEM-resident
            pl.BlockSpec((1, _N2P), lambda i: (0, 0)),       # b2
            pl.BlockSpec((1, _N2P), lambda i: (0, 0)),       # w3
            pl.BlockSpec(memory_space=pltpu.MemorySpace.SMEM),  # b3 scalar
        ],
        out_specs=pl.BlockSpec((tb, 1), lambda i: (i, 0)),
        compiler_params=pltpu.CompilerParams(
            dimension_semantics=("parallel",)),
    )(xf, prep["w1"], prep["b1"], prep["w2"], prep["b2"],
      prep["w3"], prep["b3"])

    out = out[:B, 0]
    return out[0:1] if single else out


# ----------------------------- param preparation -----------------------------

def _conv_stack(x, w1, b1, w2, b2):
    """x: (1, 6, 8) -> flattened conv output (800,) in torch (Cout,H,W) order."""
    y = lax.conv_general_dilated(
        x[None], w1, (1, 1), "VALID",
        dimension_numbers=("NCHW", "OIHW", "NCHW"),
    ) + b1[None, :, None, None]
    y = lax.conv_general_dilated(
        y, w2, (1, 1), "VALID",
        dimension_numbers=("NCHW", "OIHW", "NCHW"),
    ) + b2[None, :, None, None]
    return y.reshape(-1)   # (800,), row-major == torch Flatten(start_dim=0)


def _pad_to(a, shape):
    return jnp.pad(a, [(0, t - s) for s, t in zip(a.shape, shape)])


def prepare_params(params):
    """One-time weight preprocessing: conv->fc1 fold, lane padding, dtypes."""
    w1c, b1c = params["w_conv1"], params["b_conv1"]
    w2c, b2c = params["w_conv2"], params["b_conv2"]
    zb1, zb2 = jnp.zeros_like(b1c), jnp.zeros_like(b2c)

    # Affine map of the conv stack: flat_800 = x_flat_48 @ A + c
    c = _conv_stack(jnp.zeros((1, 6, 8), jnp.float32), w1c, b1c, w2c, b2c)
    basis = jnp.eye(48, dtype=jnp.float32).reshape(48, 1, 6, 8)
    A = jax.vmap(lambda e: _conv_stack(e, w1c, zb1, w2c, zb2))(basis)  # (48,800)

    # Fold conv affine map into fc1 (both linear, no activation between):
    #   h1_pre = x48 @ (A @ W_fc1.T) + (c @ W_fc1.T + b_fc1)
    w_fc1_t = params["w_fc1"].T                       # (800, 2000)
    w1 = A @ w_fc1_t                                  # (48, 2000)
    b1 = c @ w_fc1_t + params["b_fc1"]                # (2000,)
    w2 = params["w_fc2"].T                            # (2000, 600)

    return {
        # f32 folded first layer (cheap; removes the largest bf16 rounding).
        "w1": _pad_to(w1, (48, _N1P)).astype(jnp.float32),
        "b1": _pad_to(b1.reshape(1, -1), (1, _N1P)).astype(jnp.float32),
        # dominant transfer stays bf16 (f32 MXU accumulation in-kernel).
        "w2": _pad_to(w2, (_N1P, _N2P)).astype(jnp.bfloat16),
        "b2": _pad_to(params["b_fc2"].reshape(1, -1), (1, _N2P))
                 .astype(jnp.float32),
        "w3": _pad_to(params["w_fc3"], (1, _N2P)).astype(jnp.float32),
        "b3": params["b_fc3"].reshape(1, 1).astype(jnp.float32),
    }


# ----------------------------- reference (plain JAX, f32) --------------------

def reference_forward(x, params):
    def one(xb):
        flat = _conv_stack(xb, params["w_conv1"], params["b_conv1"],
                           params["w_conv2"], params["b_conv2"])      # (800,)
        h1 = jnp.tanh(flat @ params["w_fc1"].T + params["b_fc1"])
        h2 = jnp.tanh(h1 @ params["w_fc2"].T + params["b_fc2"])
        return jnp.tanh(h2 @ params["w_fc3"].T + params["b_fc3"])[0]
    if x.ndim == 3:
        return one(x)[None]
    return jax.vmap(one)(x)


# ----------------------------- param init ------------------------------------

def _uniform(key, shape, fan_in):
    bound = 1.0 / math.sqrt(fan_in)
    return jax.random.uniform(key, shape, jnp.float32, -bound, bound)


def init_params(key):
    ks = jax.random.split(key, 10)
    return {
        # Conv2d(1, 8, kernel_size=[1, 3])
        "w_conv1": _uniform(ks[0], (8, 1, 1, 3), 1 * 1 * 3),
        "b_conv1": _uniform(ks[1], (8,), 1 * 1 * 3),
        # Conv2d(8, 50, kernel_size=[3, 3])
        "w_conv2": _uniform(ks[2], (50, 8, 3, 3), 8 * 3 * 3),
        "b_conv2": _uniform(ks[3], (50,), 8 * 3 * 3),
        # Linear(800, 2000)
        "w_fc1": _uniform(ks[4], (2000, 800), 800),
        "b_fc1": _uniform(ks[5], (2000,), 800),
        # Linear(2000, 600)
        "w_fc2": _uniform(ks[6], (600, 2000), 2000),
        "b_fc2": _uniform(ks[7], (600,), 2000),
        # Linear(600, 1)
        "w_fc3": _uniform(ks[8], (1, 600), 600),
        "b_fc3": _uniform(ks[9], (1,), 600),
    }


# ----------------------------- main -------------------------------------------

if __name__ == "__main__":
    key = jax.random.PRNGKey(0)
    pkey, xk1, xk2 = jax.random.split(key, 3)
    params = init_params(pkey)
    prep = jax.tree_util.tree_map(jax.block_until_ready, prepare_params(params))

    fwd = jax.jit(model_forward)

    # Small deterministic batch of 6x8 boards: (B=8, C=1, H=6, W=8).
    x_small = jax.random.normal(xk1, (8, 1, 6, 8), jnp.float32)
    out_small = jax.block_until_ready(fwd(x_small, prep))
    ref_small = reference_forward(x_small, params)
    assert out_small.shape == (8,), out_small.shape
    assert jnp.allclose(out_small, ref_small, atol=2e-2, rtol=2e-2), (
        out_small, ref_small)

    # Larger batch exercising the multi-step grid + VMEM-resident weight path
    # (300 -> padded to 512, two grid steps of TB=256).
    x_big = jax.random.normal(xk2, (300, 1, 6, 8), jnp.float32)
    out_big = jax.block_until_ready(fwd(x_big, prep))
    ref_big = reference_forward(x_big, params)
    assert out_big.shape == (300,), out_big.shape
    assert jnp.allclose(out_big, ref_big, atol=2e-2, rtol=2e-2), (
        out_big, ref_big)

    print("KERNEL_OK")
</pallas_src>

<mosaic_0001>
module attributes {stable_mosaic.version = 11 : i64} {
  func.func @_fused_mlp_kernel(%arg0: i32, %arg1: memref<8x48xf32, #tpu.memory_space<vmem>>, %arg2: memref<48x2048xf32, #tpu.memory_space<vmem>>, %arg3: memref<1x2048xf32, #tpu.memory_space<vmem>>, %arg4: memref<2048x640xbf16, #tpu.memory_space<vmem>>, %arg5: memref<1x640xf32, #tpu.memory_space<vmem>>, %arg6: memref<1x640xf32, #tpu.memory_space<vmem>>, %arg7: memref<1x1xf32, #tpu.memory_space<smem>>, %arg8: memref<8x1xf32, #tpu.memory_space<vmem>>) attributes {dimension_semantics = [#tpu.dimension_semantics<parallel>], iteration_bounds = array<i64: 1>, scalar_prefetch = 0 : i64, scratch_operands = 0 : i64, tpu.core_type = #tpu.core_type<tc>, window_params = [{transform_indices = @transform_0, window_bounds = array<i64: 8, 48>}, {pipeline_mode = #tpu.pipeline_mode<synchronous>, transform_indices = @transform_1, window_bounds = array<i64: 48, 2048>}, {pipeline_mode = #tpu.pipeline_mode<synchronous>, transform_indices = @transform_2, window_bounds = array<i64: 1, 2048>}, {pipeline_mode = #tpu.pipeline_mode<synchronous>, transform_indices = @transform_3, window_bounds = array<i64: 2048, 640>}, {pipeline_mode = #tpu.pipeline_mode<synchronous>, transform_indices = @transform_4, window_bounds = array<i64: 1, 640>}, {pipeline_mode = #tpu.pipeline_mode<synchronous>, transform_indices = @transform_5, window_bounds = array<i64: 1, 640>}, {transform_indices = @transform_6, window_bounds = array<i64: 1, 1>}, {transform_indices = @transform_7, window_bounds = array<i64: 8, 1>}]} {
    %c0 = arith.constant 0 : index
    %c0_0 = arith.constant 0 : index
    %0 = vector.load %arg1[%c0, %c0_0] : memref<8x48xf32, #tpu.memory_space<vmem>>, vector<8x48xf32>
    %c0_1 = arith.constant 0 : index
    %c0_2 = arith.constant 0 : index
    %1 = vector.load %arg2[%c0_1, %c0_2] : memref<48x2048xf32, #tpu.memory_space<vmem>>, vector<48x2048xf32>
    %cst = arith.constant dense<0.000000e+00> : vector<8x2048xf32>
    %2 = tpu.matmul %0, %1, %cst {dimension_numbers = #tpu.dot_dimension_numbers<[1], [0], [0], [1], [0, 0, 1, 1], [], []>} : vector<8x48xf32>, vector<48x2048xf32>, vector<8x2048xf32> -> vector<8x2048xf32>
    %c0_3 = arith.constant 0 : index
    %c0_4 = arith.constant 0 : index
    %3 = vector.load %arg3[%c0_3, %c0_4] : memref<1x2048xf32, #tpu.memory_space<vmem>>, vector<1x2048xf32>
    %4 = vector.broadcast %3 : vector<1x2048xf32> to vector<8x2048xf32>
    %5 = arith.addf %2, %4 : vector<8x2048xf32>
    %6 = math.tanh %5 : vector<8x2048xf32>
    %7 = arith.truncf %6 : vector<8x2048xf32> to vector<8x2048xbf16>
    %c0_5 = arith.constant 0 : index
    %c0_6 = arith.constant 0 : index
    %8 = vector.load %arg4[%c0_5, %c0_6] : memref<2048x640xbf16, #tpu.memory_space<vmem>>, vector<2048x640xbf16>
    %cst_7 = arith.constant dense<0.000000e+00> : vector<8x640xf32>
    %9 = tpu.matmul %7, %8, %cst_7 {dimension_numbers = #tpu.dot_dimension_numbers<[1], [0], [0], [1], [0, 0, 1, 1], [], []>} : vector<8x2048xbf16>, vector<2048x640xbf16>, vector<8x640xf32> -> vector<8x640xf32>
    %c0_8 = arith.constant 0 : index
    %c0_9 = arith.constant 0 : index
    %10 = vector.load %arg5[%c0_8, %c0_9] : memref<1x640xf32, #tpu.memory_space<vmem>>, vector<1x640xf32>
    %11 = vector.broadcast %10 : vector<1x640xf32> to vector<8x640xf32>
    %12 = arith.addf %9, %11 : vector<8x640xf32>
    %13 = math.tanh %12 : vector<8x640xf32>
    %c0_10 = arith.constant 0 : index
    %c0_11 = arith.constant 0 : index
    %14 = vector.load %arg6[%c0_10, %c0_11] : memref<1x640xf32, #tpu.memory_space<vmem>>, vector<1x640xf32>
    %15 = vector.broadcast %14 : vector<1x640xf32> to vector<8x640xf32>
    %16 = arith.mulf %13, %15 : vector<8x640xf32>
    %cst_12 = arith.constant dense<0.000000e+00> : vector<8xf32>
    %17 = vector.multi_reduction <add>, %16, %cst_12 [1] : vector<8x640xf32> to vector<8xf32>
    %18 = vector.shape_cast %17 : vector<8xf32> to vector<8x1xf32>
    %c0_13 = arith.constant 0 : index
    %c0_14 = arith.constant 0 : index
    %19 = memref.load %arg7[%c0_13, %c0_14] : memref<1x1xf32, #tpu.memory_space<smem>>
    %20 = vector.broadcast %19 : f32 to vector<8x1xf32>
    %21 = arith.addf %18, %20 : vector<8x1xf32>
    %22 = math.tanh %21 : vector<8x1xf32>
    %c0_15 = arith.constant 0 : index
    %c0_16 = arith.constant 0 : index
    %23 = vector.load %arg8[%c0_15, %c0_16] : memref<8x1xf32, #tpu.memory_space<vmem>>, vector<8x1xf32>
    tpu.vector_store %arg8[%c0_15, %c0_16], %22 {strides = array<i32>} : memref<8x1xf32, #tpu.memory_space<vmem>>, vector<8x1xf32>,
    return
  }
  func.func @transform_0(%arg0: i32) -> (i32, i32) {
    %c0_i32 = arith.constant 0 : i32
    %c0_i32_0 = arith.constant 0 : i32
    return %arg0, %c0_i32 : i32, i32
  }
  func.func @transform_1(%arg0: i32) -> (i32, i32) {
    %c0_i32 = arith.constant 0 : i32
    %c0_i32_0 = arith.constant 0 : i32
    %c0_i32_1 = arith.constant 0 : i32
    return %c0_i32, %c0_i32_0 : i32, i32
  }
  func.func @transform_2(%arg0: i32) -> (i32, i32) {
    %c0_i32 = arith.constant 0 : i32
    %c0_i32_0 = arith.constant 0 : i32
    %c0_i32_1 = arith.constant 0 : i32
    return %c0_i32, %c0_i32_0 : i32, i32
  }
  func.func @transform_3(%arg0: i32) -> (i32, i32) {
    %c0_i32 = arith.constant 0 : i32
    %c0_i32_0 = arith.constant 0 : i32
    %c0_i32_1 = arith.constant 0 : i32
    return %c0_i32, %c0_i32_0 : i32, i32
  }
  func.func @transform_4(%arg0: i32) -> (i32, i32) {
    %c0_i32 = arith.constant 0 : i32
    %c0_i32_0 = arith.constant 0 : i32
    %c0_i32_1 = arith.constant 0 : i32
    return %c0_i32, %c0_i32_0 : i32, i32
  }
  func.func @transform_5(%arg0: i32) -> (i32, i32) {
    %c0_i32 = arith.constant 0 : i32
    %c0_i32_0 = arith.constant 0 : i32
    %c0_i32_1 = arith.constant 0 : i32
    return %c0_i32, %c0_i32_0 : i32, i32
  }
  func.func @transform_6(%arg0: i32) -> (i32, i32) {
    %c0_i32 = arith.constant 0 : i32
    %c0_i32_0 = arith.constant 0 : i32
    %c0_i32_1 = arith.constant 0 : i32
    return %c0_i32, %c0_i32_0 : i32, i32
  }
  func.func @transform_7(%arg0: i32) -> (i32, i32) {
    %c0_i32 = arith.constant 0 : i32
    %c0_i32_0 = arith.constant 0 : i32
    return %arg0, %c0_i32 : i32, i32
  }
}

</mosaic_0001>

<bundles_post_ra>
// kernel: model_forward.1
= control target key start
LH: loop header
LB: loop body
LE: loop exit
PB: predicated region body
PF: predicated region fallthrough
CT: control target
= control target key end

     0   :  { %13 = vsyncpa [#allocation4], 0  ;;  %s8417_s0 = inlined_call_operand.vmem [shape: f32[8,48], index: 0, kind: input, shape index: {}]   ;;  %s8418_s1 = inlined_call_operand.hbm [shape: f32[48,2048], index: 1, kind: input, shape index: {}]   ;;  %s8419_s2 = inlined_call_operand.hbm [shape: f32[1,2048], index: 2, kind: input, shape index: {}]   ;;  %s8420_s3 = inlined_call_operand.hbm [shape: bf16[2048,640], index: 3, kind: input, shape index: {}]   ;;  %s8421_s4 = inlined_call_operand.hbm [shape: f32[1,640], index: 4, kind: input, shape index: {}]   ;;  %s8422_s5 = inlined_call_operand.hbm [shape: f32[1,640], index: 5, kind: input, shape index: {}]   ;;  %s8423_s6 = inlined_call_operand.<no memory space> [shape: f32[1,1], index: 6, kind: input, shape index: {}]   ;;  %s8424_s7 = inlined_call_operand.vmem [shape: f32[8,1], index: 7, kind: output, shape index: {}]  }
   0x1   :  { %14 = vsyncpa [#allocation6], 0 }
   0x2   :  { %15 = vsyncpa [#allocation9], 0  ;;  %s8078_s24 = smov [#allocation5]   ;;  %s8079_s26 = smov [#allocation8]  }
   0x3   :  { %s36_s25 = sshll.u32 %s8078_s24, 4  ;;  %s58_s27 = sshll.u32 %s8079_s26, 4  ;;  %s37_s25 = int_to_ptr.vmem [resolvable:$true] %s36_s25  ;;  %s59_s27 = int_to_ptr.vmem [resolvable:$true] %s58_s27 }
   0x4   :  { %s7962_s30 = scalar_lea.hbm %s8419_s2, 256 }
   0x5   :  { %p7963_p0 = scmp.ne.s32.totalorder %s8419_s2, %s7962_s30  ;;  %p7966_p1 = scmp.lt.u32.totalorder %s7962_s30, %s8419_s2 }
   0x7   :  { %p7968_p2 = pnand %p7966_p1, %p7963_p0 }
   0x9   :  { %7971 = shalt.err (!%p7968_p2)
}
   0xa   :  { %s7972_s12 = scalar_lea.vmem %s37_s25, 256  ;;  %p7977_p4 = scmp.lt.s32.totalorder %s37_s25, %s37_s25 }
   0xb   :  { %p7973_p3 = scmp.ne.s32.totalorder %s37_s25, %s7972_s12  ;;  %p7978_p5 = scmp.lt.s32.totalorder %s7972_s12, %s7972_s12 }
   0xd   :  { %p7979_p6 = por %p7978_p5, %p7977_p4 }
   0xf   :  { %p7980_p7 = pnand %p7979_p6, %p7973_p3 }
  0x11   :  { %7983 = shalt.err (!%p7980_p7)
}
  0x12   :  { %39 = dma.hbm_to_vmem [thread:$0]  %s8419_s2, 256, %s37_s25, [#allocation6]  }
  0x13   :  { %s7984_s17 = scalar_lea.hbm %s8421_s4, 80 }
  0x14   :  { %p7985_p8 = scmp.ne.s32.totalorder %s8421_s4, %s7984_s17  ;;  %p7988_p9 = scmp.lt.u32.totalorder %s7984_s17, %s8421_s4 }
  0x16   :  { %p7990_p10 = pnand %p7988_p9, %p7985_p8 }
  0x18   :  { %7993 = shalt.err (!%p7990_p10)
}
  0x19   :  { %s7994_s22 = scalar_lea.vmem %s59_s27, 80  ;;  %s7998_s23 = scalar_lea.vmem %s59_s27, 96 }
  0x1a   :  { %p7995_p11 = scmp.ne.s32.totalorder %s59_s27, %s7994_s22  ;;  %p7999_p12 = scmp.lt.s32.totalorder %s59_s27, %s59_s27 }
  0x1b   :  { %p8000_p13 = scmp.lt.s32.totalorder %s7998_s23, %s7994_s22 }
  0x1d   :  { %p8001_p0 = por %p8000_p13, %p7999_p12 }
  0x1f   :  { %p8002_p1 = pnand %p8001_p0, %p7995_p11 }
  0x21   :  { %8005 = shalt.err (!%p8002_p1)
}
  0x22   :  { %61 = dma.hbm_to_vmem [thread:$0]  %s8421_s4, 80, %s59_s27, [#allocation9]  }
  0x23   :  { %s8080_s25 = smov [#allocation3]   ;;  %s8006_s30 = scalar_lea.hbm %s8418_s1, 12288 }
  0x24   :  { %s23_s26 = sshll.u32 %s8080_s25, 4  ;;  %p8007_p2 = scmp.ne.s32.totalorder %s8418_s1, %s8006_s30  ;;  %s24_s26 = int_to_ptr.vmem [resolvable:$true] %s23_s26 }
  0x25   :  { %p8010_p3 = scmp.lt.u32.totalorder %s8006_s30, %s8418_s1 }
  0x27   :  { %p8012_p4 = pnand %p8010_p3, %p8007_p2 }
  0x29   :  { %8015 = shalt.err (!%p8012_p4)
}
  0x2a   :  { %s8016_s12 = scalar_lea.vmem %s24_s26, 12288  ;;  %p8021_p6 = scmp.lt.s32.totalorder %s24_s26, %s24_s26 }
  0x2b   :  { %p8017_p5 = scmp.ne.s32.totalorder %s24_s26, %s8016_s12  ;;  %p8022_p7 = scmp.lt.s32.totalorder %s8016_s12, %s8016_s12 }
  0x2d   :  { %p8023_p8 = por %p8022_p7, %p8021_p6 }
  0x2f   :  { %p8024_p9 = pnand %p8023_p8, %p8017_p5 }
  0x31   :  { %8027 = shalt.err (!%p8024_p9)
}
  0x32   :  { %s8081_s4 = smov 2048   ;;  %s8082_s27 = smov 128  }
  0x33   :  { %29 = dma.hbm_to_vmem [thread:$0]  %s8418_s1, 12288, %s24_s26, [#allocation4], %s8081_s4, %s8081_s4, %s8082_s27  }
  0x34   :  { %s8083_s15 = smov [#allocation7]   ;;  %s8028_s19 = scalar_lea.hbm %s8420_s3, 81920 }
  0x35   :  { %s45_s16 = sshll.u32 %s8083_s15, 4  ;;  %p8029_p10 = scmp.ne.s32.totalorder %s8420_s3, %s8028_s19  ;;  %s46_s16 = int_to_ptr.vmem [resolvable:$true] %s45_s16 }
  0x36   :  { %p8032_p11 = scmp.lt.u32.totalorder %s8028_s19, %s8420_s3 }
  0x38   :  { %p8034_p12 = pnand %p8032_p11, %p8029_p10 }
  0x3a   :  { %8037 = shalt.err (!%p8034_p12)
}
  0x3b   :  { %s8038_s2 = scalar_lea.vmem %s46_s16, 81920  ;;  %p8043_p0 = scmp.lt.s32.totalorder %s46_s16, %s46_s16 }
  0x3c   :  { %p8039_p13 = scmp.ne.s32.totalorder %s46_s16, %s8038_s2  ;;  %p8044_p1 = scmp.lt.s32.totalorder %s8038_s2, %s8038_s2 }
  0x3e   :  { %p8045_p2 = por %p8044_p1, %p8043_p0 }
  0x40   :  { %p8046_p3 = pnand %p8045_p2, %p8039_p13 }
  0x42   :  { %8049 = shalt.err (!%p8046_p3)
}
  0x43   :  { %s8084_s1 = smov 320   ;;  %s8085_s24 = smov 20  }
  0x44   :  { %51 = dma.hbm_to_vmem [thread:$0]  %s8420_s3, 81920, %s46_s16, [#allocation6], %s8084_s1, %s8084_s1, %s8085_s24  }
  0x45   :  { %s8086_s28 = smov [#allocation10]   ;;  %s8050_s9 = scalar_lea.hbm %s8422_s5, 80 }
  0x46   :  { %s68_s29 = sshll.u32 %s8086_s28, 4  ;;  %p8051_p4 = scmp.ne.s32.totalorder %s8422_s5, %s8050_s9  ;;  %s69_s29 = int_to_ptr.vmem [resolvable:$true] %s68_s29 }
  0x47   :  { %p8054_p5 = scmp.lt.u32.totalorder %s8050_s9, %s8422_s5 }
  0x49   :  { %p8056_p6 = pnand %p8054_p5, %p8051_p4 }
  0x4b   :  { %8059 = shalt.err (!%p8056_p6)
}
  0x4c   :  { %s8060_s27 = scalar_lea.vmem %s69_s29, 80  ;;  %s8064_s3 = scalar_lea.vmem %s69_s29, 96 }
  0x4d   :  { %p8061_p7 = scmp.ne.s32.totalorder %s69_s29, %s8060_s27  ;;  %p8065_p8 = scmp.lt.s32.totalorder %s69_s29, %s69_s29 }
  0x4e   :  { %p8066_p9 = scmp.lt.s32.totalorder %s8064_s3, %s8060_s27 }
  0x50   :  { %p8067_p10 = por %p8066_p9, %p8065_p8 }
  0x52   :  { %p8068_p11 = pnand %p8067_p10, %p8061_p7 }
  0x54   :  { %8071 = shalt.err (!%p8068_p11)
}
  0x55   :  { %71 = dma.hbm_to_vmem [thread:$0]  %s8422_s5, 80, %s69_s29, [#allocation9]  }
  0x56   :  { %8072 = dma.done.wait [#allocation4], 12288  }
  0x57   :  { %8073 = vsyncadd [#allocation4], 4294955008 }
  0x58   :  { %8074 = dma.done.wait [#allocation6], 82176  }
  0x59   :  { %8075 = vsyncadd [#allocation6], 4294885120 }
  0x5a   :  { %8076 = dma.done.wait [#allocation9], 160  }
  0x5b   :  { %8077 = vsyncadd [#allocation9], 4294967136  ;;  %v8087_v0 = vmov 0.0   ;;  %v92_v1 = vld [vmem:[#allocation3 + $0x8] sm:$0xff]  ;;  %v91_v3 = vld [vmem:[#allocation3] sm:$0xff]  ;;  %vm271_vm0 = vcmask 392192  }
  0x5c   :  { %339 = vmatprep.mubr.f32.mxu0 %v8087_v0  ;;  %410 = vmatprep.mubr.f32.mxu1 %v8087_v0  ;;  %v108_v2 = vld [vmem:[#allocation3 + $0x88] sm:$0xff]  ;;  %v107_v5 = vld [vmem:[#allocation3 + $0x80] sm:$0xff]  ;;  %v94_v17 = vld [vmem:[#allocation3 + $0x18] sm:$0xff]  ;;  %vm6021_vm1 = vcmask 7168  }
  0x5d   :  { %v6854_v4 = vpack.c.bf16 %v108_v2, %v92_v1  ;;  %v124_v6 = vld [vmem:[#allocation3 + $0x108] sm:$0xff]  ;;  %v6856_v8 = vpack.c.bf16 %v107_v5, %v91_v3  ;;  %v123_v10 = vld [vmem:[#allocation3 + $0x100] sm:$0xff]  ;;  %v110_v18 = vld [vmem:[#allocation3 + $0x98] sm:$0xff] }
  0x5e   :  { %v140_v7 = vld [vmem:[#allocation3 + $0x188] sm:$0xff]  ;;  %v139_v11 = vld [vmem:[#allocation3 + $0x180] sm:$0xff]  ;;  %v6866_v20 = vpack.c.bf16 %v110_v18, %v94_v17  ;;  %v93_v21 = vld [vmem:[#allocation3 + $0x10] sm:$0xff] }
  0x5f   :  { %v6858_v9 = vpack.c.bf16 %v140_v7, %v124_v6  ;;  %v156_v12 = vld [vmem:[#allocation3 + $0x208] sm:$0xff]  ;;  %6855 = vmatprep.subr.bf16.mxu0 %v6854_v4  ;;  %v155_v14 = vld [vmem:[#allocation3 + $0x200] sm:$0xff]  ;;  %v6860_v15 = vpack.c.bf16 %v139_v11, %v123_v10  ;;  %v109_v22 = vld [vmem:[#allocation3 + $0x90] sm:$0xff] }
  0x60   :  { %v172_v13 = vld [vmem:[#allocation3 + $0x288] sm:$0xff]  ;;  %6857 = vmatpush1.bf16.msra.mxu0 %v6856_v8  ;;  %v171_v16 = vld [vmem:[#allocation3 + $0x280] sm:$0xff]  ;;  %v126_v23 = vld [vmem:[#allocation3 + $0x118] sm:$0xff]  ;;  %v6868_v24 = vpack.c.bf16 %v109_v22, %v93_v21  ;;  %6867 = vmatprep.subr.bf16.mxu1 %v6866_v20 }
  0x61   :  { %6859 = vmatprep.subr.bf16.mxu0 %v6858_v9  ;;  %v6862_v19 = vpack.c.bf16 %v172_v13, %v156_v12  ;;  %v142_v25 = vld [vmem:[#allocation3 + $0x198] sm:$0xff]  ;;  %v125_v26 = vld [vmem:[#allocation3 + $0x110] sm:$0xff]  ;;  %v6864_v31 = vpack.c.bf16 %v171_v16, %v155_v14  ;;  %v96_v34 = vld [vmem:[#allocation3 + $0x28] sm:$0xff] }
  0x62   :  { %v141_v27 = vld [vmem:[#allocation3 + $0x190] sm:$0xff]  ;;  %v6870_v28 = vpack.c.bf16 %v142_v25, %v126_v23  ;;  %v158_v29 = vld [vmem:[#allocation3 + $0x218] sm:$0xff]  ;;  %6869 = vmatpush1.bf16.msra.mxu1 %v6868_v24  ;;  %v112_v35 = vld [vmem:[#allocation3 + $0xa8] sm:$0xff] }
  0x63   :  { %v174_v30 = vld [vmem:[#allocation3 + $0x298] sm:$0xff]  ;;  %v6872_v32 = vpack.c.bf16 %v141_v27, %v125_v26  ;;  %v157_v33 = vld [vmem:[#allocation3 + $0x210] sm:$0xff]  ;;  %v6878_v38 = vpack.c.bf16 %v112_v35, %v96_v34  ;;  %v95_v39 = vld [vmem:[#allocation3 + $0x20] sm:$0xff] }
  0x64   :  { %6861 = vmatpush1.bf16.msra.mxu0 %v6860_v15  ;;  %6871 = vmatprep.subr.bf16.mxu1 %v6870_v28  ;;  %v6874_v36 = vpack.c.bf16 %v174_v30, %v158_v29  ;;  %v173_v37 = vld [vmem:[#allocation3 + $0x290] sm:$0xff]  ;;  %v111_v40 = vld [vmem:[#allocation3 + $0xa0] sm:$0xff]  ;;  %v128_v41 = vld [vmem:[#allocation3 + $0x128] sm:$0xff] }
  0x65   :  { %6863 = vmatprep.subr.bf16.mxu0 %v6862_v19  ;;  %v144_v42 = vld [vmem:[#allocation3 + $0x1a8] sm:$0xff]  ;;  %v8193_v43 = vld [vmem:[%s8417_s0] sm:$0xff]  ;;  %v6876_v45 = vpack.c.bf16 %v173_v37, %v157_v33  ;;  %v6880_v46 = vpack.c.bf16 %v111_v40, %v95_v39  ;;  %v98_v48 = vld [vmem:[#allocation3 + $0x38] sm:$0xff] }
  0x66   :  { %v127_v44 = vld [vmem:[#allocation3 + $0x120] sm:$0xff]  ;;  %6873 = vmatpush1.bf16.msra.mxu1 %v6872_v32  ;;  %v114_v49 = vld [vmem:[#allocation3 + $0xb8] sm:$0xff]  ;;  %v6882_v50 = vpack.c.bf16 %v144_v42, %v128_v41  ;;  %v160_v51 = vld [vmem:[#allocation3 + $0x228] sm:$0xff] }
  0x67   :  { %v143_v47 = vld [vmem:[#allocation3 + $0x1a0] sm:$0xff]  ;;  %6875 = vmatprep.subr.bf16.mxu1 %v6874_v36  ;;  %v97_v52 = vld [vmem:[#allocation3 + $0x30] sm:$0xff]  ;;  %v176_v54 = vld [vmem:[#allocation3 + $0x2a8] sm:$0xff]  ;;  %v6890_v55 = vpack.c.bf16 %v114_v49, %v98_v48 }
  0x68   :  { %6865 = vmatpush1.bf16.msra.mxu0 %v6864_v31  ;;  %v113_v53 = vld [vmem:[#allocation3 + $0xb0] sm:$0xff]  ;;  %v130_v56 = vld [vmem:[#allocation3 + $0x138] sm:$0xff]  ;;  %v6884_v58 = vpack.c.bf16 %v143_v47, %v127_v44  ;;  %v159_v59 = vld [vmem:[#allocation3 + $0x220] sm:$0xff]  ;;  %v6886_v62 = vpack.c.bf16 %v176_v54, %v160_v51 }
  0x69   :  { %6879 = vmatprep.subr.bf16.mxu0 %v6878_v38  ;;  %v146_v57 = vld [vmem:[#allocation3 + $0x1b8] sm:$0xff]  ;;  %v175_v60 = vld [vmem:[#allocation3 + $0x2a0] sm:$0xff]  ;;  %v6892_v61 = vpack.c.bf16 %v113_v53, %v97_v52  ;;  %v129_v1 = vld [vmem:[#allocation3 + $0x130] sm:$0xff] }
  0x6a   :  { %6877 = vmatpush1.bf16.msra.mxu1 %v6876_v45  ;;  %v6894_v63 = vpack.c.bf16 %v146_v57, %v130_v56  ;;  %v145_v2 = vld [vmem:[#allocation3 + $0x1b0] sm:$0xff]  ;;  %v162_v3 = vld [vmem:[#allocation3 + $0x238] sm:$0xff]  ;;  %v100_v5 = vld [vmem:[#allocation3 + $0x48] sm:$0xff]  ;;  %v6888_v7 = vpack.c.bf16 %v175_v60, %v159_v59 }
  0x6b   :  { %6030 = vmatmul.mubr.msk.f32.vlgmr.msra.gmra.mrb[0].mxu0 %vm271_vm0, %v8193_v43  ;;  %6891 = vmatprep.subr.bf16.mxu1 %v6890_v55  ;;  %v178_v4 = vld [vmem:[#allocation3 + $0x2b8] sm:$0xff]  ;;  %v116_v6 = vld [vmem:[#allocation3 + $0xc8] sm:$0xff]  ;;  %v6896_v8 = vpack.c.bf16 %v145_v2, %v129_v1  ;;  %v161_v9 = vld [vmem:[#allocation3 + $0x230] sm:$0xff] }
  0x6c   :  { %6881 = vmatpush1.bf16.msra.mxu0 %v6880_v46  ;;  %481 = vmatprep.mubr.f32.mxu0 %v8087_v0  ;;  %v177_v10 = vld [vmem:[#allocation3 + $0x2b0] sm:$0xff]  ;;  %v6898_v11 = vpack.c.bf16 %v178_v4, %v162_v3  ;;  %v6902_v12 = vpack.c.bf16 %v116_v6, %v100_v5  ;;  %v102_v13 = vld [vmem:[#allocation3 + $0x58] sm:$0xff]  ;;  %v99_v14 = vld [vmem:[#allocation3 + $0x40] sm:$0xff] }
  0x6d   :  { %6883 = vmatprep.subr.bf16.mxu0 %v6882_v50  ;;  %6031 = vmatmul.mubr.msk.f32.vlgmr.msra.gmra.mrb[0].mxu1 %vm271_vm0, %v8193_v43  ;;  %v115_v15 = vld [vmem:[#allocation3 + $0xc0] sm:$0xff]  ;;  %v118_v16 = vld [vmem:[#allocation3 + $0xd8] sm:$0xff]  ;;  %v132_v17 = vld [vmem:[#allocation3 + $0x148] sm:$0xff]  ;;  %v6900_v19 = vpack.c.bf16 %v177_v10, %v161_v9 }
  0x6e   :  { %6893 = vmatpush1.bf16.msra.mxu1 %v6892_v61  ;;  %552 = vmatprep.mubr.f32.mxu1 %v8087_v0  ;;  %v148_v18 = vld [vmem:[#allocation3 + $0x1c8] sm:$0xff]  ;;  %v6904_v20 = vpack.c.bf16 %v115_v15, %v99_v14  ;;  %v101_v21 = vld [vmem:[#allocation3 + $0x50] sm:$0xff]  ;;  %v6914_v23 = vpack.c.bf16 %v118_v16, %v102_v13  ;;  %v134_v25 = vld [vmem:[#allocation3 + $0x158] sm:$0xff] }
  0x6f   :  { %6895 = vmatprep.subr.bf16.mxu1 %v6894_v63  ;;  %v117_v22 = vld [vmem:[#allocation3 + $0xd0] sm:$0xff]  ;;  %v6906_v24 = vpack.c.bf16 %v148_v18, %v132_v17  ;;  %v131_v26 = vld [vmem:[#allocation3 + $0x140] sm:$0xff]  ;;  %v150_v28 = vld [vmem:[#allocation3 + $0x1d8] sm:$0xff] }
  0x70   :  { %6885 = vmatpush1.bf16.msra.mxu0 %v6884_v58  ;;  %v147_v27 = vld [vmem:[#allocation3 + $0x1c0] sm:$0xff]  ;;  %v164_v29 = vld [vmem:[#allocation3 + $0x248] sm:$0xff]  ;;  %v6916_v31 = vpack.c.bf16 %v117_v22, %v101_v21  ;;  %v133_v33 = vld [vmem:[#allocation3 + $0x150] sm:$0xff]  ;;  %v6918_v35 = vpack.c.bf16 %v150_v28, %v134_v25 }
  0x71   :  { %6887 = vmatprep.subr.bf16.mxu0 %v6886_v62  ;;  %v180_v30 = vld [vmem:[#allocation3 + $0x2c8] sm:$0xff]  ;;  %v6908_v32 = vpack.c.bf16 %v147_v27, %v131_v26  ;;  %v149_v34 = vld [vmem:[#allocation3 + $0x1d0] sm:$0xff]  ;;  %v166_v37 = vld [vmem:[#allocation3 + $0x258] sm:$0xff] }
  0x72   :  { %6897 = vmatpush1.bf16.msra.mxu1 %v6896_v8  ;;  %v6910_v36 = vpack.c.bf16 %v180_v30, %v164_v29  ;;  %v163_v38 = vld [vmem:[#allocation3 + $0x240] sm:$0xff]  ;;  %v182_v40 = vld [vmem:[#allocation3 + $0x2d8] sm:$0xff]  ;;  %v104_v41 = vld [vmem:[#allocation3 + $0x68] sm:$0xff]  ;;  %v6920_v46 = vpack.c.bf16 %v149_v34, %v133_v33 }
  0x73   :  { %6899 = vmatprep.subr.bf16.mxu1 %v6898_v11  ;;  %v179_v39 = vld [vmem:[#allocation3 + $0x2c0] sm:$0xff]  ;;  %v120_v42 = vld [vmem:[#allocation3 + $0xe8] sm:$0xff]  ;;  %v165_v44 = vld [vmem:[#allocation3 + $0x250] sm:$0xff]  ;;  %v6922_v50 = vpack.c.bf16 %v182_v40, %v166_v37 }
  0x74   :  { %6889 = vmatpush1.bf16.msra.mxu0 %v6888_v7  ;;  %v181_v45 = vld [vmem:[#allocation3 + $0x2d0] sm:$0xff]  ;;  %v6912_v47 = vpack.c.bf16 %v179_v39, %v163_v38  ;;  %v106_v48 = vld [vmem:[#allocation3 + $0x78] sm:$0xff]  ;;  %v6926_v51 = vpack.c.bf16 %v120_v42, %v104_v41  ;;  %v103_v52 = vld [vmem:[#allocation3 + $0x60] sm:$0xff] }
  0x75   :  { %6903 = vmatprep.subr.bf16.mxu0 %v6902_v12  ;;  %v122_v49 = vld [vmem:[#allocation3 + $0xf8] sm:$0xff]  ;;  %v119_v53 = vld [vmem:[#allocation3 + $0xe0] sm:$0xff]  ;;  %v136_v54 = vld [vmem:[#allocation3 + $0x168] sm:$0xff]  ;;  %v6924_v58 = vpack.c.bf16 %v181_v45, %v165_v44 }
  0x76   :  { %6901 = vmatpush1.bf16.msra.mxu1 %v6900_v19  ;;  %v152_v55 = vld [vmem:[#allocation3 + $0x1e8] sm:$0xff]  ;;  %v105_v56 = vld [vmem:[#allocation3 + $0x70] sm:$0xff]  ;;  %v6928_v59 = vpack.c.bf16 %v119_v53, %v103_v52  ;;  %v138_v60 = vld [vmem:[#allocation3 + $0x178] sm:$0xff]  ;;  %v6938_v62 = vpack.c.bf16 %v122_v49, %v106_v48 }
  0x77   :  { %6032 = vmatmul.mubr.msk.f32.vlgmr.msra.gmra.mrb[2].mxu0 %vm271_vm0, %v8193_v43  ;;  %6915 = vmatprep.subr.bf16.mxu1 %v6914_v23  ;;  %v121_v57 = vld [vmem:[#allocation3 + $0xf0] sm:$0xff]  ;;  %v154_v61 = vld [vmem:[#allocation3 + $0x1f8] sm:$0xff]  ;;  %v6930_v63 = vpack.c.bf16 %v152_v55, %v136_v54  ;;  %v135_v1 = vld [vmem:[#allocation3 + $0x160] sm:$0xff] }
  0x78   :  { %6905 = vmatpush1.bf16.msra.mxu0 %v6904_v20  ;;  %623 = vmatprep.mubr.f32.mxu0 %v8087_v0  ;;  %v151_v2 = vld [vmem:[#allocation3 + $0x1e0] sm:$0xff]  ;;  %v168_v3 = vld [vmem:[#allocation3 + $0x268] sm:$0xff]  ;;  %v137_v5 = vld [vmem:[#allocation3 + $0x170] sm:$0xff]  ;;  %v6940_v6 = vpack.c.bf16 %v121_v57, %v105_v56  ;;  %v6942_v9 = vpack.c.bf16 %v154_v61, %v138_v60 }
  0x79   :  { %6907 = vmatprep.subr.bf16.mxu0 %v6906_v24  ;;  %6033 = vmatmul.mubr.msk.f32.vlgmr.msra.gmra.mrb[2].mxu1 %vm271_vm0, %v8193_v43  ;;  %v184_v4 = vld [vmem:[#allocation3 + $0x2e8] sm:$0xff]  ;;  %v6932_v7 = vpack.c.bf16 %v151_v2, %v135_v1  ;;  %v153_v8 = vld [vmem:[#allocation3 + $0x1f0] sm:$0xff]  ;;  %v167_v11 = vld [vmem:[#allocation3 + $0x260] sm:$0xff] }
  0x7a   :  { %6917 = vmatpush1.bf16.msra.mxu1 %v6916_v31  ;;  %694 = vmatprep.mubr.f32.mxu1 %v8087_v0  ;;  %v6934_v10 = vpack.c.bf16 %v184_v4, %v168_v3  ;;  %v183_v12 = vld [vmem:[#allocation3 + $0x2e0] sm:$0xff]  ;;  %v170_v13 = vld [vmem:[#allocation3 + $0x278] sm:$0xff]  ;;  %v6944_v15 = vpack.c.bf16 %v153_v8, %v137_v5  ;;  %v169_v17 = vld [vmem:[#allocation3 + $0x270] sm:$0xff] }
  0x7b   :  { %6919 = vmatprep.subr.bf16.mxu1 %v6918_v35  ;;  %v186_v14 = vld [vmem:[#allocation3 + $0x2f8] sm:$0xff]  ;;  %v6936_v16 = vpack.c.bf16 %v183_v12, %v167_v11  ;;  %v185_v19 = vld [vmem:[#allocation3 + $0x2f0] sm:$0xff]  ;;  %v7037_v30 = vld [vmem:[#allocation7 + $0x5c] ss:$20 sps:$4 sm:$0xff]  }
  0x7c   :  { %6909 = vmatpush1.bf16.msra.mxu0 %v6908_v32  ;;  %v6946_v18 = vpack.c.bf16 %v186_v14, %v170_v13  ;;  %v7022_v20 = vld [vmem:[#allocation7 + $0x4] ss:$20 sps:$4 sm:$0xff]   ;;  %v6948_v21 = vpack.c.bf16 %v185_v19, %v169_v17  ;;  %v7020_v22 = vld [vmem:[#allocation7] ss:$20 sps:$4 sm:$0xff]   ;;  %v7023_v25 = vld [vmem:[#allocation7 + $0x8] ss:$20 sps:$4 sm:$0xff]  }
  0x7d   :  { %6911 = vmatprep.subr.bf16.mxu0 %v6910_v36  ;;  %v7025_v23 = vld [vmem:[#allocation7 + $0xc] ss:$20 sps:$4 sm:$0xff]   ;;  %v7026_v26 = vld [vmem:[#allocation7 + $0x28] ss:$20 sps:$4 sm:$0xff]   ;;  %v7032_v29 = vld [vmem:[#allocation7 + $0x50] ss:$20 sps:$4 sm:$0xff]  }
  0x7e   :  { %6921 = vmatpush1.bf16.msra.mxu1 %v6920_v46  ;;  %v7028_v24 = vld [vmem:[#allocation7 + $0x2c] ss:$20 sps:$4 sm:$0xff]   ;;  %v7031_v27 = vld [vmem:[#allocation7 + $0x34] ss:$20 sps:$4 sm:$0xff]   ;;  %v7040_v31 = vld [vmem:[#allocation7 + $0x7c] ss:$20 sps:$4 sm:$0xff]  }
  0x7f   :  { %6923 = vmatprep.subr.bf16.mxu1 %v6922_v50  ;;  %v7034_v28 = vld [vmem:[#allocation7 + $0x54] ss:$20 sps:$4 sm:$0xff]   ;;  %v7035_v32 = vld [vmem:[#allocation7 + $0x58] ss:$20 sps:$4 sm:$0xff]   ;;  %v7053_v44 = vld [vmem:[#allocation7 + $0xd0] ss:$20 sps:$4 sm:$0xff]  }
  0x80   :  { %6913 = vmatpush1.bf16.msra.mxu0 %v6912_v47  ;;  %v7038_v33 = vld [vmem:[#allocation7 + $0x78] ss:$20 sps:$4 sm:$0xff]   ;;  %v7041_v36 = vld [vmem:[#allocation7 + $0x80] ss:$20 sps:$4 sm:$0xff]   ;;  %v7047_v39 = vld [vmem:[#allocation7 + $0xa8] ss:$20 sps:$4 sm:$0xff]  }
  0x81   :  { %6927 = vmatprep.subr.bf16.mxu0 %v6926_v51  ;;  %v7043_v34 = vld [vmem:[#allocation7 + $0x84] ss:$20 sps:$4 sm:$0xff]   ;;  %v7044_v37 = vld [vmem:[#allocation7 + $0xa0] ss:$20 sps:$4 sm:$0xff]   ;;  %v7050_v40 = vld [vmem:[#allocation7 + $0xc8] ss:$20 sps:$4 sm:$0xff]  }
  0x82   :  { %6925 = vmatpush1.bf16.msra.mxu1 %v6924_v58  ;;  %v7046_v35 = vld [vmem:[#allocation7 + $0xa4] ss:$20 sps:$4 sm:$0xff]   ;;  %v7052_v38 = vld [vmem:[#allocation7 + $0xcc] ss:$20 sps:$4 sm:$0xff]   ;;  %v7055_v41 = vld [vmem:[#allocation7 + $0xd4] ss:$20 sps:$4 sm:$0xff]  }
  0x83   :  { %6034 = vmatmul.mubr.msk.f32.vlgmr.msra.gmra.mrb[4].mxu0 %vm271_vm0, %v8193_v43  ;;  %6939 = vmatprep.subr.bf16.mxu1 %v6938_v62  ;;  %v7058_v42 = vld [vmem:[#allocation7 + $0xf4] ss:$20 sps:$4 sm:$0xff]   ;;  %v7056_v45 = vld [vmem:[#allocation7 + $0xf0] ss:$20 sps:$4 sm:$0xff]   ;;  %v7059_v48 = vld [vmem:[#allocation7 + $0xf8] ss:$20 sps:$4 sm:$0xff]  }
  0x84   :  { %6929 = vmatpush1.bf16.msra.mxu0 %v6928_v59  ;;  %765 = vmatprep.mubr.f32.mxu0 %v8087_v0  ;;  %v7061_v46 = vld [vmem:[#allocation7 + $0xfc] ss:$20 sps:$4 sm:$0xff]   ;;  %v7062_v49 = vld [vmem:[#allocation7 + $0x118] ss:$20 sps:$4 sm:$0xff]   ;;  %v7065_v52 = vld [vmem:[#allocation7 + $0x120] ss:$20 sps:$4 sm:$0xff]  }
  0x85   :  { %6931 = vmatprep.subr.bf16.mxu0 %v6930_v63  ;;  %6035 = vmatmul.mubr.msk.f32.vlgmr.msra.gmra.mrb[4].mxu1 %vm271_vm0, %v8193_v43  ;;  %v7064_v47 = vld [vmem:[#allocation7 + $0x11c] ss:$20 sps:$4 sm:$0xff]   ;;  %v7067_v50 = vld [vmem:[#allocation7 + $0x124] ss:$20 sps:$4 sm:$0xff]   ;;  %v7068_v53 = vld [vmem:[#allocation7 + $0x140] ss:$20 sps:$4 sm:$0xff]  }
  0x86   :  { %6941 = vmatpush1.bf16.msra.mxu1 %v6940_v6  ;;  %836 = vmatprep.mubr.f32.mxu1 %v8087_v0  ;;  %v7029_v0 = vld [vmem:[#allocation7 + $0x30] ss:$20 sps:$4 sm:$0xff]   ;;  %v7073_v54 = vld [vmem:[#allocation7 + $0x14c] ss:$20 sps:$4 sm:$0xff]   ;;  %v7071_v56 = vld [vmem:[#allocation7 + $0x148] ss:$20 sps:$4 sm:$0xff]  }
  0x87   :  { %6943 = vmatprep.subr.bf16.mxu1 %v6942_v9  ;;  %v7070_v51 = vld [vmem:[#allocation7 + $0x144] ss:$20 sps:$4 sm:$0xff]   ;;  %v7076_v55 = vld [vmem:[#allocation7 + $0x16c] ss:$20 sps:$4 sm:$0xff]   ;;  %v7074_v57 = vld [vmem:[#allocation7 + $0x168] ss:$20 sps:$4 sm:$0xff]  }
  0x88   :  { %6933 = vmatpush1.bf16.msra.mxu0 %v6932_v7  ;;  %v7079_v58 = vld [vmem:[#allocation7 + $0x174] ss:$20 sps:$4 sm:$0xff]   ;;  %v7077_v60 = vld [vmem:[#allocation7 + $0x170] ss:$20 sps:$4 sm:$0xff]   ;;  %v7083_v1 = vld [vmem:[#allocation7 + $0x198] ss:$20 sps:$4 sm:$0xff]  }
  0x89   :  { %6935 = vmatprep.subr.bf16.mxu0 %v6934_v10  ;;  %v7082_v59 = vld [vmem:[#allocation7 + $0x194] ss:$20 sps:$4 sm:$0xff]   ;;  %v7080_v61 = vld [vmem:[#allocation7 + $0x190] ss:$20 sps:$4 sm:$0xff]   ;;  %v7086_v2 = vld [vmem:[#allocation7 + $0x1b8] ss:$20 sps:$4 sm:$0xff]  }
  0x8a   :  { %6945 = vmatpush1.bf16.msra.mxu1 %v6944_v15  ;;  %v7085_v62 = vld [vmem:[#allocation7 + $0x19c] ss:$20 sps:$4 sm:$0xff]   ;;  %v7091_v3 = vld [vmem:[#allocation7 + $0x1c4] ss:$20 sps:$4 sm:$0xff]   ;;  %v7089_v4 = vld [vmem:[#allocation7 + $0x1c0] ss:$20 sps:$4 sm:$0xff]  }
  0x8b   :  { %6947 = vmatprep.subr.bf16.mxu1 %v6946_v18  ;;  %v7088_v63 = vld [vmem:[#allocation7 + $0x1bc] ss:$20 sps:$4 sm:$0xff]   ;;  %v7094_v5 = vld [vmem:[#allocation7 + $0x1e4] ss:$20 sps:$4 sm:$0xff]   ;;  %v7097_v6 = vld [vmem:[#allocation7 + $0x1ec] ss:$20 sps:$4 sm:$0xff]  }
  0x8c   :  { %6937 = vmatpush1.bf16.msra.mxu0 %v6936_v16  ;;  %v7092_v7 = vld [vmem:[#allocation7 + $0x1e0] ss:$20 sps:$4 sm:$0xff]   ;;  %v7095_v8 = vld [vmem:[#allocation7 + $0x1e8] ss:$20 sps:$4 sm:$0xff]   ;;  %v7101_v12 = vld [vmem:[#allocation7 + $0x210] ss:$20 sps:$4 sm:$0xff]  }
  0x8d   :  { %4998 = vmatprep.subr.bf16.mxu0 %v7022_v20  ;;  %v7100_v9 = vld [vmem:[#allocation7 + $0x20c] ss:$20 sps:$4 sm:$0xff]   ;;  %v7103_v10 = vld [vmem:[#allocation7 + $0x214] ss:$20 sps:$4 sm:$0xff]   ;;  %v7109_v14 = vld [vmem:[#allocation7 + $0x23c] ss:$20 sps:$4 sm:$0xff]  }
  0x8e   :  { %6949 = vmatpush1.bf16.msra.mxu1 %v6948_v21  ;;  %v7098_v11 = vld [vmem:[#allocation7 + $0x208] ss:$20 sps:$4 sm:$0xff]   ;;  %v7104_v15 = vld [vmem:[#allocation7 + $0x230] ss:$20 sps:$4 sm:$0xff]   ;;  %v7107_v16 = vld [vmem:[#allocation7 + $0x238] ss:$20 sps:$4 sm:$0xff]  }
  0x8f   :  { %6036 = vmatmul.mubr.msk.f32.vlgmr.msra.gmra.mrb[6].mxu0 %vm271_vm0, %v8193_v43  ;;  %5326 = vmatprep.subr.bf16.mxu1 %v7025_v23  ;;  %v7106_v13 = vld [vmem:[#allocation7 + $0x234] ss:$20 sps:$4 sm:$0xff]   ;;  %v7112_v17 = vld [vmem:[#allocation7 + $0x25c] ss:$20 sps:$4 sm:$0xff]   ;;  %v7115_v18 = vld [vmem:[#allocation7 + $0x264] ss:$20 sps:$4 sm:$0xff]   ;;  %v191_v23 = vlaneseq }
  0x90   :  { %4999 = vmatpush1.bf16.msra.mxu0 %v7020_v22  ;;  %v7110_v19 = vld [vmem:[#allocation7 + $0x258] ss:$20 sps:$4 sm:$0xff]   ;;  %v7113_v20 = vld [vmem:[#allocation7 + $0x260] ss:$20 sps:$4 sm:$0xff]  }
  0x91   :  { %5000 = vmatprep.subr.bf16.mxu0 %v7028_v24  ;;  %6037 = vmatmul.mubr.msk.f32.vlgmr.msra.gmra.mrb[6].mxu1 %vm271_vm0, %v8193_v43  ;;  %v7049_v43 = vld [vmem:[#allocation7 + $0xac] ss:$20 sps:$4 sm:$0xff]   ;;  %v7118_v21 = vld [vmem:[#allocation7 + $0x284] ss:$20 sps:$4 sm:$0xff]   ;;  %v8217_v24 = vshrl.u32 %v191_v23, 7 }
  0x92   :  { %5327 = vmatpush1.bf16.msra.mxu1 %v7023_v25  ;;  %v7121_v22 = vld [vmem:[#allocation7 + $0x28c] ss:$20 sps:$4 sm:$0xff]   ;;  %v8219_v25 = vld [vmem:[#allocation5] sm:$0xff] }
  0x93   :  { %5328 = vmatprep.subr.bf16.mxu1 %v7031_v27  ;;  %v8225_v27 = vsub.s32 1, %v8217_v24  ;;  %v7157_v23 = vld [vmem:[#allocation7 + $0x37c] ss:$20 sps:$4 sm:$0xff]  }
  0x94   :  { %5001 = vmatpush1.bf16.msra.mxu0 %v7026_v26  ;;  %v8222_v26 = vsub.s32 0, %v8217_v24 }
  0x95   :  { %5002 = vmatprep.subr.bf16.mxu0 %v7034_v28 }
  0x96   :  { %5329 = vmatpush1.bf16.msra.mxu1 %v7029_v0  ;;  %v194_v28 = vrot.slane %v8219_v25, %v8222_v26  ;;  %v198_v0 = vrot.slane %v8219_v25, %v8225_v27 }
  0x97   :  { %5330 = vmatprep.subr.bf16.mxu1 %v7037_v30 }
  0x98   :  { %5003 = vmatpush1.bf16.msra.mxu0 %v7032_v29  ;;  %v8232_v29 = vsub.s32 3, %v8217_v24 }
  0x99   :  { %5004 = vmatprep.subr.bf16.mxu0 %v7040_v31 }
  0x9a   :  { %5331 = vmatpush1.bf16.msra.mxu1 %v7035_v32 }
  0x9b   :  { %5332 = vmatprep.subr.bf16.mxu1 %v7043_v34  ;;  %v206_v34 = vrot.slane %v8219_v25, %v8232_v29 }
  0x9c   :  { %5005 = vmatpush1.bf16.msra.mxu0 %v7038_v33 }
  0x9d   :  { %5006 = vmatprep.subr.bf16.mxu0 %v7046_v35 }
  0x9e   :  { %5333 = vmatpush1.bf16.msra.mxu1 %v7041_v36 }
  0x9f   :  { %5334 = vmatprep.subr.bf16.mxu1 %v7049_v43 }
  0xa0   :  { %5007 = vmatpush1.bf16.msra.mxu0 %v7044_v37 }
  0xa1   :  { %5008 = vmatprep.subr.bf16.mxu0 %v7052_v38 }
  0xa2   :  { %5335 = vmatpush1.bf16.msra.mxu1 %v7047_v39  ;;  %v7116_v39 = vld [vmem:[#allocation7 + $0x280] ss:$20 sps:$4 sm:$0xff]  }
  0xa3   :  { %5336 = vmatprep.subr.bf16.mxu1 %v7055_v41 }
  0xa4   :  { %5009 = vmatpush1.bf16.msra.mxu0 %v7050_v40  ;;  %v7119_v40 = vld [vmem:[#allocation7 + $0x288] ss:$20 sps:$4 sm:$0xff]  }
  0xa5   :  { %5010 = vmatprep.subr.bf16.mxu0 %v7058_v42 }
  0xa6   :  { %5337 = vmatpush1.bf16.msra.mxu1 %v7053_v44 }
  0xa7   :  { %5338 = vmatprep.subr.bf16.mxu1 %v7061_v46  ;;  %v7124_v46 = vld [vmem:[#allocation7 + $0x2ac] ss:$20 sps:$4 sm:$0xff]  }
  0xa8   :  { %5011 = vmatpush1.bf16.msra.mxu0 %v7056_v45 }
  0xa9   :  { %5012 = vmatprep.subr.bf16.mxu0 %v7064_v47  ;;  %v7127_v47 = vld [vmem:[#allocation7 + $0x2b4] ss:$20 sps:$4 sm:$0xff]  }
  0xaa   :  { %5339 = vmatpush1.bf16.msra.mxu1 %v7059_v48 }
  0xab   :  { %5340 = vmatprep.subr.bf16.mxu1 %v7067_v50 }
  0xac   :  { %5013 = vmatpush1.bf16.msra.mxu0 %v7062_v49 }
  0xad   :  { %5014 = vmatprep.subr.bf16.mxu0 %v7070_v51  ;;  %v7122_v51 = vld [vmem:[#allocation7 + $0x2a8] ss:$20 sps:$4 sm:$0xff]  }
  0xae   :  { %5341 = vmatpush1.bf16.msra.mxu1 %v7065_v52  ;;  %v7125_v52 = vld [vmem:[#allocation7 + $0x2b0] ss:$20 sps:$4 sm:$0xff]  }
  0xaf   :  { %5342 = vmatprep.subr.bf16.mxu1 %v7073_v54  ;;  %v7130_v54 = vld [vmem:[#allocation7 + $0x2d4] ss:$20 sps:$4 sm:$0xff]  }
  0xb0   :  { %5015 = vmatpush1.bf16.msra.mxu0 %v7068_v53 }
  0xb1   :  { %5016 = vmatprep.subr.bf16.mxu0 %v7076_v55  ;;  %v7133_v55 = vld [vmem:[#allocation7 + $0x2dc] ss:$20 sps:$4 sm:$0xff]  }
  0xb2   :  { %5343 = vmatpush1.bf16.msra.mxu1 %v7071_v56  ;;  %v7128_v56 = vld [vmem:[#allocation7 + $0x2d0] ss:$20 sps:$4 sm:$0xff]  }
  0xb3   :  { %5344 = vmatprep.subr.bf16.mxu1 %v7079_v58  ;;  %v7136_v58 = vld [vmem:[#allocation7 + $0x2fc] ss:$20 sps:$4 sm:$0xff]  }
  0xb4   :  { %5017 = vmatpush1.bf16.msra.mxu0 %v7074_v57  ;;  %v7131_v57 = vld [vmem:[#allocation7 + $0x2d8] ss:$20 sps:$4 sm:$0xff]  }
  0xb5   :  { %5018 = vmatprep.subr.bf16.mxu0 %v7082_v59  ;;  %v8259_v59 = vsub.s32 2, %v8217_v24 }
  0xb6   :  { %5345 = vmatpush1.bf16.msra.mxu1 %v7077_v60  ;;  %v7139_v60 = vld [vmem:[#allocation7 + $0x304] ss:$20 sps:$4 sm:$0xff]  }
  0xb7   :  { %5346 = vmatprep.subr.bf16.mxu1 %v7085_v62 }
  0xb8   :  { %5019 = vmatpush1.bf16.msra.mxu0 %v7080_v61  ;;  %v188_v61 = vld [vmem:[#allocation5 + $0x8] sm:$0xff] }
  0xb9   :  { %5020 = vmatprep.subr.bf16.mxu0 %v7088_v63 }
  0xba   :  { %5347 = vmatpush1.bf16.msra.mxu1 %v7083_v1  ;;  %v234_v1 = vrot.slane %v188_v61, %v8259_v59 }
  0xbb   :  { %5348 = vmatprep.subr.bf16.mxu1 %v7091_v3  ;;  %v7137_v3 = vld [vmem:[#allocation7 + $0x300] ss:$20 sps:$4 sm:$0xff]  }
  0xbc   :  { %5021 = vmatpush1.bf16.msra.mxu0 %v7086_v2  ;;  %v7134_v2 = vld [vmem:[#allocation7 + $0x2f8] ss:$20 sps:$4 sm:$0xff]  }
  0xbd   :  { %5022 = vmatprep.subr.bf16.mxu0 %v7094_v5  ;;  %v7142_v5 = vld [vmem:[#allocation7 + $0x324] ss:$20 sps:$4 sm:$0xff]  }
  0xbe   :  { %5349 = vmatpush1.bf16.msra.mxu1 %v7089_v4  ;;  %v238_v4 = vrot.slane %v188_v61, %v8232_v29 }
  0xbf   :  { %5350 = vmatprep.subr.bf16.mxu1 %v7097_v6  ;;  %v7145_v6 = vld [vmem:[#allocation7 + $0x32c] ss:$20 sps:$4 sm:$0xff]  }
  0xc0   :  { %5023 = vmatpush1.bf16.msra.mxu0 %v7092_v7 }
  0xc1   :  { %5024 = vmatprep.subr.bf16.mxu0 %v7100_v9 }
  0xc2   :  { %5351 = vmatpush1.bf16.msra.mxu1 %v7095_v8 }
  0xc3   :  { %5352 = vmatprep.subr.bf16.mxu1 %v7103_v10 }
  0xc4   :  { %5025 = vmatpush1.bf16.msra.mxu0 %v7098_v11  ;;  %v7140_v11 = vld [vmem:[#allocation7 + $0x320] ss:$20 sps:$4 sm:$0xff]  }
  0xc5   :  { %5026 = vmatprep.subr.bf16.mxu0 %v7106_v13  ;;  %v7148_v13 = vld [vmem:[#allocation7 + $0x34c] ss:$20 sps:$4 sm:$0xff]  }
  0xc6   :  { %5353 = vmatpush1.bf16.msra.mxu1 %v7101_v12  ;;  %v7143_v12 = vld [vmem:[#allocation7 + $0x328] ss:$20 sps:$4 sm:$0xff]  }
  0xc7   :  { %5354 = vmatprep.subr.bf16.mxu1 %v7109_v14  ;;  %v7151_v14 = vld [vmem:[#allocation7 + $0x354] ss:$20 sps:$4 sm:$0xff]  }
  0xc8   :  { %5027 = vmatpush1.bf16.msra.mxu0 %v7104_v15  ;;  %v8272_v15 = vsub.s32 4, %v8217_v24 }
  0xc9   :  { %5028 = vmatprep.subr.bf16.mxu0 %v7112_v17  ;;  %v217_v17 = vsub.s32 6, %v8217_v24 }
  0xca   :  { %5355 = vmatpush1.bf16.msra.mxu1 %v7107_v16  ;;  %v213_v16 = vsub.s32 5, %v8217_v24 }
  0xcb   :  { %5356 = vmatprep.subr.bf16.mxu1 %v7115_v18  ;;  %v7146_v18 = vld [vmem:[#allocation7 + $0x348] ss:$20 sps:$4 sm:$0xff]  }
  0xcc   :  { %5029 = vmatpush1.bf16.msra.mxu0 %v7110_v19  ;;  %v7149_v19 = vld [vmem:[#allocation7 + $0x350] ss:$20 sps:$4 sm:$0xff]  }
  0xcd   :  { %5039 = vmatprep.subr.bf16.mxu0 %v7118_v21  ;;  %v246_v21 = vrot.slane %v188_v61, %v213_v16 }
  0xce   :  { %5357 = vmatpush1.bf16.msra.mxu1 %v7113_v20  ;;  %v242_v20 = vrot.slane %v188_v61, %v8272_v15 }
  0xcf   :  { %5367 = vmatprep.subr.bf16.mxu1 %v7121_v22  ;;  %v7154_v22 = vld [vmem:[#allocation7 + $0x374] ss:$20 sps:$4 sm:$0xff]  }
 0x13e   :  { %v341_v30 = vpop.f32.mrb[0].mxu0 }
 0x13f   :  { %v342_v31 = vadd.f32 %v341_v30, %v194_v28  ;;  %v343_v32 = vpop.f32.mrb[1].mxu0  ;;  %v221_v30 = vsub.s32 7, %v8217_v24  ;;  %v7380_v24 = vld [vmem:[#allocation7 + $0x960] ss:$20 sps:$4 sm:$0xff]  }
 0x140   :  { %v344_v33 = vadd.f32 %v343_v32, %v198_v0  ;;  %v8236_v35 = vpop.f32.mrb[0].mxu1  ;;  %v250_v0 = vrot.slane %v188_v61, %v217_v17 }
 0x141   :  { %7916 = vtanh.f32 %v342_v31  ;;  %v414_v36 = vpop.f32.mrb[1].mxu1 }
 0x142   :  { %7918 = vtanh.f32 %v344_v33  ;;  %v415_v37 = vadd.f32 %v414_v36, %v206_v34  ;;  %v7152_v34 = vld [vmem:[#allocation7 + $0x370] ss:$20 sps:$4 sm:$0xff]   ;;  %v7155_v36 = vld [vmem:[#allocation7 + $0x378] ss:$20 sps:$4 sm:$0xff]  }
 0x144   :  { %7920 = vtanh.f32 %v415_v37  ;;  %v254_v37 = vrot.slane %v188_v61, %v221_v30  ;;  %v7173_v61 = vld [vmem:[#allocation7 + $0x3f0] ss:$20 sps:$4 sm:$0xff]  }
 0x14a   :  { %v8238_v43 = vpop.f32.mrb[2].mxu0 }
 0x14b   :  { %v7917_v38 = vpop.eup %7916  ;;  %v8240_v41 = vpop.f32.mrb[3].mxu0 }
 0x14c   :  { %v7919_v42 = vpop.eup %7918  ;;  %v8244_v45 = vpack.c.bf16 %v7917_v38, %v7917_v38  ;;  %v8246_v48 = vpop.f32.mrb[2].mxu1  ;;  %v7160_v38 = vld [vmem:[#allocation7 + $0x39c] ss:$20 sps:$4 sm:$0xff]  }
 0x14d   :  { %v8242_v44 = vpack.c.bf16 %v7919_v42, %v7919_v42  ;;  %v8250_v49 = vpop.f32.mrb[3].mxu1 }
 0x14e   :  { %v7921_v50 = vpop.eup %7920 }
 0x14f   :  { %5030 = vmatprep.mubr.bf16.mxu0 %v8242_v44  ;;  %5358 = vmatprep.mubr.bf16.mxu1 %v8242_v44  ;;  %v8254_v53 = vpack.c.bf16 %v7921_v50, %v7921_v50  ;;  %v7158_v50 = vld [vmem:[#allocation7 + $0x398] ss:$20 sps:$4 sm:$0xff]  }
 0x150   :  { %5031 = vmatmul.mubr.bf16.vlgmr.msra.gmra.mrb[8].mxu0 %v8244_v45  ;;  %5359 = vmatmul.mubr.bf16.vlgmr.msra.gmra.mrb[8].mxu1 %v8244_v45 }
 0x151   :  { %5040 = vmatpush1.bf16.msra.mxu0 %v7116_v39  ;;  %5368 = vmatpush1.bf16.msra.mxu1 %v7119_v40  ;;  %v7163_v39 = vld [vmem:[#allocation7 + $0x3a4] ss:$20 sps:$4 sm:$0xff]  }
 0x152   :  { %5041 = vmatprep.subr.bf16.mxu0 %v7124_v46  ;;  %5369 = vmatprep.subr.bf16.mxu1 %v7127_v47 }
 0x153   :  { %5071 = vmatprep.mubr.bf16.mxu0 %v8254_v53  ;;  %5399 = vmatprep.mubr.bf16.mxu1 %v8254_v53 }
 0x155   :  { %5042 = vmatpush1.bf16.msra.mxu0 %v7122_v51  ;;  %5370 = vmatpush1.bf16.msra.mxu1 %v7125_v52  ;;  %v7161_v51 = vld [vmem:[#allocation7 + $0x3a0] ss:$20 sps:$4 sm:$0xff]   ;;  %v7166_v52 = vld [vmem:[#allocation7 + $0x3c4] ss:$20 sps:$4 sm:$0xff]  }
 0x156   :  { %5043 = vmatprep.subr.bf16.mxu0 %v7130_v54  ;;  %5371 = vmatprep.subr.bf16.mxu1 %v7133_v55  ;;  %v8261_v62 = vpop.f32.mrb[4].mxu0  ;;  %v7169_v54 = vld [vmem:[#allocation7 + $0x3cc] ss:$20 sps:$4 sm:$0xff]  }
 0x157   :  { %v8263_v63 = vpop.f32.mrb[5].mxu0  ;;  %v7164_v55 = vld [vmem:[#allocation7 + $0x3c0] ss:$20 sps:$4 sm:$0xff]  }
 0x158   :  { %v696_v7 = vpop.f32.mrb[4].mxu1 }
 0x159   :  { %5044 = vmatpush1.bf16.msra.mxu0 %v7128_v56  ;;  %5372 = vmatpush1.bf16.msra.mxu1 %v7131_v57  ;;  %v8267_v8 = vadd.f32 %v696_v7, %v234_v1  ;;  %v698_v9 = vpop.f32.mrb[5].mxu1  ;;  %v7167_v56 = vld [vmem:[#allocation7 + $0x3c8] ss:$20 sps:$4 sm:$0xff]   ;;  %v7172_v57 = vld [vmem:[#allocation7 + $0x3ec] ss:$20 sps:$4 sm:$0xff]   ;;  %v202_v7 = vrot.slane %v8219_v25, %v8259_v59 }
 0x15a   :  { %5045 = vmatprep.subr.bf16.mxu0 %v7136_v58  ;;  %5373 = vmatprep.subr.bf16.mxu1 %v7139_v60  ;;  %v8269_v10 = vadd.f32 %v698_v9, %v238_v4  ;;  %v7175_v58 = vld [vmem:[#allocation7 + $0x3f4] ss:$20 sps:$4 sm:$0xff]   ;;  %v7179_v4 = vld [vmem:[#allocation7 + $0x418] ss:$20 sps:$4 sm:$0xff]  }
 0x15b   :  { %v7170_v60 = vld [vmem:[#allocation7 + $0x3e8] ss:$20 sps:$4 sm:$0xff]   ;;  %v7182_v9 = vld [vmem:[#allocation7 + $0x438] ss:$20 sps:$4 sm:$0xff]  }
 0x15c   :  { %v7178_v1 = vld [vmem:[#allocation7 + $0x414] ss:$20 sps:$4 sm:$0xff]  }
 0x15d   :  { %5046 = vmatpush1.bf16.msra.mxu0 %v7134_v2  ;;  %5374 = vmatpush1.bf16.msra.mxu1 %v7137_v3  ;;  %v7181_v2 = vld [vmem:[#allocation7 + $0x41c] ss:$20 sps:$4 sm:$0xff]  }
 0x15e   :  { %5047 = vmatprep.subr.bf16.mxu0 %v7142_v5  ;;  %5375 = vmatprep.subr.bf16.mxu1 %v7145_v6  ;;  %v7176_v3 = vld [vmem:[#allocation7 + $0x410] ss:$20 sps:$4 sm:$0xff]  }
 0x15f   :  { %v7184_v5 = vld [vmem:[#allocation7 + $0x43c] ss:$20 sps:$4 sm:$0xff]   ;;  %v7187_v6 = vld [vmem:[#allocation7 + $0x444] ss:$20 sps:$4 sm:$0xff]  }
 0x161   :  { %5048 = vmatpush1.bf16.msra.mxu0 %v7140_v11  ;;  %5376 = vmatpush1.bf16.msra.mxu1 %v7143_v12  ;;  %v7185_v11 = vld [vmem:[#allocation7 + $0x440] ss:$20 sps:$4 sm:$0xff]   ;;  %v7190_v12 = vld [vmem:[#allocation7 + $0x464] ss:$20 sps:$4 sm:$0xff]  }
 0x162   :  { %5049 = vmatprep.subr.bf16.mxu0 %v7148_v13  ;;  %5377 = vmatprep.subr.bf16.mxu1 %v7151_v14  ;;  %v767_v28 = vpop.f32.mrb[6].mxu0  ;;  %v7193_v13 = vld [vmem:[#allocation7 + $0x46c] ss:$20 sps:$4 sm:$0xff]   ;;  %v214_v14 = vrot.slane %v8219_v25, %v213_v16  ;;  %v7202_v25 = vld [vmem:[#allocation7 + $0x4b4] ss:$20 sps:$4 sm:$0xff]  }
 0x163   :  { %v8282_v31 = vadd.f32 %v767_v28, %v242_v20  ;;  %v769_v32 = vpop.f32.mrb[7].mxu0  ;;  %v7191_v20 = vld [vmem:[#allocation7 + $0x468] ss:$20 sps:$4 sm:$0xff]  }
 0x164   :  { %v8284_v33 = vadd.f32 %v769_v32, %v246_v21  ;;  %v838_v40 = vpop.f32.mrb[6].mxu1  ;;  %v7196_v21 = vld [vmem:[#allocation7 + $0x48c] ss:$20 sps:$4 sm:$0xff]   ;;  %v7194_v28 = vld [vmem:[#allocation7 + $0x488] ss:$20 sps:$4 sm:$0xff]  }
 0x165   :  { %5050 = vmatpush1.bf16.msra.mxu0 %v7146_v18  ;;  %5378 = vmatpush1.bf16.msra.mxu1 %v7149_v19  ;;  %v8288_v42 = vadd.f32 %v838_v40, %v250_v0  ;;  %v840_v46 = vpop.f32.mrb[7].mxu1  ;;  %v413_v18 = vadd.f32 %v8236_v35, %v202_v7  ;;  %v7188_v19 = vld [vmem:[#allocation7 + $0x460] ss:$20 sps:$4 sm:$0xff]   ;;  %v7197_v0 = vld [vmem:[#allocation7 + $0x490] ss:$20 sps:$4 sm:$0xff]  }
 0x166   :  { %5051 = vmatprep.subr.bf16.mxu0 %v7154_v22  ;;  %5379 = vmatprep.subr.bf16.mxu1 %v7157_v23  ;;  %v8290_v47 = vadd.f32 %v840_v46, %v254_v37  ;;  %v7199_v22 = vld [vmem:[#allocation7 + $0x494] ss:$20 sps:$4 sm:$0xff]   ;;  %v486_v23 = vadd.f32 %v8240_v41, %v214_v14  ;;  %v7205_v16 = vld [vmem:[#allocation7 + $0x4bc] ss:$20 sps:$4 sm:$0xff]   ;;  %v7203_v32 = vld [vmem:[#allocation7 + $0x4b8] ss:$20 sps:$4 sm:$0xff]  }
 0x167   :  { %7922 = vtanh.f32 %v413_v18  ;;  %v7200_v35 = vld [vmem:[#allocation7 + $0x4b0] ss:$20 sps:$4 sm:$0xff]   ;;  %v7206_v41 = vld [vmem:[#allocation7 + $0x4d8] ss:$20 sps:$4 sm:$0xff]   ;;  %v7212_v46 = vld [vmem:[#allocation7 + $0x500] ss:$20 sps:$4 sm:$0xff]  }
 0x168   :  { %7924 = vtanh.f32 %v486_v23  ;;  %v7217_v40 = vld [vmem:[#allocation7 + $0x50c] ss:$20 sps:$4 sm:$0xff]   ;;  %v7238_v7 = vld [vmem:[#allocation7 + $0x5a4] ss:$20 sps:$4 sm:$0xff]   ;;  %v7247_v14 = vld [vmem:[#allocation7 + $0x5d4] ss:$20 sps:$4 sm:$0xff]  }
 0x169   :  { %5052 = vmatpush1.bf16.msra.mxu0 %v7152_v34  ;;  %5380 = vmatpush1.bf16.msra.mxu1 %v7155_v36  ;;  %v7208_v34 = vld [vmem:[#allocation7 + $0x4dc] ss:$20 sps:$4 sm:$0xff]   ;;  %v7211_v36 = vld [vmem:[#allocation7 + $0x4e4] ss:$20 sps:$4 sm:$0xff]  }
 0x16a   :  { %5053 = vmatprep.subr.bf16.mxu0 %v7160_v38  ;;  %5381 = vmatprep.subr.bf16.mxu1 %v7163_v39  ;;  %v7209_v38 = vld [vmem:[#allocation7 + $0x4e0] ss:$20 sps:$4 sm:$0xff]   ;;  %v7214_v39 = vld [vmem:[#allocation7 + $0x504] ss:$20 sps:$4 sm:$0xff]   ;;  %v7242_v18 = vld [vmem:[#allocation7 + $0x5c8] ss:$20 sps:$4 sm:$0xff]  }
 0x16b   :  { %v7251_v23 = vld [vmem:[#allocation7 + $0x5f8] ss:$20 sps:$4 sm:$0xff]  }
 0x16d   :  { %5054 = vmatpush1.bf16.msra.mxu0 %v7158_v50  ;;  %5382 = vmatpush1.bf16.msra.mxu1 %v7161_v51  ;;  %v7215_v50 = vld [vmem:[#allocation7 + $0x508] ss:$20 sps:$4 sm:$0xff]  }
 0x16e   :  { %5055 = vmatprep.subr.bf16.mxu0 %v7166_v52  ;;  %5383 = vmatprep.subr.bf16.mxu1 %v7169_v54  ;;  %v7220_v54 = vld [vmem:[#allocation7 + $0x52c] ss:$20 sps:$4 sm:$0xff]  }
 0x171   :  { %5056 = vmatpush1.bf16.msra.mxu0 %v7164_v55  ;;  %5384 = vmatpush1.bf16.msra.mxu1 %v7167_v56  ;;  %v7923_v37 = vpop.eup %7922  ;;  %v7223_v55 = vld [vmem:[#allocation7 + $0x534] ss:$20 sps:$4 sm:$0xff]  }
 0x172   :  { %5057 = vmatprep.subr.bf16.mxu0 %v7172_v57  ;;  %5385 = vmatprep.subr.bf16.mxu1 %v7175_v58  ;;  %v7925_v51 = vpop.eup %7924  ;;  %v8299_v52 = vpack.c.bf16 %v7923_v37, %v7923_v37  ;;  %v7218_v56 = vld [vmem:[#allocation7 + $0x528] ss:$20 sps:$4 sm:$0xff]   ;;  %v7221_v57 = vld [vmem:[#allocation7 + $0x530] ss:$20 sps:$4 sm:$0xff]   ;;  %v7268_v37 = vld [vmem:[#allocation7 + $0x66c] ss:$20 sps:$4 sm:$0xff]  }
 0x173   :  { %v8301_v58 = vpack.c.bf16 %v7925_v51, %v7925_v51  ;;  %v7275_v51 = vld [vmem:[#allocation7 + $0x698] ss:$20 sps:$4 sm:$0xff]  }
 0x175   :  { %5058 = vmatpush1.bf16.msra.mxu0 %v7170_v60  ;;  %5386 = vmatpush1.bf16.msra.mxu1 %v7173_v61  ;;  %v7226_v60 = vld [vmem:[#allocation7 + $0x554] ss:$20 sps:$4 sm:$0xff]   ;;  %v7229_v61 = vld [vmem:[#allocation7 + $0x55c] ss:$20 sps:$4 sm:$0xff]  }
 0x176   :  { %5059 = vmatprep.subr.bf16.mxu0 %v7178_v1  ;;  %5387 = vmatprep.subr.bf16.mxu1 %v7181_v2  ;;  %v7224_v1 = vld [vmem:[#allocation7 + $0x550] ss:$20 sps:$4 sm:$0xff]   ;;  %v7227_v2 = vld [vmem:[#allocation7 + $0x558] ss:$20 sps:$4 sm:$0xff]  }
 0x179   :  { %5060 = vmatpush1.bf16.msra.mxu0 %v7176_v3  ;;  %5388 = vmatpush1.bf16.msra.mxu1 %v7179_v4  ;;  %v7232_v3 = vld [vmem:[#allocation7 + $0x57c] ss:$20 sps:$4 sm:$0xff]   ;;  %v7235_v4 = vld [vmem:[#allocation7 + $0x584] ss:$20 sps:$4 sm:$0xff]  }
 0x17a   :  { %5061 = vmatprep.subr.bf16.mxu0 %v7184_v5  ;;  %5389 = vmatprep.subr.bf16.mxu1 %v7187_v6  ;;  %v7230_v5 = vld [vmem:[#allocation7 + $0x578] ss:$20 sps:$4 sm:$0xff]   ;;  %v7233_v6 = vld [vmem:[#allocation7 + $0x580] ss:$20 sps:$4 sm:$0xff]  }
 0x17d   :  { %5062 = vmatpush1.bf16.msra.mxu0 %v7182_v9  ;;  %5390 = vmatpush1.bf16.msra.mxu1 %v7185_v11  ;;  %v7241_v9 = vld [vmem:[#allocation7 + $0x5ac] ss:$20 sps:$4 sm:$0xff]  }
 0x17e   :  { %5063 = vmatprep.subr.bf16.mxu0 %v7190_v12  ;;  %5391 = vmatprep.subr.bf16.mxu1 %v7193_v13  ;;  %v7236_v11 = vld [vmem:[#allocation7 + $0x5a0] ss:$20 sps:$4 sm:$0xff]   ;;  %v7239_v12 = vld [vmem:[#allocation7 + $0x5a8] ss:$20 sps:$4 sm:$0xff]  }
 0x17f   :  { %v7244_v13 = vld [vmem:[#allocation7 + $0x5cc] ss:$20 sps:$4 sm:$0xff]  }
 0x181   :  { %5064 = vmatpush1.bf16.msra.mxu0 %v7188_v19  ;;  %5392 = vmatpush1.bf16.msra.mxu1 %v7191_v20  ;;  %v7245_v19 = vld [vmem:[#allocation7 + $0x5d0] ss:$20 sps:$4 sm:$0xff]   ;;  %v7250_v20 = vld [vmem:[#allocation7 + $0x5f4] ss:$20 sps:$4 sm:$0xff]  }
 0x182   :  { %5065 = vmatprep.subr.bf16.mxu0 %v7196_v21  ;;  %5393 = vmatprep.subr.bf16.mxu1 %v7199_v22  ;;  %v7253_v21 = vld [vmem:[#allocation7 + $0x5fc] ss:$20 sps:$4 sm:$0xff]  }
 0x183   :  { %v7248_v22 = vld [vmem:[#allocation7 + $0x5f0] ss:$20 sps:$4 sm:$0xff]  }
 0x185   :  { %5066 = vmatpush1.bf16.msra.mxu0 %v7194_v28  ;;  %5394 = vmatpush1.bf16.msra.mxu1 %v7197_v0  ;;  %v7256_v28 = vld [vmem:[#allocation7 + $0x61c] ss:$20 sps:$4 sm:$0xff]   ;;  %v7259_v0 = vld [vmem:[#allocation7 + $0x624] ss:$20 sps:$4 sm:$0xff]  }
 0x186   :  { %5067 = vmatprep.subr.bf16.mxu0 %v7202_v25  ;;  %5395 = vmatprep.subr.bf16.mxu1 %v7205_v16  ;;  %v7254_v25 = vld [vmem:[#allocation7 + $0x618] ss:$20 sps:$4 sm:$0xff]   ;;  %v7257_v16 = vld [vmem:[#allocation7 + $0x620] ss:$20 sps:$4 sm:$0xff]  }
 0x189   :  { %5068 = vmatpush1.bf16.msra.mxu0 %v7200_v35  ;;  %5396 = vmatpush1.bf16.msra.mxu1 %v7203_v32  ;;  %v7262_v35 = vld [vmem:[#allocation7 + $0x644] ss:$20 sps:$4 sm:$0xff]   ;;  %v7265_v32 = vld [vmem:[#allocation7 + $0x64c] ss:$20 sps:$4 sm:$0xff]  }
 0x18a   :  { %5069 = vmatprep.subr.bf16.mxu0 %v7208_v34  ;;  %5397 = vmatprep.subr.bf16.mxu1 %v7211_v36  ;;  %v7260_v34 = vld [vmem:[#allocation7 + $0x640] ss:$20 sps:$4 sm:$0xff]   ;;  %v7263_v36 = vld [vmem:[#allocation7 + $0x648] ss:$20 sps:$4 sm:$0xff]  }
 0x18d   :  { %5070 = vmatpush1.bf16.msra.mxu0 %v7206_v41  ;;  %5398 = vmatpush1.bf16.msra.mxu1 %v7209_v38  ;;  %v7271_v41 = vld [vmem:[#allocation7 + $0x674] ss:$20 sps:$4 sm:$0xff]  }
 0x18e   :  { %5080 = vmatprep.subr.bf16.mxu0 %v7214_v39  ;;  %5408 = vmatprep.subr.bf16.mxu1 %v7217_v40  ;;  %v7266_v38 = vld [vmem:[#allocation7 + $0x668] ss:$20 sps:$4 sm:$0xff]   ;;  %v7269_v39 = vld [vmem:[#allocation7 + $0x670] ss:$20 sps:$4 sm:$0xff]  }
 0x18f   :  { %v7274_v40 = vld [vmem:[#allocation7 + $0x694] ss:$20 sps:$4 sm:$0xff]  }
 0x190   :  { %5072 = vmatmul.mubr.bf16.vlgmr.msra.gmra.mrb[8].mxu0 %v8299_v52  ;;  %5400 = vmatmul.mubr.bf16.vlgmr.msra.gmra.mrb[8].mxu1 %v8299_v52 }
 0x191   :  { %5081 = vmatpush1.bf16.msra.mxu0 %v7212_v46  ;;  %5409 = vmatpush1.bf16.msra.mxu1 %v7215_v50  ;;  %v7277_v46 = vld [vmem:[#allocation7 + $0x69c] ss:$20 sps:$4 sm:$0xff]  }
 0x192   :  { %5082 = vmatprep.subr.bf16.mxu0 %v7220_v54  ;;  %5410 = vmatprep.subr.bf16.mxu1 %v7223_v55  ;;  %v7272_v50 = vld [vmem:[#allocation7 + $0x690] ss:$20 sps:$4 sm:$0xff]  }
 0x193   :  { %5112 = vmatprep.mubr.bf16.mxu0 %v8301_v58  ;;  %5440 = vmatprep.mubr.bf16.mxu1 %v8301_v58  ;;  %v7280_v54 = vld [vmem:[#allocation7 + $0x6bc] ss:$20 sps:$4 sm:$0xff]   ;;  %v7283_v55 = vld [vmem:[#allocation7 + $0x6c4] ss:$20 sps:$4 sm:$0xff]  }
 0x195   :  { %5083 = vmatpush1.bf16.msra.mxu0 %v7218_v56  ;;  %5411 = vmatpush1.bf16.msra.mxu1 %v7221_v57  ;;  %v7278_v56 = vld [vmem:[#allocation7 + $0x6b8] ss:$20 sps:$4 sm:$0xff]   ;;  %v7281_v57 = vld [vmem:[#allocation7 + $0x6c0] ss:$20 sps:$4 sm:$0xff]  }
 0x196   :  { %5084 = vmatprep.subr.bf16.mxu0 %v7226_v60  ;;  %5412 = vmatprep.subr.bf16.mxu1 %v7229_v61  ;;  %v8307_v60 = vld [vmem:[#allocation5] sm:$0xff] }
 0x197   :  { %v210_v61 = vrot.slane %v8307_v60, %v8272_v15 }
 0x199   :  { %5085 = vmatpush1.bf16.msra.mxu0 %v7224_v1  ;;  %5413 = vmatpush1.bf16.msra.mxu1 %v7227_v2  ;;  %v7286_v1 = vld [vmem:[#allocation7 + $0x6e4] ss:$20 sps:$4 sm:$0xff]   ;;  %v7289_v2 = vld [vmem:[#allocation7 + $0x6ec] ss:$20 sps:$4 sm:$0xff]  }
 0x19a   :  { %5086 = vmatprep.subr.bf16.mxu0 %v7232_v3  ;;  %5414 = vmatprep.subr.bf16.mxu1 %v7235_v4  ;;  %v222_v3 = vrot.slane %v8307_v60, %v221_v30  ;;  %v484_v4 = vadd.f32 %v8238_v43, %v210_v61  ;;  %v7298_v30 = vld [vmem:[#allocation7 + $0x734] ss:$20 sps:$4 sm:$0xff]   ;;  %v7296_v43 = vld [vmem:[#allocation7 + $0x730] ss:$20 sps:$4 sm:$0xff]  }
 0x19b   :  { %v7332_v61 = vld [vmem:[#allocation7 + $0x820] ss:$20 sps:$4 sm:$0xff]  }
 0x19c   :  { %7926 = vtanh.f32 %v484_v4  ;;  %v7338_v4 = vld [vmem:[#allocation7 + $0x848] ss:$20 sps:$4 sm:$0xff]  }
 0x19d   :  { %5087 = vmatpush1.bf16.msra.mxu0 %v7230_v5  ;;  %5415 = vmatpush1.bf16.msra.mxu1 %v7233_v6  ;;  %v7284_v5 = vld [vmem:[#allocation7 + $0x6e0] ss:$20 sps:$4 sm:$0xff]   ;;  %v7287_v6 = vld [vmem:[#allocation7 + $0x6e8] ss:$20 sps:$4 sm:$0xff]  }
 0x19e   :  { %5088 = vmatprep.subr.bf16.mxu0 %v7238_v7  ;;  %5416 = vmatprep.subr.bf16.mxu1 %v7241_v9  ;;  %v7292_v7 = vld [vmem:[#allocation7 + $0x70c] ss:$20 sps:$4 sm:$0xff]   ;;  %v7295_v9 = vld [vmem:[#allocation7 + $0x714] ss:$20 sps:$4 sm:$0xff]  }
 0x1a1   :  { %5089 = vmatpush1.bf16.msra.mxu0 %v7236_v11  ;;  %5417 = vmatpush1.bf16.msra.mxu1 %v7239_v12  ;;  %v557_v11 = vadd.f32 %v8250_v49, %v222_v3  ;;  %v7290_v12 = vld [vmem:[#allocation7 + $0x708] ss:$20 sps:$4 sm:$0xff]   ;;  %v7305_v49 = vld [vmem:[#allocation7 + $0x760] ss:$20 sps:$4 sm:$0xff]  }
 0x1a2   :  { %5090 = vmatprep.subr.bf16.mxu0 %v7244_v13  ;;  %5418 = vmatprep.subr.bf16.mxu1 %v7247_v14  ;;  %v7293_v13 = vld [vmem:[#allocation7 + $0x710] ss:$20 sps:$4 sm:$0xff]   ;;  %v7343_v3 = vld [vmem:[#allocation7 + $0x854] ss:$20 sps:$4 sm:$0xff]  }
 0x1a3   :  { %v7301_v14 = vld [vmem:[#allocation7 + $0x73c] ss:$20 sps:$4 sm:$0xff]   ;;  %7928 = vtanh.f32 %v557_v11  ;;  %v7347_v11 = vld [vmem:[#allocation7 + $0x878] ss:$20 sps:$4 sm:$0xff]  }
 0x1a5   :  { %5091 = vmatpush1.bf16.msra.mxu0 %v7242_v18  ;;  %5419 = vmatpush1.bf16.msra.mxu1 %v7245_v19  ;;  %v7299_v18 = vld [vmem:[#allocation7 + $0x738] ss:$20 sps:$4 sm:$0xff]   ;;  %v7304_v19 = vld [vmem:[#allocation7 + $0x75c] ss:$20 sps:$4 sm:$0xff]  }
 0x1a6   :  { %5092 = vmatprep.subr.bf16.mxu0 %v7250_v20  ;;  %5420 = vmatprep.subr.bf16.mxu1 %v7253_v21  ;;  %v7307_v20 = vld [vmem:[#allocation7 + $0x764] ss:$20 sps:$4 sm:$0xff]  }
 0x1a7   :  { %v7302_v21 = vld [vmem:[#allocation7 + $0x758] ss:$20 sps:$4 sm:$0xff]  }
 0x1a9   :  { %5093 = vmatpush1.bf16.msra.mxu0 %v7248_v22  ;;  %5421 = vmatpush1.bf16.msra.mxu1 %v7251_v23  ;;  %v7927_v22 = vpop.eup %7926  ;;  %v7310_v23 = vld [vmem:[#allocation7 + $0x784] ss:$20 sps:$4 sm:$0xff]  }
 0x1aa   :  { %5094 = vmatprep.subr.bf16.mxu0 %v7256_v28  ;;  %5422 = vmatprep.subr.bf16.mxu1 %v7259_v0  ;;  %v7313_v28 = vld [vmem:[#allocation7 + $0x78c] ss:$20 sps:$4 sm:$0xff]  }
 0x1ab   :  { %v7308_v0 = vld [vmem:[#allocation7 + $0x780] ss:$20 sps:$4 sm:$0xff]  }
 0x1ad   :  { %5095 = vmatpush1.bf16.msra.mxu0 %v7254_v25  ;;  %5423 = vmatpush1.bf16.msra.mxu1 %v7257_v16  ;;  %v7311_v25 = vld [vmem:[#allocation7 + $0x788] ss:$20 sps:$4 sm:$0xff]   ;;  %v7929_v16 = vpop.eup %7928 }
 0x1ae   :  { %5096 = vmatprep.subr.bf16.mxu0 %v7262_v35  ;;  %5424 = vmatprep.subr.bf16.mxu1 %v7265_v32  ;;  %v8316_v35 = vpack.c.bf16 %v7927_v22, %v7927_v22  ;;  %v7316_v32 = vld [vmem:[#allocation7 + $0x7ac] ss:$20 sps:$4 sm:$0xff]   ;;  %v7362_v22 = vld [vmem:[#allocation7 + $0x8e8] ss:$20 sps:$4 sm:$0xff]  }
 0x1b1   :  { %5097 = vmatpush1.bf16.msra.mxu0 %v7260_v34  ;;  %5425 = vmatpush1.bf16.msra.mxu1 %v7263_v36  ;;  %v7319_v34 = vld [vmem:[#allocation7 + $0x7b4] ss:$20 sps:$4 sm:$0xff]   ;;  %v8318_v36 = vpack.c.bf16 %v7929_v16, %v7929_v16  ;;  %v7371_v16 = vld [vmem:[#allocation7 + $0x918] ss:$20 sps:$4 sm:$0xff]  }
 0x1b2   :  { %5098 = vmatprep.subr.bf16.mxu0 %v7268_v37  ;;  %5426 = vmatprep.subr.bf16.mxu1 %v7271_v41  ;;  %v7314_v37 = vld [vmem:[#allocation7 + $0x7a8] ss:$20 sps:$4 sm:$0xff]   ;;  %v7317_v41 = vld [vmem:[#allocation7 + $0x7b0] ss:$20 sps:$4 sm:$0xff]  }
 0x1b5   :  { %5099 = vmatpush1.bf16.msra.mxu0 %v7266_v38  ;;  %5427 = vmatpush1.bf16.msra.mxu1 %v7269_v39  ;;  %v7322_v38 = vld [vmem:[#allocation7 + $0x7d4] ss:$20 sps:$4 sm:$0xff]   ;;  %v7325_v39 = vld [vmem:[#allocation7 + $0x7dc] ss:$20 sps:$4 sm:$0xff]  }
 0x1b6   :  { %5100 = vmatprep.subr.bf16.mxu0 %v7274_v40  ;;  %5428 = vmatprep.subr.bf16.mxu1 %v7277_v46  ;;  %v7320_v40 = vld [vmem:[#allocation7 + $0x7d0] ss:$20 sps:$4 sm:$0xff]   ;;  %v7323_v46 = vld [vmem:[#allocation7 + $0x7d8] ss:$20 sps:$4 sm:$0xff]  }
 0x1b9   :  { %5101 = vmatpush1.bf16.msra.mxu0 %v7272_v50  ;;  %5429 = vmatpush1.bf16.msra.mxu1 %v7275_v51  ;;  %v7328_v50 = vld [vmem:[#allocation7 + $0x7fc] ss:$20 sps:$4 sm:$0xff]   ;;  %v7331_v51 = vld [vmem:[#allocation7 + $0x804] ss:$20 sps:$4 sm:$0xff]  }
 0x1ba   :  { %5102 = vmatprep.subr.bf16.mxu0 %v7280_v54  ;;  %5430 = vmatprep.subr.bf16.mxu1 %v7283_v55  ;;  %v7326_v54 = vld [vmem:[#allocation7 + $0x7f8] ss:$20 sps:$4 sm:$0xff]   ;;  %v7329_v55 = vld [vmem:[#allocation7 + $0x800] ss:$20 sps:$4 sm:$0xff]  }
 0x1bd   :  { %5103 = vmatpush1.bf16.msra.mxu0 %v7278_v56  ;;  %5431 = vmatpush1.bf16.msra.mxu1 %v7281_v57  ;;  %v7334_v56 = vld [vmem:[#allocation7 + $0x824] ss:$20 sps:$4 sm:$0xff]   ;;  %v7337_v57 = vld [vmem:[#allocation7 + $0x82c] ss:$20 sps:$4 sm:$0xff]  }
 0x1be   :  { %5104 = vmatprep.subr.bf16.mxu0 %v7286_v1  ;;  %5432 = vmatprep.subr.bf16.mxu1 %v7289_v2  ;;  %v7335_v1 = vld [vmem:[#allocation7 + $0x828] ss:$20 sps:$4 sm:$0xff]   ;;  %v7340_v2 = vld [vmem:[#allocation7 + $0x84c] ss:$20 sps:$4 sm:$0xff]  }
 0x1c1   :  { %5105 = vmatpush1.bf16.msra.mxu0 %v7284_v5  ;;  %5433 = vmatpush1.bf16.msra.mxu1 %v7287_v6  ;;  %v7341_v5 = vld [vmem:[#allocation7 + $0x850] ss:$20 sps:$4 sm:$0xff]   ;;  %v7346_v6 = vld [vmem:[#allocation7 + $0x874] ss:$20 sps:$4 sm:$0xff]  }
 0x1c2   :  { %5106 = vmatprep.subr.bf16.mxu0 %v7292_v7  ;;  %5434 = vmatprep.subr.bf16.mxu1 %v7295_v9  ;;  %v7349_v7 = vld [vmem:[#allocation7 + $0x87c] ss:$20 sps:$4 sm:$0xff]  }
 0x1c3   :  { %v7344_v9 = vld [vmem:[#allocation7 + $0x870] ss:$20 sps:$4 sm:$0xff]  }
 0x1c5   :  { %5107 = vmatpush1.bf16.msra.mxu0 %v7290_v12  ;;  %5435 = vmatpush1.bf16.msra.mxu1 %v7293_v13  ;;  %v7352_v12 = vld [vmem:[#allocation7 + $0x89c] ss:$20 sps:$4 sm:$0xff]   ;;  %v7355_v13 = vld [vmem:[#allocation7 + $0x8a4] ss:$20 sps:$4 sm:$0xff]  }
 0x1c6   :  { %5108 = vmatprep.subr.bf16.mxu0 %v7298_v30  ;;  %5436 = vmatprep.subr.bf16.mxu1 %v7301_v14  ;;  %v7350_v30 = vld [vmem:[#allocation7 + $0x898] ss:$20 sps:$4 sm:$0xff]   ;;  %v7353_v14 = vld [vmem:[#allocation7 + $0x8a0] ss:$20 sps:$4 sm:$0xff]  }
 0x1c9   :  { %5109 = vmatpush1.bf16.msra.mxu0 %v7296_v43  ;;  %5437 = vmatpush1.bf16.msra.mxu1 %v7299_v18  ;;  %v7358_v43 = vld [vmem:[#allocation7 + $0x8c4] ss:$20 sps:$4 sm:$0xff]   ;;  %v7361_v18 = vld [vmem:[#allocation7 + $0x8cc] ss:$20 sps:$4 sm:$0xff]  }
 0x1ca   :  { %5110 = vmatprep.subr.bf16.mxu0 %v7304_v19  ;;  %5438 = vmatprep.subr.bf16.mxu1 %v7307_v20  ;;  %v7356_v19 = vld [vmem:[#allocation7 + $0x8c0] ss:$20 sps:$4 sm:$0xff]   ;;  %v7359_v20 = vld [vmem:[#allocation7 + $0x8c8] ss:$20 sps:$4 sm:$0xff]  }
 0x1cd   :  { %5111 = vmatpush1.bf16.msra.mxu0 %v7302_v21  ;;  %5439 = vmatpush1.bf16.msra.mxu1 %v7305_v49  ;;  %v7364_v21 = vld [vmem:[#allocation7 + $0x8ec] ss:$20 sps:$4 sm:$0xff]   ;;  %v7367_v49 = vld [vmem:[#allocation7 + $0x8f4] ss:$20 sps:$4 sm:$0xff]  }
 0x1ce   :  { %5121 = vmatprep.subr.bf16.mxu0 %v7310_v23  ;;  %5449 = vmatprep.subr.bf16.mxu1 %v7313_v28  ;;  %v7365_v23 = vld [vmem:[#allocation7 + $0x8f0] ss:$20 sps:$4 sm:$0xff]   ;;  %v7370_v28 = vld [vmem:[#allocation7 + $0x914] ss:$20 sps:$4 sm:$0xff]  }
 0x1d0   :  { %5113 = vmatmul.mubr.bf16.vlgmr.msra.gmra.mrb[8].mxu0 %v8316_v35  ;;  %5441 = vmatmul.mubr.bf16.vlgmr.msra.gmra.mrb[8].mxu1 %v8316_v35 }
 0x1d1   :  { %5122 = vmatpush1.bf16.msra.mxu0 %v7308_v0  ;;  %5450 = vmatpush1.bf16.msra.mxu1 %v7311_v25  ;;  %v7373_v0 = vld [vmem:[#allocation7 + $0x91c] ss:$20 sps:$4 sm:$0xff]  }
 0x1d2   :  { %5123 = vmatprep.subr.bf16.mxu0 %v7316_v32  ;;  %5451 = vmatprep.subr.bf16.mxu1 %v7319_v34  ;;  %v7368_v25 = vld [vmem:[#allocation7 + $0x910] ss:$20 sps:$4 sm:$0xff]  }
 0x1d3   :  { %5153 = vmatprep.mubr.bf16.mxu0 %v8318_v36  ;;  %5481 = vmatprep.mubr.bf16.mxu1 %v8318_v36  ;;  %v7376_v32 = vld [vmem:[#allocation7 + $0x93c] ss:$20 sps:$4 sm:$0xff]   ;;  %v7379_v34 = vld [vmem:[#allocation7 + $0x944] ss:$20 sps:$4 sm:$0xff]  }
 0x1d5   :  { %5124 = vmatpush1.bf16.msra.mxu0 %v7314_v37  ;;  %5452 = vmatpush1.bf16.msra.mxu1 %v7317_v41  ;;  %v218_v37 = vrot.slane %v8307_v60, %v217_v17  ;;  %v7374_v41 = vld [vmem:[#allocation7 + $0x938] ss:$20 sps:$4 sm:$0xff]  }
 0x1d6   :  { %5125 = vmatprep.subr.bf16.mxu0 %v7322_v38  ;;  %5453 = vmatprep.subr.bf16.mxu1 %v7325_v39  ;;  %v7377_v38 = vld [vmem:[#allocation7 + $0x940] ss:$20 sps:$4 sm:$0xff]   ;;  %v8327_v39 = vld [vmem:[#allocation5 + $0x8] sm:$0xff] }
 0x1d7   :  { %v7388_v60 = vld [vmem:[#allocation7 + $0x98c] ss:$20 sps:$4 sm:$0xff]  }
 0x1d9   :  { %5126 = vmatpush1.bf16.msra.mxu0 %v7320_v40  ;;  %5454 = vmatpush1.bf16.msra.mxu1 %v7323_v46  ;;  %v230_v40 = vrot.slane %v8327_v39, %v8225_v27  ;;  %v7382_v46 = vld [vmem:[#allocation7 + $0x964] ss:$20 sps:$4 sm:$0xff]  }
 0x1da   :  { %5127 = vmatprep.subr.bf16.mxu0 %v7328_v50  ;;  %5455 = vmatprep.subr.bf16.mxu1 %v7331_v51  ;;  %v7385_v50 = vld [vmem:[#allocation7 + $0x96c] ss:$20 sps:$4 sm:$0xff]   ;;  %v555_v51 = vadd.f32 %v8246_v48, %v218_v37  ;;  %v7397_v48 = vld [vmem:[#allocation7 + $0x9bc] ss:$20 sps:$4 sm:$0xff]  }
 0x1db   :  { %v628_v17 = vadd.f32 %v8263_v63, %v230_v40  ;;  %v7400_v63 = vld [vmem:[#allocation7 + $0x9dc] ss:$20 sps:$4 sm:$0xff]   ;;  %v7428_v37 = vld [vmem:[#allocation7 + $0xaa0] ss:$20 sps:$4 sm:$0xff]  }
 0x1dc   :  { %7930 = vtanh.f32 %v555_v51  ;;  %v7439_v40 = vld [vmem:[#allocation7 + $0xad4] ss:$20 sps:$4 sm:$0xff]  }
 0x1dd   :  { %5128 = vmatpush1.bf16.msra.mxu0 %v7326_v54  ;;  %5456 = vmatpush1.bf16.msra.mxu1 %v7329_v55  ;;  %v7383_v54 = vld [vmem:[#allocation7 + $0x968] ss:$20 sps:$4 sm:$0xff]   ;;  %7932 = vtanh.f32 %v628_v17  ;;  %v7443_v17 = vld [vmem:[#allocation7 + $0xaf8] ss:$20 sps:$4 sm:$0xff]  }
 0x1de   :  { %5129 = vmatprep.subr.bf16.mxu0 %v7334_v56  ;;  %5457 = vmatprep.subr.bf16.mxu1 %v7337_v57  ;;  %v7391_v55 = vld [vmem:[#allocation7 + $0x994] ss:$20 sps:$4 sm:$0xff]   ;;  %v7389_v57 = vld [vmem:[#allocation7 + $0x990] ss:$20 sps:$4 sm:$0xff]  }
 0x1df   :  { %v7386_v56 = vld [vmem:[#allocation7 + $0x988] ss:$20 sps:$4 sm:$0xff]  }
 0x1e0   :  { %v7442_v51 = vld [vmem:[#allocation7 + $0xaf4] ss:$20 sps:$4 sm:$0xff]  }
 0x1e1   :  { %5130 = vmatpush1.bf16.msra.mxu0 %v7332_v61  ;;  %5458 = vmatpush1.bf16.msra.mxu1 %v7335_v1  ;;  %v7394_v61 = vld [vmem:[#allocation7 + $0x9b4] ss:$20 sps:$4 sm:$0xff]   ;;  %v7392_v1 = vld [vmem:[#allocation7 + $0x9b0] ss:$20 sps:$4 sm:$0xff]  }
 0x1e2   :  { %5131 = vmatprep.subr.bf16.mxu0 %v7340_v2  ;;  %5459 = vmatprep.subr.bf16.mxu1 %v7343_v3  ;;  %v7395_v2 = vld [vmem:[#allocation7 + $0x9b8] ss:$20 sps:$4 sm:$0xff]  }
 0x1e3   :  { %v7403_v3 = vld [vmem:[#allocation7 + $0x9e4] ss:$20 sps:$4 sm:$0xff]  }
 0x1e5   :  { %5132 = vmatpush1.bf16.msra.mxu0 %v7338_v4  ;;  %5460 = vmatpush1.bf16.msra.mxu1 %v7341_v5  ;;  %v7398_v4 = vld [vmem:[#allocation7 + $0x9d8] ss:$20 sps:$4 sm:$0xff]   ;;  %v7401_v5 = vld [vmem:[#allocation7 + $0x9e0] ss:$20 sps:$4 sm:$0xff]  }
 0x1e6   :  { %5133 = vmatprep.subr.bf16.mxu0 %v7346_v6  ;;  %5461 = vmatprep.subr.bf16.mxu1 %v7349_v7  ;;  %v7406_v6 = vld [vmem:[#allocation7 + $0xa04] ss:$20 sps:$4 sm:$0xff]   ;;  %v7409_v7 = vld [vmem:[#allocation7 + $0xa0c] ss:$20 sps:$4 sm:$0xff]  }
 0x1e9   :  { %5134 = vmatpush1.bf16.msra.mxu0 %v7344_v9  ;;  %5462 = vmatpush1.bf16.msra.mxu1 %v7347_v11  ;;  %v7931_v9 = vpop.eup %7930 }
 0x1ea   :  { %5135 = vmatprep.subr.bf16.mxu0 %v7352_v12  ;;  %5463 = vmatprep.subr.bf16.mxu1 %v7355_v13  ;;  %v7933_v11 = vpop.eup %7932  ;;  %v7404_v12 = vld [vmem:[#allocation7 + $0xa00] ss:$20 sps:$4 sm:$0xff]   ;;  %v8333_v13 = vpack.c.bf16 %v7931_v9, %v7931_v9  ;;  %v7464_v9 = vld [vmem:[#allocation7 + $0xb90] ss:$20 sps:$4 sm:$0xff]  }
 0x1ed   :  { %5136 = vmatpush1.bf16.msra.mxu0 %v7350_v30  ;;  %5464 = vmatpush1.bf16.msra.mxu1 %v7353_v14  ;;  %v7407_v30 = vld [vmem:[#allocation7 + $0xa08] ss:$20 sps:$4 sm:$0xff]   ;;  %v8335_v14 = vpack.c.bf16 %v7933_v11, %v7933_v11  ;;  %v7467_v11 = vld [vmem:[#allocation7 + $0xb98] ss:$20 sps:$4 sm:$0xff]  }
 0x1ee   :  { %5137 = vmatprep.subr.bf16.mxu0 %v7358_v43  ;;  %5465 = vmatprep.subr.bf16.mxu1 %v7361_v18  ;;  %v7412_v43 = vld [vmem:[#allocation7 + $0xa2c] ss:$20 sps:$4 sm:$0xff]   ;;  %v7415_v18 = vld [vmem:[#allocation7 + $0xa34] ss:$20 sps:$4 sm:$0xff]  }
 0x1f1   :  { %5138 = vmatpush1.bf16.msra.mxu0 %v7356_v19  ;;  %5466 = vmatpush1.bf16.msra.mxu1 %v7359_v20  ;;  %v7410_v19 = vld [vmem:[#allocation7 + $0xa28] ss:$20 sps:$4 sm:$0xff]   ;;  %v7413_v20 = vld [vmem:[#allocation7 + $0xa30] ss:$20 sps:$4 sm:$0xff]  }
 0x1f2   :  { %5139 = vmatprep.subr.bf16.mxu0 %v7364_v21  ;;  %5467 = vmatprep.subr.bf16.mxu1 %v7367_v49  ;;  %v7418_v21 = vld [vmem:[#allocation7 + $0xa54] ss:$20 sps:$4 sm:$0xff]   ;;  %v7421_v49 = vld [vmem:[#allocation7 + $0xa5c] ss:$20 sps:$4 sm:$0xff]  }
 0x1f5   :  { %5140 = vmatpush1.bf16.msra.mxu0 %v7362_v22  ;;  %5468 = vmatpush1.bf16.msra.mxu1 %v7365_v23  ;;  %v7416_v22 = vld [vmem:[#allocation7 + $0xa50] ss:$20 sps:$4 sm:$0xff]   ;;  %v7419_v23 = vld [vmem:[#allocation7 + $0xa58] ss:$20 sps:$4 sm:$0xff]  }
 0x1f6   :  { %5141 = vmatprep.subr.bf16.mxu0 %v7370_v28  ;;  %5469 = vmatprep.subr.bf16.mxu1 %v7373_v0  ;;  %v7424_v28 = vld [vmem:[#allocation7 + $0xa7c] ss:$20 sps:$4 sm:$0xff]   ;;  %v7427_v0 = vld [vmem:[#allocation7 + $0xa84] ss:$20 sps:$4 sm:$0xff]  }
 0x1f9   :  { %5142 = vmatpush1.bf16.msra.mxu0 %v7368_v25  ;;  %5470 = vmatpush1.bf16.msra.mxu1 %v7371_v16  ;;  %v7422_v25 = vld [vmem:[#allocation7 + $0xa78] ss:$20 sps:$4 sm:$0xff]   ;;  %v7425_v16 = vld [vmem:[#allocation7 + $0xa80] ss:$20 sps:$4 sm:$0xff]  }
 0x1fa   :  { %5143 = vmatprep.subr.bf16.mxu0 %v7376_v32  ;;  %5471 = vmatprep.subr.bf16.mxu1 %v7379_v34  ;;  %v7430_v32 = vld [vmem:[#allocation7 + $0xaa4] ss:$20 sps:$4 sm:$0xff]   ;;  %v7433_v34 = vld [vmem:[#allocation7 + $0xaac] ss:$20 sps:$4 sm:$0xff]  }
 0x1fd   :  { %5144 = vmatpush1.bf16.msra.mxu0 %v7374_v41  ;;  %5472 = vmatpush1.bf16.msra.mxu1 %v7377_v38  ;;  %v7431_v41 = vld [vmem:[#allocation7 + $0xaa8] ss:$20 sps:$4 sm:$0xff]   ;;  %v7436_v38 = vld [vmem:[#allocation7 + $0xacc] ss:$20 sps:$4 sm:$0xff]  }
 0x1fe   :  { %5145 = vmatprep.subr.bf16.mxu0 %v7382_v46  ;;  %5473 = vmatprep.subr.bf16.mxu1 %v7385_v50  ;;  %v7434_v46 = vld [vmem:[#allocation7 + $0xac8] ss:$20 sps:$4 sm:$0xff]   ;;  %v7437_v50 = vld [vmem:[#allocation7 + $0xad0] ss:$20 sps:$4 sm:$0xff]  }
 0x201   :  { %5146 = vmatpush1.bf16.msra.mxu0 %v7380_v24  ;;  %5474 = vmatpush1.bf16.msra.mxu1 %v7383_v54  ;;  %v7445_v24 = vld [vmem:[#allocation7 + $0xafc] ss:$20 sps:$4 sm:$0xff]  }
 0x202   :  { %5147 = vmatprep.subr.bf16.mxu0 %v7388_v60  ;;  %5475 = vmatprep.subr.bf16.mxu1 %v7391_v55  ;;  %v7440_v54 = vld [vmem:[#allocation7 + $0xaf0] ss:$20 sps:$4 sm:$0xff]  }
 0x203   :  { %v7448_v60 = vld [vmem:[#allocation7 + $0xb1c] ss:$20 sps:$4 sm:$0xff]   ;;  %v7451_v55 = vld [vmem:[#allocation7 + $0xb24] ss:$20 sps:$4 sm:$0xff]  }
 0x205   :  { %5148 = vmatpush1.bf16.msra.mxu0 %v7386_v56  ;;  %5476 = vmatpush1.bf16.msra.mxu1 %v7389_v57  ;;  %v7446_v56 = vld [vmem:[#allocation7 + $0xb18] ss:$20 sps:$4 sm:$0xff]   ;;  %v7449_v57 = vld [vmem:[#allocation7 + $0xb20] ss:$20 sps:$4 sm:$0xff]  }
 0x206   :  { %5149 = vmatprep.subr.bf16.mxu0 %v7394_v61  ;;  %5477 = vmatprep.subr.bf16.mxu1 %v7397_v48  ;;  %v7454_v61 = vld [vmem:[#allocation7 + $0xb44] ss:$20 sps:$4 sm:$0xff]   ;;  %v7457_v48 = vld [vmem:[#allocation7 + $0xb4c] ss:$20 sps:$4 sm:$0xff]  }
 0x209   :  { %5150 = vmatpush1.bf16.msra.mxu0 %v7392_v1  ;;  %5478 = vmatpush1.bf16.msra.mxu1 %v7395_v2  ;;  %v7452_v1 = vld [vmem:[#allocation7 + $0xb40] ss:$20 sps:$4 sm:$0xff]   ;;  %v7455_v2 = vld [vmem:[#allocation7 + $0xb48] ss:$20 sps:$4 sm:$0xff]  }
 0x20a   :  { %5151 = vmatprep.subr.bf16.mxu0 %v7400_v63  ;;  %5479 = vmatprep.subr.bf16.mxu1 %v7403_v3  ;;  %v7460_v63 = vld [vmem:[#allocation7 + $0xb6c] ss:$20 sps:$4 sm:$0xff]   ;;  %v7463_v3 = vld [vmem:[#allocation7 + $0xb74] ss:$20 sps:$4 sm:$0xff]  }
 0x20d   :  { %5152 = vmatpush1.bf16.msra.mxu0 %v7398_v4  ;;  %5480 = vmatpush1.bf16.msra.mxu1 %v7401_v5  ;;  %v7458_v4 = vld [vmem:[#allocation7 + $0xb68] ss:$20 sps:$4 sm:$0xff]   ;;  %v7461_v5 = vld [vmem:[#allocation7 + $0xb70] ss:$20 sps:$4 sm:$0xff]  }
 0x20e   :  { %5162 = vmatprep.subr.bf16.mxu0 %v7406_v6  ;;  %5490 = vmatprep.subr.bf16.mxu1 %v7409_v7  ;;  %v7466_v6 = vld [vmem:[#allocation7 + $0xb94] ss:$20 sps:$4 sm:$0xff]   ;;  %v7469_v7 = vld [vmem:[#allocation7 + $0xb9c] ss:$20 sps:$4 sm:$0xff]  }
 0x210   :  { %5154 = vmatmul.mubr.bf16.vlgmr.msra.gmra.mrb[8].mxu0 %v8333_v13  ;;  %5482 = vmatmul.mubr.bf16.vlgmr.msra.gmra.mrb[8].mxu1 %v8333_v13 }
 0x211   :  { %5163 = vmatpush1.bf16.msra.mxu0 %v7404_v12  ;;  %5194 = vmatprep.mubr.bf16.mxu0 %v8335_v14  ;;  %v7472_v12 = vld [vmem:[#allocation7 + $0xbbc] ss:$20 sps:$4 sm:$0xff]  }
 0x212   :  { %5491 = vmatpush1.bf16.msra.mxu1 %v7407_v30  ;;  %5522 = vmatprep.mubr.bf16.mxu1 %v8335_v14  ;;  %v7475_v30 = vld [vmem:[#allocation7 + $0xbc4] ss:$20 sps:$4 sm:$0xff]  }
 0x213   :  { %5164 = vmatprep.subr.bf16.mxu0 %v7412_v43  ;;  %5492 = vmatprep.subr.bf16.mxu1 %v7415_v18  ;;  %v226_v43 = vrot.slane %v8327_v39, %v8222_v26  ;;  %v7470_v18 = vld [vmem:[#allocation7 + $0xbb8] ss:$20 sps:$4 sm:$0xff]   ;;  %v7482_v39 = vld [vmem:[#allocation7 + $0xc08] ss:$20 sps:$4 sm:$0xff]  }
 0x215   :  { %5165 = vmatpush1.bf16.msra.mxu0 %v7410_v19  ;;  %v7473_v19 = vld [vmem:[#allocation7 + $0xbc0] ss:$20 sps:$4 sm:$0xff]  }
 0x216   :  { %5493 = vmatpush1.bf16.msra.mxu1 %v7413_v20  ;;  %5166 = vmatprep.subr.bf16.mxu0 %v7418_v21  ;;  %v7478_v20 = vld [vmem:[#allocation7 + $0xbe4] ss:$20 sps:$4 sm:$0xff]   ;;  %v7481_v21 = vld [vmem:[#allocation7 + $0xbec] ss:$20 sps:$4 sm:$0xff]  }
 0x217   :  { %5494 = vmatprep.subr.bf16.mxu1 %v7421_v49  ;;  %v626_v49 = vadd.f32 %v8261_v62, %v226_v43  ;;  %v7488_v62 = vld [vmem:[#allocation7 + $0xc30] ss:$20 sps:$4 sm:$0xff]   ;;  %v7535_v43 = vld [vmem:[#allocation7 + $0xd54] ss:$20 sps:$4 sm:$0xff]  }
 0x219   :  { %5167 = vmatpush1.bf16.msra.mxu0 %v7416_v22  ;;  %v7476_v22 = vld [vmem:[#allocation7 + $0xbe0] ss:$20 sps:$4 sm:$0xff]   ;;  %7934 = vtanh.f32 %v626_v49  ;;  %v7536_v49 = vld [vmem:[#allocation7 + $0xd70] ss:$20 sps:$4 sm:$0xff]  }
 0x21a   :  { %5495 = vmatpush1.bf16.msra.mxu1 %v7419_v23  ;;  %5168 = vmatprep.subr.bf16.mxu0 %v7424_v28  ;;  %v7479_v23 = vld [vmem:[#allocation7 + $0xbe8] ss:$20 sps:$4 sm:$0xff]   ;;  %v7484_v28 = vld [vmem:[#allocation7 + $0xc0c] ss:$20 sps:$4 sm:$0xff]   ;;  %7936 = vtanh.f32 %v8269_v10 }
 0x21b   :  { %5496 = vmatprep.subr.bf16.mxu1 %v7427_v0  ;;  %v7487_v0 = vld [vmem:[#allocation7 + $0xc14] ss:$20 sps:$4 sm:$0xff]   ;;  %7938 = vtanh.f32 %v8267_v8  ;;  %v7590_v8 = vld [vmem:[#allocation7 + $0xed8] ss:$20 sps:$4 sm:$0xff]  }
 0x21c   :  { %7940 = vtanh.f32 %v8284_v33 }
 0x21d   :  { %5169 = vmatpush1.bf16.msra.mxu0 %v7422_v25  ;;  %v7485_v25 = vld [vmem:[#allocation7 + $0xc10] ss:$20 sps:$4 sm:$0xff]   ;;  %7942 = vtanh.f32 %v8282_v31  ;;  %v7686_v31 = vld [vmem:[#allocation7 + $0x1158] ss:$20 sps:$4 sm:$0xff]  }
 0x21e   :  { %5497 = vmatpush1.bf16.msra.mxu1 %v7425_v16  ;;  %5170 = vmatprep.subr.bf16.mxu0 %v7430_v32  ;;  %v7490_v16 = vld [vmem:[#allocation7 + $0xc34] ss:$20 sps:$4 sm:$0xff]   ;;  %v7493_v32 = vld [vmem:[#allocation7 + $0xc3c] ss:$20 sps:$4 sm:$0xff]   ;;  %7944 = vtanh.f32 %v8290_v47 }
 0x21f   :  { %5498 = vmatprep.subr.bf16.mxu1 %v7433_v34  ;;  %v7491_v34 = vld [vmem:[#allocation7 + $0xc38] ss:$20 sps:$4 sm:$0xff]   ;;  %7946 = vtanh.f32 %v8288_v42  ;;  %v7785_v42 = vld [vmem:[#allocation7 + $0x13e0] ss:$20 sps:$4 sm:$0xff]  }
 0x221   :  { %5171 = vmatpush1.bf16.msra.mxu0 %v7428_v37  ;;  %v7496_v37 = vld [vmem:[#allocation7 + $0xc5c] ss:$20 sps:$4 sm:$0xff]  }
 0x222   :  { %5499 = vmatpush1.bf16.msra.mxu1 %v7431_v41  ;;  %5172 = vmatprep.subr.bf16.mxu0 %v7436_v38  ;;  %v7499_v41 = vld [vmem:[#allocation7 + $0xc64] ss:$20 sps:$4 sm:$0xff]  }
 0x223   :  { %5500 = vmatprep.subr.bf16.mxu1 %v7439_v40  ;;  %v7494_v38 = vld [vmem:[#allocation7 + $0xc58] ss:$20 sps:$4 sm:$0xff]   ;;  %v7497_v40 = vld [vmem:[#allocation7 + $0xc60] ss:$20 sps:$4 sm:$0xff]  }
 0x225   :  { %5173 = vmatpush1.bf16.msra.mxu0 %v7434_v46  ;;  %v7502_v46 = vld [vmem:[#allocation7 + $0xc84] ss:$20 sps:$4 sm:$0xff]  }
 0x226   :  { %5501 = vmatpush1.bf16.msra.mxu1 %v7437_v50  ;;  %5174 = vmatprep.subr.bf16.mxu0 %v7442_v51  ;;  %v7935_v50 = vpop.eup %7934  ;;  %v7505_v51 = vld [vmem:[#allocation7 + $0xc8c] ss:$20 sps:$4 sm:$0xff]  }
 0x227   :  { %5502 = vmatprep.subr.bf16.mxu1 %v7445_v24  ;;  %v7937_v10 = vpop.eup %7936  ;;  %v7500_v24 = vld [vmem:[#allocation7 + $0xc80] ss:$20 sps:$4 sm:$0xff]  }
 0x229   :  { %5175 = vmatpush1.bf16.msra.mxu0 %v7440_v54  ;;  %v8345_v54 = vpack.c.bf16 %v7935_v50, %v7935_v50  ;;  %v7560_v50 = vld [vmem:[#allocation7 + $0xe10] ss:$20 sps:$4 sm:$0xff]  }
 0x22a   :  { %5503 = vmatpush1.bf16.msra.mxu1 %v7443_v17  ;;  %5176 = vmatprep.subr.bf16.mxu0 %v7448_v60  ;;  %v7503_v17 = vld [vmem:[#allocation7 + $0xc88] ss:$20 sps:$4 sm:$0xff]   ;;  %v7508_v60 = vld [vmem:[#allocation7 + $0xcac] ss:$20 sps:$4 sm:$0xff]  }
 0x22b   :  { %5504 = vmatprep.subr.bf16.mxu1 %v7451_v55  ;;  %v8347_v55 = vpack.c.bf16 %v7937_v10, %v7937_v10  ;;  %v7568_v10 = vld [vmem:[#allocation7 + $0xe3c] ss:$20 sps:$4 sm:$0xff]  }
 0x22d   :  { %5177 = vmatpush1.bf16.msra.mxu0 %v7446_v56  ;;  %v7511_v56 = vld [vmem:[#allocation7 + $0xcb4] ss:$20 sps:$4 sm:$0xff]  }
 0x22e   :  { %5505 = vmatpush1.bf16.msra.mxu1 %v7449_v57  ;;  %5178 = vmatprep.subr.bf16.mxu0 %v7454_v61  ;;  %v7506_v57 = vld [vmem:[#allocation7 + $0xca8] ss:$20 sps:$4 sm:$0xff]   ;;  %v7509_v61 = vld [vmem:[#allocation7 + $0xcb0] ss:$20 sps:$4 sm:$0xff]  }
 0x22f   :  { %5506 = vmatprep.subr.bf16.mxu1 %v7457_v48  ;;  %v7514_v48 = vld [vmem:[#allocation7 + $0xcd4] ss:$20 sps:$4 sm:$0xff]  }
 0x231   :  { %5179 = vmatpush1.bf16.msra.mxu0 %v7452_v1  ;;  %v7517_v1 = vld [vmem:[#allocation7 + $0xcdc] ss:$20 sps:$4 sm:$0xff]  }
 0x232   :  { %5507 = vmatpush1.bf16.msra.mxu1 %v7455_v2  ;;  %5180 = vmatprep.subr.bf16.mxu0 %v7460_v63  ;;  %v7512_v2 = vld [vmem:[#allocation7 + $0xcd0] ss:$20 sps:$4 sm:$0xff]   ;;  %v7515_v63 = vld [vmem:[#allocation7 + $0xcd8] ss:$20 sps:$4 sm:$0xff]  }
 0x233   :  { %5508 = vmatprep.subr.bf16.mxu1 %v7463_v3  ;;  %v7520_v3 = vld [vmem:[#allocation7 + $0xcfc] ss:$20 sps:$4 sm:$0xff]  }
 0x235   :  { %5181 = vmatpush1.bf16.msra.mxu0 %v7458_v4  ;;  %v7523_v4 = vld [vmem:[#allocation7 + $0xd04] ss:$20 sps:$4 sm:$0xff]  }
 0x236   :  { %5509 = vmatpush1.bf16.msra.mxu1 %v7461_v5  ;;  %5182 = vmatprep.subr.bf16.mxu0 %v7466_v6  ;;  %v7518_v5 = vld [vmem:[#allocation7 + $0xcf8] ss:$20 sps:$4 sm:$0xff]   ;;  %v7521_v6 = vld [vmem:[#allocation7 + $0xd00] ss:$20 sps:$4 sm:$0xff]  }
 0x237   :  { %5510 = vmatprep.subr.bf16.mxu1 %v7469_v7  ;;  %v7526_v7 = vld [vmem:[#allocation7 + $0xd24] ss:$20 sps:$4 sm:$0xff]  }
 0x239   :  { %5183 = vmatpush1.bf16.msra.mxu0 %v7464_v9  ;;  %v7529_v9 = vld [vmem:[#allocation7 + $0xd2c] ss:$20 sps:$4 sm:$0xff]  }
 0x23a   :  { %5511 = vmatpush1.bf16.msra.mxu1 %v7467_v11  ;;  %5184 = vmatprep.subr.bf16.mxu0 %v7472_v12  ;;  %v7524_v11 = vld [vmem:[#allocation7 + $0xd20] ss:$20 sps:$4 sm:$0xff]   ;;  %v7527_v12 = vld [vmem:[#allocation7 + $0xd28] ss:$20 sps:$4 sm:$0xff]  }
 0x23b   :  { %5512 = vmatprep.subr.bf16.mxu1 %v7475_v30  ;;  %v7532_v30 = vld [vmem:[#allocation7 + $0xd4c] ss:$20 sps:$4 sm:$0xff]  }
 0x23d   :  { %5185 = vmatpush1.bf16.msra.mxu0 %v7470_v18  ;;  %v7530_v18 = vld [vmem:[#allocation7 + $0xd48] ss:$20 sps:$4 sm:$0xff]  }
 0x23e   :  { %5513 = vmatpush1.bf16.msra.mxu1 %v7473_v19  ;;  %5186 = vmatprep.subr.bf16.mxu0 %v7478_v20  ;;  %v7533_v19 = vld [vmem:[#allocation7 + $0xd50] ss:$20 sps:$4 sm:$0xff]   ;;  %v7538_v20 = vld [vmem:[#allocation7 + $0xd74] ss:$20 sps:$4 sm:$0xff]  }
 0x23f   :  { %5514 = vmatprep.subr.bf16.mxu1 %v7481_v21  ;;  %v7541_v21 = vld [vmem:[#allocation7 + $0xd7c] ss:$20 sps:$4 sm:$0xff]  }
 0x241   :  { %5187 = vmatpush1.bf16.msra.mxu0 %v7476_v22  ;;  %v7539_v22 = vld [vmem:[#allocation7 + $0xd78] ss:$20 sps:$4 sm:$0xff]  }
 0x242   :  { %5515 = vmatpush1.bf16.msra.mxu1 %v7479_v23  ;;  %5188 = vmatprep.subr.bf16.mxu0 %v7484_v28  ;;  %v7544_v23 = vld [vmem:[#allocation7 + $0xd9c] ss:$20 sps:$4 sm:$0xff]   ;;  %v7547_v28 = vld [vmem:[#allocation7 + $0xda4] ss:$20 sps:$4 sm:$0xff]  }
 0x243   :  { %5516 = vmatprep.subr.bf16.mxu1 %v7487_v0  ;;  %v7542_v0 = vld [vmem:[#allocation7 + $0xd98] ss:$20 sps:$4 sm:$0xff]  }
 0x245   :  { %5189 = vmatpush1.bf16.msra.mxu0 %v7482_v39  ;;  %v7545_v39 = vld [vmem:[#allocation7 + $0xda0] ss:$20 sps:$4 sm:$0xff]  }
 0x246   :  { %5517 = vmatpush1.bf16.msra.mxu1 %v7485_v25  ;;  %5190 = vmatprep.subr.bf16.mxu0 %v7490_v16  ;;  %v7550_v25 = vld [vmem:[#allocation7 + $0xdc4] ss:$20 sps:$4 sm:$0xff]   ;;  %v7553_v16 = vld [vmem:[#allocation7 + $0xdcc] ss:$20 sps:$4 sm:$0xff]  }
 0x247   :  { %5518 = vmatprep.subr.bf16.mxu1 %v7493_v32  ;;  %v7548_v32 = vld [vmem:[#allocation7 + $0xdc0] ss:$20 sps:$4 sm:$0xff]  }
 0x249   :  { %5191 = vmatpush1.bf16.msra.mxu0 %v7488_v62  ;;  %v7551_v62 = vld [vmem:[#allocation7 + $0xdc8] ss:$20 sps:$4 sm:$0xff]  }
 0x24a   :  { %5519 = vmatpush1.bf16.msra.mxu1 %v7491_v34  ;;  %5192 = vmatprep.subr.bf16.mxu0 %v7496_v37  ;;  %v7556_v34 = vld [vmem:[#allocation7 + $0xdec] ss:$20 sps:$4 sm:$0xff]   ;;  %v7559_v37 = vld [vmem:[#allocation7 + $0xdf4] ss:$20 sps:$4 sm:$0xff]  }
 0x24b   :  { %5520 = vmatprep.subr.bf16.mxu1 %v7499_v41  ;;  %v7554_v41 = vld [vmem:[#allocation7 + $0xde8] ss:$20 sps:$4 sm:$0xff]  }
 0x24d   :  { %5193 = vmatpush1.bf16.msra.mxu0 %v7494_v38  ;;  %v7557_v38 = vld [vmem:[#allocation7 + $0xdf0] ss:$20 sps:$4 sm:$0xff]  }
 0x24e   :  { %5521 = vmatpush1.bf16.msra.mxu1 %v7497_v40  ;;  %5203 = vmatprep.subr.bf16.mxu0 %v7502_v46  ;;  %v7562_v40 = vld [vmem:[#allocation7 + $0xe14] ss:$20 sps:$4 sm:$0xff]   ;;  %v7565_v46 = vld [vmem:[#allocation7 + $0xe1c] ss:$20 sps:$4 sm:$0xff]  }
 0x24f   :  { %5531 = vmatprep.subr.bf16.mxu1 %v7505_v51  ;;  %v7563_v51 = vld [vmem:[#allocation7 + $0xe18] ss:$20 sps:$4 sm:$0xff]  }
 0x250   :  { %5195 = vmatmul.mubr.bf16.vlgmr.msra.gmra.mrb[8].mxu0 %v8345_v54 }
 0x251   :  { %5523 = vmatmul.mubr.bf16.vlgmr.msra.gmra.mrb[8].mxu1 %v8345_v54  ;;  %5204 = vmatpush1.bf16.msra.mxu0 %v7500_v24  ;;  %v7571_v24 = vld [vmem:[#allocation7 + $0xe44] ss:$20 sps:$4 sm:$0xff]  }
 0x252   :  { %5235 = vmatprep.mubr.bf16.mxu0 %v8347_v55  ;;  %5532 = vmatpush1.bf16.msra.mxu1 %v7503_v17  ;;  %v7566_v17 = vld [vmem:[#allocation7 + $0xe38] ss:$20 sps:$4 sm:$0xff]  }
 0x253   :  { %5563 = vmatprep.mubr.bf16.mxu1 %v8347_v55  ;;  %5205 = vmatprep.subr.bf16.mxu0 %v7508_v60  ;;  %v7569_v60 = vld [vmem:[#allocation7 + $0xe40] ss:$20 sps:$4 sm:$0xff]  }
 0x254   :  { %5533 = vmatprep.subr.bf16.mxu1 %v7511_v56  ;;  %v7574_v56 = vld [vmem:[#allocation7 + $0xe64] ss:$20 sps:$4 sm:$0xff]  }
 0x255   :  { %5206 = vmatpush1.bf16.msra.mxu0 %v7506_v57  ;;  %v7577_v57 = vld [vmem:[#allocation7 + $0xe6c] ss:$20 sps:$4 sm:$0xff]  }
 0x256   :  { %5534 = vmatpush1.bf16.msra.mxu1 %v7509_v61  ;;  %5207 = vmatprep.subr.bf16.mxu0 %v7514_v48  ;;  %v7572_v61 = vld [vmem:[#allocation7 + $0xe60] ss:$20 sps:$4 sm:$0xff]   ;;  %v7575_v48 = vld [vmem:[#allocation7 + $0xe68] ss:$20 sps:$4 sm:$0xff]  }
 0x257   :  { %5535 = vmatprep.subr.bf16.mxu1 %v7517_v1  ;;  %v7580_v1 = vld [vmem:[#allocation7 + $0xe8c] ss:$20 sps:$4 sm:$0xff]  }
 0x259   :  { %5208 = vmatpush1.bf16.msra.mxu0 %v7512_v2  ;;  %v7583_v2 = vld [vmem:[#allocation7 + $0xe94] ss:$20 sps:$4 sm:$0xff]  }
 0x25a   :  { %5536 = vmatpush1.bf16.msra.mxu1 %v7515_v63  ;;  %5209 = vmatprep.subr.bf16.mxu0 %v7520_v3  ;;  %v7578_v63 = vld [vmem:[#allocation7 + $0xe88] ss:$20 sps:$4 sm:$0xff]   ;;  %v7581_v3 = vld [vmem:[#allocation7 + $0xe90] ss:$20 sps:$4 sm:$0xff]  }
 0x25b   :  { %5537 = vmatprep.subr.bf16.mxu1 %v7523_v4  ;;  %v7586_v4 = vld [vmem:[#allocation7 + $0xeb4] ss:$20 sps:$4 sm:$0xff]  }
 0x25d   :  { %5210 = vmatpush1.bf16.msra.mxu0 %v7518_v5  ;;  %v7589_v5 = vld [vmem:[#allocation7 + $0xebc] ss:$20 sps:$4 sm:$0xff]  }
 0x25e   :  { %5538 = vmatpush1.bf16.msra.mxu1 %v7521_v6  ;;  %5211 = vmatprep.subr.bf16.mxu0 %v7526_v7  ;;  %v7584_v6 = vld [vmem:[#allocation7 + $0xeb0] ss:$20 sps:$4 sm:$0xff]   ;;  %v7587_v7 = vld [vmem:[#allocation7 + $0xeb8] ss:$20 sps:$4 sm:$0xff]  }
 0x25f   :  { %5539 = vmatprep.subr.bf16.mxu1 %v7529_v9  ;;  %v7592_v9 = vld [vmem:[#allocation7 + $0xedc] ss:$20 sps:$4 sm:$0xff]  }
 0x261   :  { %5212 = vmatpush1.bf16.msra.mxu0 %v7524_v11  ;;  %v7595_v11 = vld [vmem:[#allocation7 + $0xee4] ss:$20 sps:$4 sm:$0xff]  }
 0x262   :  { %5540 = vmatpush1.bf16.msra.mxu1 %v7527_v12  ;;  %5213 = vmatprep.subr.bf16.mxu0 %v7532_v30  ;;  %v7593_v12 = vld [vmem:[#allocation7 + $0xee0] ss:$20 sps:$4 sm:$0xff]   ;;  %v7598_v30 = vld [vmem:[#allocation7 + $0xf04] ss:$20 sps:$4 sm:$0xff]  }
 0x263   :  { %5541 = vmatprep.subr.bf16.mxu1 %v7535_v43  ;;  %v7939_v43 = vpop.eup %7938 }
 0x264   :  { %v7941_v33 = vpop.eup %7940 }
 0x265   :  { %5214 = vmatpush1.bf16.msra.mxu0 %v7530_v18  ;;  %v7601_v18 = vld [vmem:[#allocation7 + $0xf0c] ss:$20 sps:$4 sm:$0xff]  }
 0x266   :  { %5542 = vmatpush1.bf16.msra.mxu1 %v7533_v19  ;;  %5215 = vmatprep.subr.bf16.mxu0 %v7538_v20  ;;  %v7596_v19 = vld [vmem:[#allocation7 + $0xf00] ss:$20 sps:$4 sm:$0xff]   ;;  %v8355_v20 = vpack.c.bf16 %v7939_v43, %v7939_v43  ;;  %v7656_v43 = vld [vmem:[#allocation7 + $0x1090] ss:$20 sps:$4 sm:$0xff]  }
 0x267   :  { %5543 = vmatprep.subr.bf16.mxu1 %v7541_v21  ;;  %v7599_v21 = vld [vmem:[#allocation7 + $0xf08] ss:$20 sps:$4 sm:$0xff]  }
 0x269   :  { %5216 = vmatpush1.bf16.msra.mxu0 %v7536_v49  ;;  %v7604_v49 = vld [vmem:[#allocation7 + $0xf2c] ss:$20 sps:$4 sm:$0xff]  }
 0x26a   :  { %5544 = vmatpush1.bf16.msra.mxu1 %v7539_v22  ;;  %5217 = vmatprep.subr.bf16.mxu0 %v7544_v23  ;;  %v8357_v22 = vpack.c.bf16 %v7941_v33, %v7941_v33  ;;  %v7607_v23 = vld [vmem:[#allocation7 + $0xf34] ss:$20 sps:$4 sm:$0xff]   ;;  %v7664_v33 = vld [vmem:[#allocation7 + $0x10bc] ss:$20 sps:$4 sm:$0xff]  }
 0x26b   :  { %5545 = vmatprep.subr.bf16.mxu1 %v7547_v28  ;;  %v7602_v28 = vld [vmem:[#allocation7 + $0xf28] ss:$20 sps:$4 sm:$0xff]  }
 0x26d   :  { %5218 = vmatpush1.bf16.msra.mxu0 %v7542_v0  ;;  %v7605_v0 = vld [vmem:[#allocation7 + $0xf30] ss:$20 sps:$4 sm:$0xff]  }
 0x26e   :  { %5546 = vmatpush1.bf16.msra.mxu1 %v7545_v39  ;;  %5219 = vmatprep.subr.bf16.mxu0 %v7550_v25  ;;  %v7610_v39 = vld [vmem:[#allocation7 + $0xf54] ss:$20 sps:$4 sm:$0xff]   ;;  %v7613_v25 = vld [vmem:[#allocation7 + $0xf5c] ss:$20 sps:$4 sm:$0xff]  }
 0x26f   :  { %5547 = vmatprep.subr.bf16.mxu1 %v7553_v16  ;;  %v7608_v16 = vld [vmem:[#allocation7 + $0xf50] ss:$20 sps:$4 sm:$0xff]  }
 0x271   :  { %5220 = vmatpush1.bf16.msra.mxu0 %v7548_v32  ;;  %v7611_v32 = vld [vmem:[#allocation7 + $0xf58] ss:$20 sps:$4 sm:$0xff]  }
 0x272   :  { %5548 = vmatpush1.bf16.msra.mxu1 %v7551_v62  ;;  %5221 = vmatprep.subr.bf16.mxu0 %v7556_v34  ;;  %v7616_v62 = vld [vmem:[#allocation7 + $0xf7c] ss:$20 sps:$4 sm:$0xff]   ;;  %v7619_v34 = vld [vmem:[#allocation7 + $0xf84] ss:$20 sps:$4 sm:$0xff]  }
 0x273   :  { %5549 = vmatprep.subr.bf16.mxu1 %v7559_v37  ;;  %v7614_v37 = vld [vmem:[#allocation7 + $0xf78] ss:$20 sps:$4 sm:$0xff]  }
 0x275   :  { %5222 = vmatpush1.bf16.msra.mxu0 %v7554_v41  ;;  %v7617_v41 = vld [vmem:[#allocation7 + $0xf80] ss:$20 sps:$4 sm:$0xff]  }
 0x276   :  { %5550 = vmatpush1.bf16.msra.mxu1 %v7557_v38  ;;  %5223 = vmatprep.subr.bf16.mxu0 %v7562_v40  ;;  %v7622_v38 = vld [vmem:[#allocation7 + $0xfa4] ss:$20 sps:$4 sm:$0xff]   ;;  %v7625_v40 = vld [vmem:[#allocation7 + $0xfac] ss:$20 sps:$4 sm:$0xff]  }
 0x277   :  { %5551 = vmatprep.subr.bf16.mxu1 %v7565_v46  ;;  %v7620_v46 = vld [vmem:[#allocation7 + $0xfa0] ss:$20 sps:$4 sm:$0xff]  }
 0x279   :  { %5224 = vmatpush1.bf16.msra.mxu0 %v7560_v50  ;;  %v7623_v50 = vld [vmem:[#allocation7 + $0xfa8] ss:$20 sps:$4 sm:$0xff]  }
 0x27a   :  { %5552 = vmatpush1.bf16.msra.mxu1 %v7563_v51  ;;  %5225 = vmatprep.subr.bf16.mxu0 %v7568_v10  ;;  %v7628_v51 = vld [vmem:[#allocation7 + $0xfcc] ss:$20 sps:$4 sm:$0xff]   ;;  %v7631_v10 = vld [vmem:[#allocation7 + $0xfd4] ss:$20 sps:$4 sm:$0xff]  }
 0x27b   :  { %5553 = vmatprep.subr.bf16.mxu1 %v7571_v24  ;;  %v7626_v24 = vld [vmem:[#allocation7 + $0xfc8] ss:$20 sps:$4 sm:$0xff]  }
 0x27d   :  { %5226 = vmatpush1.bf16.msra.mxu0 %v7566_v17  ;;  %v7629_v17 = vld [vmem:[#allocation7 + $0xfd0] ss:$20 sps:$4 sm:$0xff]  }
 0x27e   :  { %5554 = vmatpush1.bf16.msra.mxu1 %v7569_v60  ;;  %5227 = vmatprep.subr.bf16.mxu0 %v7574_v56  ;;  %v7634_v60 = vld [vmem:[#allocation7 + $0xff4] ss:$20 sps:$4 sm:$0xff]   ;;  %v7637_v56 = vld [vmem:[#allocation7 + $0xffc] ss:$20 sps:$4 sm:$0xff]  }
 0x27f   :  { %5555 = vmatprep.subr.bf16.mxu1 %v7577_v57  ;;  %v7632_v57 = vld [vmem:[#allocation7 + $0xff0] ss:$20 sps:$4 sm:$0xff]  }
 0x281   :  { %5228 = vmatpush1.bf16.msra.mxu0 %v7572_v61  ;;  %v7635_v61 = vld [vmem:[#allocation7 + $0xff8] ss:$20 sps:$4 sm:$0xff]  }
 0x282   :  { %5556 = vmatpush1.bf16.msra.mxu1 %v7575_v48  ;;  %5229 = vmatprep.subr.bf16.mxu0 %v7580_v1  ;;  %v7640_v48 = vld [vmem:[#allocation7 + $0x101c] ss:$20 sps:$4 sm:$0xff]   ;;  %v7643_v1 = vld [vmem:[#allocation7 + $0x1024] ss:$20 sps:$4 sm:$0xff]  }
 0x283   :  { %5557 = vmatprep.subr.bf16.mxu1 %v7583_v2  ;;  %v7638_v2 = vld [vmem:[#allocation7 + $0x1018] ss:$20 sps:$4 sm:$0xff]  }
 0x285   :  { %5230 = vmatpush1.bf16.msra.mxu0 %v7578_v63  ;;  %v7641_v63 = vld [vmem:[#allocation7 + $0x1020] ss:$20 sps:$4 sm:$0xff]  }
 0x286   :  { %5558 = vmatpush1.bf16.msra.mxu1 %v7581_v3  ;;  %5231 = vmatprep.subr.bf16.mxu0 %v7586_v4  ;;  %v7646_v3 = vld [vmem:[#allocation7 + $0x1044] ss:$20 sps:$4 sm:$0xff]   ;;  %v7649_v4 = vld [vmem:[#allocation7 + $0x104c] ss:$20 sps:$4 sm:$0xff]  }
 0x287   :  { %5559 = vmatprep.subr.bf16.mxu1 %v7589_v5  ;;  %v7644_v5 = vld [vmem:[#allocation7 + $0x1040] ss:$20 sps:$4 sm:$0xff]  }
 0x289   :  { %5232 = vmatpush1.bf16.msra.mxu0 %v7584_v6  ;;  %v7647_v6 = vld [vmem:[#allocation7 + $0x1048] ss:$20 sps:$4 sm:$0xff]  }
 0x28a   :  { %5560 = vmatpush1.bf16.msra.mxu1 %v7587_v7  ;;  %5233 = vmatprep.subr.bf16.mxu0 %v7592_v9  ;;  %v7652_v7 = vld [vmem:[#allocation7 + $0x106c] ss:$20 sps:$4 sm:$0xff]   ;;  %v7655_v9 = vld [vmem:[#allocation7 + $0x1074] ss:$20 sps:$4 sm:$0xff]  }
 0x28b   :  { %5561 = vmatprep.subr.bf16.mxu1 %v7595_v11  ;;  %v7650_v11 = vld [vmem:[#allocation7 + $0x1068] ss:$20 sps:$4 sm:$0xff]  }
 0x28d   :  { %5234 = vmatpush1.bf16.msra.mxu0 %v7590_v8  ;;  %v7653_v8 = vld [vmem:[#allocation7 + $0x1070] ss:$20 sps:$4 sm:$0xff]  }
 0x28e   :  { %5562 = vmatpush1.bf16.msra.mxu1 %v7593_v12  ;;  %5244 = vmatprep.subr.bf16.mxu0 %v7598_v30  ;;  %v7658_v12 = vld [vmem:[#allocation7 + $0x1094] ss:$20 sps:$4 sm:$0xff]   ;;  %v7661_v30 = vld [vmem:[#allocation7 + $0x109c] ss:$20 sps:$4 sm:$0xff]  }
 0x28f   :  { %5572 = vmatprep.subr.bf16.mxu1 %v7601_v18  ;;  %v7659_v18 = vld [vmem:[#allocation7 + $0x1098] ss:$20 sps:$4 sm:$0xff]  }
 0x290   :  { %5236 = vmatmul.mubr.bf16.vlgmr.msra.gmra.mrb[8].mxu0 %v8355_v20 }
 0x291   :  { %5564 = vmatmul.mubr.bf16.vlgmr.msra.gmra.mrb[8].mxu1 %v8355_v20  ;;  %5245 = vmatpush1.bf16.msra.mxu0 %v7596_v19  ;;  %v7667_v19 = vld [vmem:[#allocation7 + $0x10c4] ss:$20 sps:$4 sm:$0xff]  }
 0x292   :  { %5276 = vmatprep.mubr.bf16.mxu0 %v8357_v22  ;;  %5573 = vmatpush1.bf16.msra.mxu1 %v7599_v21  ;;  %v7662_v21 = vld [vmem:[#allocation7 + $0x10b8] ss:$20 sps:$4 sm:$0xff]  }
 0x293   :  { %5604 = vmatprep.mubr.bf16.mxu1 %v8357_v22  ;;  %5246 = vmatprep.subr.bf16.mxu0 %v7604_v49  ;;  %v7665_v49 = vld [vmem:[#allocation7 + $0x10c0] ss:$20 sps:$4 sm:$0xff]  }
 0x294   :  { %5574 = vmatprep.subr.bf16.mxu1 %v7607_v23  ;;  %v7670_v23 = vld [vmem:[#allocation7 + $0x10e4] ss:$20 sps:$4 sm:$0xff]  }
 0x295   :  { %5247 = vmatpush1.bf16.msra.mxu0 %v7602_v28  ;;  %v7673_v28 = vld [vmem:[#allocation7 + $0x10ec] ss:$20 sps:$4 sm:$0xff]  }
 0x296   :  { %5575 = vmatpush1.bf16.msra.mxu1 %v7605_v0  ;;  %5248 = vmatprep.subr.bf16.mxu0 %v7610_v39  ;;  %v7668_v0 = vld [vmem:[#allocation7 + $0x10e0] ss:$20 sps:$4 sm:$0xff]   ;;  %v7671_v39 = vld [vmem:[#allocation7 + $0x10e8] ss:$20 sps:$4 sm:$0xff]  }
 0x297   :  { %5576 = vmatprep.subr.bf16.mxu1 %v7613_v25  ;;  %v7676_v25 = vld [vmem:[#allocation7 + $0x110c] ss:$20 sps:$4 sm:$0xff]  }
 0x299   :  { %5249 = vmatpush1.bf16.msra.mxu0 %v7608_v16  ;;  %v7679_v16 = vld [vmem:[#allocation7 + $0x1114] ss:$20 sps:$4 sm:$0xff]  }
 0x29a   :  { %5577 = vmatpush1.bf16.msra.mxu1 %v7611_v32  ;;  %5250 = vmatprep.subr.bf16.mxu0 %v7616_v62  ;;  %v7674_v32 = vld [vmem:[#allocation7 + $0x1108] ss:$20 sps:$4 sm:$0xff]   ;;  %v7677_v62 = vld [vmem:[#allocation7 + $0x1110] ss:$20 sps:$4 sm:$0xff]  }
 0x29b   :  { %5578 = vmatprep.subr.bf16.mxu1 %v7619_v34  ;;  %v7682_v34 = vld [vmem:[#allocation7 + $0x1134] ss:$20 sps:$4 sm:$0xff]  }
 0x29d   :  { %5251 = vmatpush1.bf16.msra.mxu0 %v7614_v37  ;;  %v7685_v37 = vld [vmem:[#allocation7 + $0x113c] ss:$20 sps:$4 sm:$0xff]  }
 0x29e   :  { %5579 = vmatpush1.bf16.msra.mxu1 %v7617_v41  ;;  %5252 = vmatprep.subr.bf16.mxu0 %v7622_v38  ;;  %v7680_v41 = vld [vmem:[#allocation7 + $0x1130] ss:$20 sps:$4 sm:$0xff]   ;;  %v7683_v38 = vld [vmem:[#allocation7 + $0x1138] ss:$20 sps:$4 sm:$0xff]  }
 0x29f   :  { %5580 = vmatprep.subr.bf16.mxu1 %v7625_v40  ;;  %v7688_v40 = vld [vmem:[#allocation7 + $0x115c] ss:$20 sps:$4 sm:$0xff]  }
 0x2a1   :  { %5253 = vmatpush1.bf16.msra.mxu0 %v7620_v46  ;;  %v7691_v46 = vld [vmem:[#allocation7 + $0x1164] ss:$20 sps:$4 sm:$0xff]  }
 0x2a2   :  { %5581 = vmatpush1.bf16.msra.mxu1 %v7623_v50  ;;  %5254 = vmatprep.subr.bf16.mxu0 %v7628_v51  ;;  %v7689_v50 = vld [vmem:[#allocation7 + $0x1160] ss:$20 sps:$4 sm:$0xff]   ;;  %v7694_v51 = vld [vmem:[#allocation7 + $0x1184] ss:$20 sps:$4 sm:$0xff]  }
 0x2a3   :  { %5582 = vmatprep.subr.bf16.mxu1 %v7631_v10  ;;  %v7943_v10 = vpop.eup %7942 }
 0x2a4   :  { %v7945_v47 = vpop.eup %7944 }
 0x2a5   :  { %5255 = vmatpush1.bf16.msra.mxu0 %v7626_v24  ;;  %v7697_v24 = vld [vmem:[#allocation7 + $0x118c] ss:$20 sps:$4 sm:$0xff]  }
 0x2a6   :  { %5583 = vmatpush1.bf16.msra.mxu1 %v7629_v17  ;;  %5256 = vmatprep.subr.bf16.mxu0 %v7634_v60  ;;  %v7692_v17 = vld [vmem:[#allocation7 + $0x1180] ss:$20 sps:$4 sm:$0xff]   ;;  %v8365_v60 = vpack.c.bf16 %v7943_v10, %v7943_v10  ;;  %v7752_v10 = vld [vmem:[#allocation7 + $0x1310] ss:$20 sps:$4 sm:$0xff]  }
 0x2a7   :  { %5584 = vmatprep.subr.bf16.mxu1 %v7637_v56  ;;  %v7695_v56 = vld [vmem:[#allocation7 + $0x1188] ss:$20 sps:$4 sm:$0xff]  }
 0x2a9   :  { %5257 = vmatpush1.bf16.msra.mxu0 %v7632_v57  ;;  %v7700_v57 = vld [vmem:[#allocation7 + $0x11ac] ss:$20 sps:$4 sm:$0xff]  }
 0x2aa   :  { %5585 = vmatpush1.bf16.msra.mxu1 %v7635_v61  ;;  %5258 = vmatprep.subr.bf16.mxu0 %v7640_v48  ;;  %v8367_v61 = vpack.c.bf16 %v7945_v47, %v7945_v47  ;;  %v7703_v48 = vld [vmem:[#allocation7 + $0x11b4] ss:$20 sps:$4 sm:$0xff]   ;;  %v7760_v47 = vld [vmem:[#allocation7 + $0x133c] ss:$20 sps:$4 sm:$0xff]  }
 0x2ab   :  { %5586 = vmatprep.subr.bf16.mxu1 %v7643_v1  ;;  %v7698_v1 = vld [vmem:[#allocation7 + $0x11a8] ss:$20 sps:$4 sm:$0xff]  }
 0x2ad   :  { %5259 = vmatpush1.bf16.msra.mxu0 %v7638_v2  ;;  %v7701_v2 = vld [vmem:[#allocation7 + $0x11b0] ss:$20 sps:$4 sm:$0xff]  }
 0x2ae   :  { %5587 = vmatpush1.bf16.msra.mxu1 %v7641_v63  ;;  %5260 = vmatprep.subr.bf16.mxu0 %v7646_v3  ;;  %v7706_v63 = vld [vmem:[#allocation7 + $0x11d4] ss:$20 sps:$4 sm:$0xff]   ;;  %v7709_v3 = vld [vmem:[#allocation7 + $0x11dc] ss:$20 sps:$4 sm:$0xff]  }
 0x2af   :  { %5588 = vmatprep.subr.bf16.mxu1 %v7649_v4  ;;  %v7704_v4 = vld [vmem:[#allocation7 + $0x11d0] ss:$20 sps:$4 sm:$0xff]  }
 0x2b1   :  { %5261 = vmatpush1.bf16.msra.mxu0 %v7644_v5  ;;  %v7707_v5 = vld [vmem:[#allocation7 + $0x11d8] ss:$20 sps:$4 sm:$0xff]  }
 0x2b2   :  { %5589 = vmatpush1.bf16.msra.mxu1 %v7647_v6  ;;  %5262 = vmatprep.subr.bf16.mxu0 %v7652_v7  ;;  %v7712_v6 = vld [vmem:[#allocation7 + $0x11fc] ss:$20 sps:$4 sm:$0xff]   ;;  %v7715_v7 = vld [vmem:[#allocation7 + $0x1204] ss:$20 sps:$4 sm:$0xff]  }
 0x2b3   :  { %5590 = vmatprep.subr.bf16.mxu1 %v7655_v9  ;;  %v7710_v9 = vld [vmem:[#allocation7 + $0x11f8] ss:$20 sps:$4 sm:$0xff]  }
 0x2b5   :  { %5263 = vmatpush1.bf16.msra.mxu0 %v7650_v11  ;;  %v7713_v11 = vld [vmem:[#allocation7 + $0x1200] ss:$20 sps:$4 sm:$0xff]  }
 0x2b6   :  { %5591 = vmatpush1.bf16.msra.mxu1 %v7653_v8  ;;  %5264 = vmatprep.subr.bf16.mxu0 %v7658_v12  ;;  %v7718_v8 = vld [vmem:[#allocation7 + $0x1224] ss:$20 sps:$4 sm:$0xff]   ;;  %v7721_v12 = vld [vmem:[#allocation7 + $0x122c] ss:$20 sps:$4 sm:$0xff]  }
 0x2b7   :  { %5592 = vmatprep.subr.bf16.mxu1 %v7661_v30  ;;  %v7716_v30 = vld [vmem:[#allocation7 + $0x1220] ss:$20 sps:$4 sm:$0xff]  }
 0x2b9   :  { %5265 = vmatpush1.bf16.msra.mxu0 %v7656_v43  ;;  %v7719_v43 = vld [vmem:[#allocation7 + $0x1228] ss:$20 sps:$4 sm:$0xff]  }
 0x2ba   :  { %5593 = vmatpush1.bf16.msra.mxu1 %v7659_v18  ;;  %5266 = vmatprep.subr.bf16.mxu0 %v7664_v33  ;;  %v7724_v18 = vld [vmem:[#allocation7 + $0x124c] ss:$20 sps:$4 sm:$0xff]   ;;  %v7727_v33 = vld [vmem:[#allocation7 + $0x1254] ss:$20 sps:$4 sm:$0xff]  }
 0x2bb   :  { %5594 = vmatprep.subr.bf16.mxu1 %v7667_v19  ;;  %v7722_v19 = vld [vmem:[#allocation7 + $0x1248] ss:$20 sps:$4 sm:$0xff]  }
 0x2bd   :  { %5267 = vmatpush1.bf16.msra.mxu0 %v7662_v21  ;;  %v7725_v21 = vld [vmem:[#allocation7 + $0x1250] ss:$20 sps:$4 sm:$0xff]  }
 0x2be   :  { %5595 = vmatpush1.bf16.msra.mxu1 %v7665_v49  ;;  %5268 = vmatprep.subr.bf16.mxu0 %v7670_v23  ;;  %v7730_v49 = vld [vmem:[#allocation7 + $0x1274] ss:$20 sps:$4 sm:$0xff]   ;;  %v7733_v23 = vld [vmem:[#allocation7 + $0x127c] ss:$20 sps:$4 sm:$0xff]  }
 0x2bf   :  { %5596 = vmatprep.subr.bf16.mxu1 %v7673_v28  ;;  %v7728_v28 = vld [vmem:[#allocation7 + $0x1270] ss:$20 sps:$4 sm:$0xff]  }
 0x2c1   :  { %5269 = vmatpush1.bf16.msra.mxu0 %v7668_v0  ;;  %v7731_v0 = vld [vmem:[#allocation7 + $0x1278] ss:$20 sps:$4 sm:$0xff]  }
 0x2c2   :  { %5597 = vmatpush1.bf16.msra.mxu1 %v7671_v39  ;;  %5270 = vmatprep.subr.bf16.mxu0 %v7676_v25  ;;  %v7736_v39 = vld [vmem:[#allocation7 + $0x129c] ss:$20 sps:$4 sm:$0xff]   ;;  %v7739_v25 = vld [vmem:[#allocation7 + $0x12a4] ss:$20 sps:$4 sm:$0xff]  }
 0x2c3   :  { %5598 = vmatprep.subr.bf16.mxu1 %v7679_v16  ;;  %v7734_v16 = vld [vmem:[#allocation7 + $0x1298] ss:$20 sps:$4 sm:$0xff]  }
 0x2c5   :  { %5271 = vmatpush1.bf16.msra.mxu0 %v7674_v32  ;;  %v7737_v32 = vld [vmem:[#allocation7 + $0x12a0] ss:$20 sps:$4 sm:$0xff]  }
 0x2c6   :  { %5599 = vmatpush1.bf16.msra.mxu1 %v7677_v62  ;;  %5272 = vmatprep.subr.bf16.mxu0 %v7682_v34  ;;  %v7742_v62 = vld [vmem:[#allocation7 + $0x12c4] ss:$20 sps:$4 sm:$0xff]   ;;  %v7745_v34 = vld [vmem:[#allocation7 + $0x12cc] ss:$20 sps:$4 sm:$0xff]  }
 0x2c7   :  { %5600 = vmatprep.subr.bf16.mxu1 %v7685_v37  ;;  %v7740_v37 = vld [vmem:[#allocation7 + $0x12c0] ss:$20 sps:$4 sm:$0xff]  }
 0x2c9   :  { %5273 = vmatpush1.bf16.msra.mxu0 %v7680_v41  ;;  %v7743_v41 = vld [vmem:[#allocation7 + $0x12c8] ss:$20 sps:$4 sm:$0xff]  }
 0x2ca   :  { %5601 = vmatpush1.bf16.msra.mxu1 %v7683_v38  ;;  %5274 = vmatprep.subr.bf16.mxu0 %v7688_v40  ;;  %v7748_v38 = vld [vmem:[#allocation7 + $0x12ec] ss:$20 sps:$4 sm:$0xff]   ;;  %v7751_v40 = vld [vmem:[#allocation7 + $0x12f4] ss:$20 sps:$4 sm:$0xff]  }
 0x2cb   :  { %5602 = vmatprep.subr.bf16.mxu1 %v7691_v46  ;;  %v7746_v46 = vld [vmem:[#allocation7 + $0x12e8] ss:$20 sps:$4 sm:$0xff]  }
 0x2cd   :  { %5275 = vmatpush1.bf16.msra.mxu0 %v7686_v31  ;;  %v7749_v31 = vld [vmem:[#allocation7 + $0x12f0] ss:$20 sps:$4 sm:$0xff]  }
 0x2ce   :  { %5603 = vmatpush1.bf16.msra.mxu1 %v7689_v50  ;;  %5285 = vmatprep.subr.bf16.mxu0 %v7694_v51  ;;  %v7754_v50 = vld [vmem:[#allocation7 + $0x1314] ss:$20 sps:$4 sm:$0xff]   ;;  %v7757_v51 = vld [vmem:[#allocation7 + $0x131c] ss:$20 sps:$4 sm:$0xff]  }
 0x2cf   :  { %5613 = vmatprep.subr.bf16.mxu1 %v7697_v24  ;;  %v7755_v24 = vld [vmem:[#allocation7 + $0x1318] ss:$20 sps:$4 sm:$0xff]  }
 0x2d0   :  { %5277 = vmatmul.mubr.bf16.vlgmr.msra.gmra.mrb[8].mxu0 %v8365_v60 }
 0x2d1   :  { %5605 = vmatmul.mubr.bf16.vlgmr.msra.gmra.mrb[8].mxu1 %v8365_v60  ;;  %5286 = vmatpush1.bf16.msra.mxu0 %v7692_v17  ;;  %v7763_v17 = vld [vmem:[#allocation7 + $0x1344] ss:$20 sps:$4 sm:$0xff]  }
 0x2d2   :  { %5317 = vmatprep.mubr.bf16.mxu0 %v8367_v61  ;;  %5614 = vmatpush1.bf16.msra.mxu1 %v7695_v56  ;;  %v7758_v56 = vld [vmem:[#allocation7 + $0x1338] ss:$20 sps:$4 sm:$0xff]  }
 0x2d3   :  { %5645 = vmatprep.mubr.bf16.mxu1 %v8367_v61  ;;  %5287 = vmatprep.subr.bf16.mxu0 %v7700_v57  ;;  %v7761_v57 = vld [vmem:[#allocation7 + $0x1340] ss:$20 sps:$4 sm:$0xff]  }
 0x2d4   :  { %5615 = vmatprep.subr.bf16.mxu1 %v7703_v48  ;;  %v7766_v48 = vld [vmem:[#allocation7 + $0x1364] ss:$20 sps:$4 sm:$0xff]  }
 0x2d5   :  { %5288 = vmatpush1.bf16.msra.mxu0 %v7698_v1  ;;  %v7769_v1 = vld [vmem:[#allocation7 + $0x136c] ss:$20 sps:$4 sm:$0xff]  }
 0x2d6   :  { %5616 = vmatpush1.bf16.msra.mxu1 %v7701_v2  ;;  %5289 = vmatprep.subr.bf16.mxu0 %v7706_v63  ;;  %v7764_v2 = vld [vmem:[#allocation7 + $0x1360] ss:$20 sps:$4 sm:$0xff]   ;;  %v7767_v63 = vld [vmem:[#allocation7 + $0x1368] ss:$20 sps:$4 sm:$0xff]  }
 0x2d7   :  { %5617 = vmatprep.subr.bf16.mxu1 %v7709_v3  ;;  %v7772_v3 = vld [vmem:[#allocation7 + $0x138c] ss:$20 sps:$4 sm:$0xff]  }
 0x2d9   :  { %5290 = vmatpush1.bf16.msra.mxu0 %v7704_v4  ;;  %v7775_v4 = vld [vmem:[#allocation7 + $0x1394] ss:$20 sps:$4 sm:$0xff]  }
 0x2da   :  { %5618 = vmatpush1.bf16.msra.mxu1 %v7707_v5  ;;  %5291 = vmatprep.subr.bf16.mxu0 %v7712_v6  ;;  %v7770_v5 = vld [vmem:[#allocation7 + $0x1388] ss:$20 sps:$4 sm:$0xff]   ;;  %v7773_v6 = vld [vmem:[#allocation7 + $0x1390] ss:$20 sps:$4 sm:$0xff]  }
 0x2db   :  { %5619 = vmatprep.subr.bf16.mxu1 %v7715_v7  ;;  %v7778_v7 = vld [vmem:[#allocation7 + $0x13b4] ss:$20 sps:$4 sm:$0xff]  }
 0x2dd   :  { %5292 = vmatpush1.bf16.msra.mxu0 %v7710_v9  ;;  %v7781_v9 = vld [vmem:[#allocation7 + $0x13bc] ss:$20 sps:$4 sm:$0xff]  }
 0x2de   :  { %5620 = vmatpush1.bf16.msra.mxu1 %v7713_v11  ;;  %5293 = vmatprep.subr.bf16.mxu0 %v7718_v8  ;;  %v7776_v11 = vld [vmem:[#allocation7 + $0x13b0] ss:$20 sps:$4 sm:$0xff]   ;;  %v7779_v8 = vld [vmem:[#allocation7 + $0x13b8] ss:$20 sps:$4 sm:$0xff]  }
 0x2df   :  { %5621 = vmatprep.subr.bf16.mxu1 %v7721_v12  ;;  %v7784_v12 = vld [vmem:[#allocation7 + $0x13dc] ss:$20 sps:$4 sm:$0xff]  }
 0x2e1   :  { %5294 = vmatpush1.bf16.msra.mxu0 %v7716_v30  ;;  %v7787_v30 = vld [vmem:[#allocation7 + $0x13e4] ss:$20 sps:$4 sm:$0xff]  }
 0x2e2   :  { %5622 = vmatpush1.bf16.msra.mxu1 %v7719_v43  ;;  %5295 = vmatprep.subr.bf16.mxu0 %v7724_v18  ;;  %v7782_v43 = vld [vmem:[#allocation7 + $0x13d8] ss:$20 sps:$4 sm:$0xff]   ;;  %v7788_v18 = vld [vmem:[#allocation7 + $0x150] ss:$20 sps:$4 sm:$0xff]  }
 0x2e3   :  { %5623 = vmatprep.subr.bf16.mxu1 %v7727_v33  ;;  %v7947_v33 = vpop.eup %7946 }
 0x2e5   :  { %5296 = vmatpush1.bf16.msra.mxu0 %v7722_v19  ;;  %v7789_v19 = vld [vmem:[#allocation7 + $0x3d0] ss:$20 sps:$4 sm:$0xff]  }
 0x2e6   :  { %5624 = vmatpush1.bf16.msra.mxu1 %v7725_v21  ;;  %5297 = vmatprep.subr.bf16.mxu0 %v7730_v49  ;;  %v7790_v21 = vld [vmem:[#allocation7 + $0x10] ss:$20 sps:$4 sm:$0xff]   ;;  %v8374_v49 = vpack.c.bf16 %v7947_v33, %v7947_v33 }
 0x2e7   :  { %5625 = vmatprep.subr.bf16.mxu1 %v7733_v23  ;;  %v7791_v23 = vld [vmem:[#allocation7 + $0x290] ss:$20 sps:$4 sm:$0xff]  }
 0x2e8   :  { %v7836_v33 = vld [vmem:[#allocation7 + $0x6f0] ss:$20 sps:$4 sm:$0xff]  }
 0x2e9   :  { %5298 = vmatpush1.bf16.msra.mxu0 %v7728_v28  ;;  %v7792_v28 = vld [vmem:[#allocation7 + $0x178] ss:$20 sps:$4 sm:$0xff]  }
 0x2ea   :  { %5626 = vmatpush1.bf16.msra.mxu1 %v7731_v0  ;;  %5299 = vmatprep.subr.bf16.mxu0 %v7736_v39  ;;  %v7793_v0 = vld [vmem:[#allocation7 + $0x3f8] ss:$20 sps:$4 sm:$0xff]  }
 0x2eb   :  { %5627 = vmatprep.subr.bf16.mxu1 %v7739_v25  ;;  %v7794_v39 = vld [vmem:[#allocation7 + $0x38] ss:$20 sps:$4 sm:$0xff]  }
 0x2ec   :  { %v7795_v25 = vld [vmem:[#allocation7 + $0x2b8] ss:$20 sps:$4 sm:$0xff]  }
 0x2ed   :  { %5300 = vmatpush1.bf16.msra.mxu0 %v7734_v16  ;;  %v7796_v16 = vld [vmem:[#allocation7 + $0x1a0] ss:$20 sps:$4 sm:$0xff]  }
 0x2ee   :  { %5628 = vmatpush1.bf16.msra.mxu1 %v7737_v32  ;;  %5301 = vmatprep.subr.bf16.mxu0 %v7742_v62  ;;  %v7797_v32 = vld [vmem:[#allocation7 + $0x420] ss:$20 sps:$4 sm:$0xff]  }
 0x2ef   :  { %5629 = vmatprep.subr.bf16.mxu1 %v7745_v34  ;;  %v7798_v62 = vld [vmem:[#allocation7 + $0x60] ss:$20 sps:$4 sm:$0xff]  }
 0x2f0   :  { %v7799_v34 = vld [vmem:[#allocation7 + $0x2e0] ss:$20 sps:$4 sm:$0xff]  }
 0x2f1   :  { %5302 = vmatpush1.bf16.msra.mxu0 %v7740_v37  ;;  %v7800_v37 = vld [vmem:[#allocation7 + $0x1c8] ss:$20 sps:$4 sm:$0xff]  }
 0x2f2   :  { %5630 = vmatpush1.bf16.msra.mxu1 %v7743_v41  ;;  %5303 = vmatprep.subr.bf16.mxu0 %v7748_v38  ;;  %v7801_v41 = vld [vmem:[#allocation7 + $0x448] ss:$20 sps:$4 sm:$0xff]  }
 0x2f3   :  { %5631 = vmatprep.subr.bf16.mxu1 %v7751_v40  ;;  %v7802_v38 = vld [vmem:[#allocation7 + $0x88] ss:$20 sps:$4 sm:$0xff]   ;;  %v7804_v40 = vld [vmem:[#allocation7 + $0x1f0] ss:$20 sps:$4 sm:$0xff]  }
 0x2f5   :  { %5304 = vmatpush1.bf16.msra.mxu0 %v7746_v46  ;;  %v7805_v46 = vld [vmem:[#allocation7 + $0x470] ss:$20 sps:$4 sm:$0xff]  }
 0x2f6   :  { %5632 = vmatpush1.bf16.msra.mxu1 %v7749_v31  ;;  %5305 = vmatprep.subr.bf16.mxu0 %v7754_v50  ;;  %v7807_v31 = vld [vmem:[#allocation7 + $0x330] ss:$20 sps:$4 sm:$0xff]   ;;  %v7808_v50 = vld [vmem:[#allocation7 + $0x218] ss:$20 sps:$4 sm:$0xff]  }
 0x2f7   :  { %5633 = vmatprep.subr.bf16.mxu1 %v7757_v51  ;;  %v7809_v51 = vld [vmem:[#allocation7 + $0x498] ss:$20 sps:$4 sm:$0xff]  }
 0x2f9   :  { %5306 = vmatpush1.bf16.msra.mxu0 %v7752_v10  ;;  %v7810_v10 = vld [vmem:[#allocation7 + $0xd8] ss:$20 sps:$4 sm:$0xff]  }
 0x2fa   :  { %5634 = vmatpush1.bf16.msra.mxu1 %v7755_v24  ;;  %5307 = vmatprep.subr.bf16.mxu0 %v7760_v47  ;;  %v7811_v24 = vld [vmem:[#allocation7 + $0x358] ss:$20 sps:$4 sm:$0xff]   ;;  %v7812_v47 = vld [vmem:[#allocation7 + $0x240] ss:$20 sps:$4 sm:$0xff]  }
 0x2fb   :  { %5635 = vmatprep.subr.bf16.mxu1 %v7763_v17  ;;  %v7813_v17 = vld [vmem:[#allocation7 + $0x4c0] ss:$20 sps:$4 sm:$0xff]  }
 0x2fd   :  { %5308 = vmatpush1.bf16.msra.mxu0 %v7758_v56  ;;  %v7814_v56 = vld [vmem:[#allocation7 + $0x100] ss:$20 sps:$4 sm:$0xff]  }
 0x2fe   :  { %5636 = vmatpush1.bf16.msra.mxu1 %v7761_v57  ;;  %5309 = vmatprep.subr.bf16.mxu0 %v7766_v48  ;;  %v7815_v57 = vld [vmem:[#allocation7 + $0x380] ss:$20 sps:$4 sm:$0xff]   ;;  %v7816_v48 = vld [vmem:[#allocation7 + $0x268] ss:$20 sps:$4 sm:$0xff]  }
 0x2ff   :  { %5637 = vmatprep.subr.bf16.mxu1 %v7769_v1  ;;  %v7817_v1 = vld [vmem:[#allocation7 + $0x4e8] ss:$20 sps:$4 sm:$0xff]  }
 0x301   :  { %5310 = vmatpush1.bf16.msra.mxu0 %v7764_v2  ;;  %v7818_v2 = vld [vmem:[#allocation7 + $0x128] ss:$20 sps:$4 sm:$0xff]  }
 0x302   :  { %5638 = vmatpush1.bf16.msra.mxu1 %v7767_v63  ;;  %5311 = vmatprep.subr.bf16.mxu0 %v7772_v3  ;;  %v7819_v63 = vld [vmem:[#allocation7 + $0x3a8] ss:$20 sps:$4 sm:$0xff]   ;;  %v7820_v3 = vld [vmem:[#allocation7 + $0x650] ss:$20 sps:$4 sm:$0xff]  }
 0x303   :  { %5639 = vmatprep.subr.bf16.mxu1 %v7775_v4  ;;  %v7821_v4 = vld [vmem:[#allocation7 + $0x8d0] ss:$20 sps:$4 sm:$0xff]  }
 0x305   :  { %5312 = vmatpush1.bf16.msra.mxu0 %v7770_v5  ;;  %v7822_v5 = vld [vmem:[#allocation7 + $0x510] ss:$20 sps:$4 sm:$0xff]  }
 0x306   :  { %5640 = vmatpush1.bf16.msra.mxu1 %v7773_v6  ;;  %5313 = vmatprep.subr.bf16.mxu0 %v7778_v7  ;;  %v7823_v6 = vld [vmem:[#allocation7 + $0x790] ss:$20 sps:$4 sm:$0xff]   ;;  %v7824_v7 = vld [vmem:[#allocation7 + $0x678] ss:$20 sps:$4 sm:$0xff]  }
 0x307   :  { %5641 = vmatprep.subr.bf16.mxu1 %v7781_v9  ;;  %v7825_v9 = vld [vmem:[#allocation7 + $0x8f8] ss:$20 sps:$4 sm:$0xff]  }
 0x309   :  { %5314 = vmatpush1.bf16.msra.mxu0 %v7776_v11  ;;  %v7826_v11 = vld [vmem:[#allocation7 + $0x538] ss:$20 sps:$4 sm:$0xff]  }
 0x30a   :  { %5642 = vmatpush1.bf16.msra.mxu1 %v7779_v8  ;;  %5315 = vmatprep.subr.bf16.mxu0 %v7784_v12  ;;  %v7827_v8 = vld [vmem:[#allocation7 + $0x7b8] ss:$20 sps:$4 sm:$0xff]   ;;  %v7828_v12 = vld [vmem:[#allocation7 + $0x6a0] ss:$20 sps:$4 sm:$0xff]  }
 0x30b   :  { %5643 = vmatprep.subr.bf16.mxu1 %v7787_v30  ;;  %v7829_v30 = vld [vmem:[#allocation7 + $0x920] ss:$20 sps:$4 sm:$0xff]  }
 0x30d   :  { %5316 = vmatpush1.bf16.msra.mxu0 %v7782_v43  ;;  %v7830_v43 = vld [vmem:[#allocation7 + $0x560] ss:$20 sps:$4 sm:$0xff]  }
 0x30e   :  { %5644 = vmatpush1.bf16.msra.mxu1 %v7785_v42  ;;  %6678 = vmatprep.subr.bf16.mxu0 %v7788_v18  ;;  %v7832_v42 = vld [vmem:[#allocation7 + $0x6c8] ss:$20 sps:$4 sm:$0xff]  }
 0x30f   :  { %6700 = vmatprep.subr.bf16.mxu1 %v7789_v19  ;;  %v7834_v18 = vld [vmem:[#allocation7 + $0x588] ss:$20 sps:$4 sm:$0xff]   ;;  %v7837_v19 = vld [vmem:[#allocation7 + $0x970] ss:$20 sps:$4 sm:$0xff]  }
 0x310   :  { %5318 = vmatmul.mubr.bf16.vlgmr.msra.gmra.mrb[8].mxu0 %v8374_v49 }
 0x311   :  { %5646 = vmatmul.mubr.bf16.vlgmr.msra.gmra.mrb[8].mxu1 %v8374_v49  ;;  %6679 = vmatpush3.bf16.msra.mxu0 %v7790_v21  ;;  %v7839_v21 = vld [vmem:[#allocation7 + $0x830] ss:$20 sps:$4 sm:$0xff]  }
 0x312   :  { %5686 = vmatprep.mubr.bf16.mxu0 %v8242_v44  ;;  %6701 = vmatpush3.bf16.msra.mxu1 %v7791_v23  ;;  %v7803_v44 = vld [vmem:[#allocation7 + $0x308] ss:$20 sps:$4 sm:$0xff]   ;;  %v7840_v23 = vld [vmem:[#allocation7 + $0x718] ss:$20 sps:$4 sm:$0xff]  }
 0x313   :  { %5726 = vmatprep.mubr.bf16.mxu1 %v8254_v53  ;;  %6680 = vmatprep.subr.bf16.mxu0 %v7792_v28  ;;  %v7806_v53 = vld [vmem:[#allocation7 + $0xb0] ss:$20 sps:$4 sm:$0xff]   ;;  %v7841_v28 = vld [vmem:[#allocation7 + $0x998] ss:$20 sps:$4 sm:$0xff]  }
 0x314   :  { %6702 = vmatprep.subr.bf16.mxu1 %v7793_v0  ;;  %v7842_v0 = vld [vmem:[#allocation7 + $0x5d8] ss:$20 sps:$4 sm:$0xff]  }
 0x315   :  { %6681 = vmatpush3.bf16.msra.mxu0 %v7794_v39  ;;  %v7843_v39 = vld [vmem:[#allocation7 + $0x858] ss:$20 sps:$4 sm:$0xff]  }
 0x316   :  { %6703 = vmatpush3.bf16.msra.mxu1 %v7795_v25  ;;  %6682 = vmatprep.subr.bf16.mxu0 %v7796_v16  ;;  %v7844_v25 = vld [vmem:[#allocation7 + $0x740] ss:$20 sps:$4 sm:$0xff]  }
 0x317   :  { %6704 = vmatprep.subr.bf16.mxu1 %v7797_v32  ;;  %v7845_v16 = vld [vmem:[#allocation7 + $0x9c0] ss:$20 sps:$4 sm:$0xff]  }
 0x318   :  { %v7846_v32 = vld [vmem:[#allocation7 + $0x600] ss:$20 sps:$4 sm:$0xff]  }
 0x319   :  { %6683 = vmatpush3.bf16.msra.mxu0 %v7798_v62  ;;  %v7847_v62 = vld [vmem:[#allocation7 + $0x880] ss:$20 sps:$4 sm:$0xff]  }
 0x31a   :  { %6705 = vmatpush3.bf16.msra.mxu1 %v7799_v34  ;;  %6684 = vmatprep.subr.bf16.mxu0 %v7800_v37  ;;  %v7848_v34 = vld [vmem:[#allocation7 + $0x768] ss:$20 sps:$4 sm:$0xff]  }
 0x31b   :  { %6706 = vmatprep.subr.bf16.mxu1 %v7801_v41  ;;  %v7849_v37 = vld [vmem:[#allocation7 + $0x9e8] ss:$20 sps:$4 sm:$0xff]  }
 0x31c   :  { %v7850_v41 = vld [vmem:[#allocation7 + $0x628] ss:$20 sps:$4 sm:$0xff]  }
 0x31d   :  { %6685 = vmatpush3.bf16.msra.mxu0 %v7802_v38  ;;  %v7851_v38 = vld [vmem:[#allocation7 + $0x8a8] ss:$20 sps:$4 sm:$0xff]  }
 0x31e   :  { %6707 = vmatpush3.bf16.msra.mxu1 %v7803_v44  ;;  %6686 = vmatprep.subr.bf16.mxu0 %v7804_v40  ;;  %v7852_v44 = vld [vmem:[#allocation7 + $0xb50] ss:$20 sps:$4 sm:$0xff]  }
 0x31f   :  { %6708 = vmatprep.subr.bf16.mxu1 %v7805_v46  ;;  %v7853_v40 = vld [vmem:[#allocation7 + $0xdd0] ss:$20 sps:$4 sm:$0xff]  }
 0x320   :  { %v7854_v46 = vld [vmem:[#allocation7 + $0xa10] ss:$20 sps:$4 sm:$0xff]  }
 0x321   :  { %6687 = vmatpush3.bf16.msra.mxu0 %v7806_v53  ;;  %v7855_v53 = vld [vmem:[#allocation7 + $0xc90] ss:$20 sps:$4 sm:$0xff]  }
 0x322   :  { %6709 = vmatpush3.bf16.msra.mxu1 %v7807_v31  ;;  %6688 = vmatprep.subr.bf16.mxu0 %v7808_v50  ;;  %v7856_v31 = vld [vmem:[#allocation7 + $0xb78] ss:$20 sps:$4 sm:$0xff]  }
 0x323   :  { %6710 = vmatprep.subr.bf16.mxu1 %v7809_v51  ;;  %v7857_v50 = vld [vmem:[#allocation7 + $0xdf8] ss:$20 sps:$4 sm:$0xff]  }
 0x324   :  { %v7858_v51 = vld [vmem:[#allocation7 + $0xa38] ss:$20 sps:$4 sm:$0xff]  }
 0x325   :  { %6689 = vmatpush3.bf16.msra.mxu0 %v7810_v10  ;;  %v7859_v10 = vld [vmem:[#allocation7 + $0xcb8] ss:$20 sps:$4 sm:$0xff]  }
 0x326   :  { %6711 = vmatpush3.bf16.msra.mxu1 %v7811_v24  ;;  %6690 = vmatprep.subr.bf16.mxu0 %v7812_v47  ;;  %v7860_v24 = vld [vmem:[#allocation7 + $0xba0] ss:$20 sps:$4 sm:$0xff]  }
 0x327   :  { %6712 = vmatprep.subr.bf16.mxu1 %v7813_v17  ;;  %v7861_v47 = vld [vmem:[#allocation7 + $0xe20] ss:$20 sps:$4 sm:$0xff]  }
 0x328   :  { %v7862_v17 = vld [vmem:[#allocation7 + $0xa60] ss:$20 sps:$4 sm:$0xff]  }
 0x329   :  { %6691 = vmatpush3.bf16.msra.mxu0 %v7814_v56  ;;  %v7864_v56 = vld [vmem:[#allocation7 + $0xbc8] ss:$20 sps:$4 sm:$0xff]  }
 0x32a   :  { %6713 = vmatpush3.bf16.msra.mxu1 %v7815_v57  ;;  %6692 = vmatprep.subr.bf16.mxu0 %v7816_v48  ;;  %v7866_v57 = vld [vmem:[#allocation7 + $0xa88] ss:$20 sps:$4 sm:$0xff]   ;;  %v7868_v48 = vld [vmem:[#allocation7 + $0xbf0] ss:$20 sps:$4 sm:$0xff]  }
 0x32b   :  { %6714 = vmatprep.subr.bf16.mxu1 %v7817_v1  ;;  %v7869_v1 = vld [vmem:[#allocation7 + $0xe70] ss:$20 sps:$4 sm:$0xff]  }
 0x32d   :  { %6693 = vmatpush3.bf16.msra.mxu0 %v7818_v2  ;;  %v7871_v2 = vld [vmem:[#allocation7 + $0xd30] ss:$20 sps:$4 sm:$0xff]  }
 0x32e   :  { %6715 = vmatpush3.bf16.msra.mxu1 %v7819_v63  ;;  %6722 = vmatprep.subr.bf16.mxu0 %v7820_v3  ;;  %v7872_v63 = vld [vmem:[#allocation7 + $0xc18] ss:$20 sps:$4 sm:$0xff]  }
 0x32f   :  { %6744 = vmatprep.subr.bf16.mxu1 %v7821_v4  ;;  %v7873_v3 = vld [vmem:[#allocation7 + $0xe98] ss:$20 sps:$4 sm:$0xff]  }
 0x330   :  { %5687 = vmatmul.mubr.bf16.vlgmr.msra.gmra.mrb[12].mxu0 %v8244_v45  ;;  %v7831_v45 = vld [vmem:[#allocation7 + $0x7e0] ss:$20 sps:$4 sm:$0xff]   ;;  %v7874_v4 = vld [vmem:[#allocation7 + $0xad8] ss:$20 sps:$4 sm:$0xff]  }
 0x331   :  { %5727 = vmatmul.mubr.bf16.vlgmr.msra.gmra.mrb[12].mxu1 %v8299_v52  ;;  %6723 = vmatpush3.bf16.msra.mxu0 %v7822_v5  ;;  %v7833_v52 = vld [vmem:[#allocation7 + $0x948] ss:$20 sps:$4 sm:$0xff]   ;;  %v7875_v5 = vld [vmem:[#allocation7 + $0xd58] ss:$20 sps:$4 sm:$0xff]  }
 0x332   :  { %5766 = vmatprep.mubr.bf16.mxu0 %v8301_v58  ;;  %6745 = vmatpush3.bf16.msra.mxu1 %v7823_v6  ;;  %v7835_v58 = vld [vmem:[#allocation7 + $0x808] ss:$20 sps:$4 sm:$0xff]   ;;  %v7876_v6 = vld [vmem:[#allocation7 + $0xc40] ss:$20 sps:$4 sm:$0xff]  }
 0x333   :  { %5806 = vmatprep.mubr.bf16.mxu1 %v8318_v36  ;;  %6724 = vmatprep.subr.bf16.mxu0 %v7824_v7  ;;  %v7838_v36 = vld [vmem:[#allocation7 + $0x5b0] ss:$20 sps:$4 sm:$0xff]   ;;  %v7877_v7 = vld [vmem:[#allocation7 + $0xec0] ss:$20 sps:$4 sm:$0xff]  }
 0x334   :  { %6746 = vmatprep.subr.bf16.mxu1 %v7825_v9  ;;  %v7878_v9 = vld [vmem:[#allocation7 + $0xb00] ss:$20 sps:$4 sm:$0xff]  }
 0x335   :  { %6725 = vmatpush3.bf16.msra.mxu0 %v7826_v11  ;;  %v7879_v11 = vld [vmem:[#allocation7 + $0xd80] ss:$20 sps:$4 sm:$0xff]  }
 0x336   :  { %6747 = vmatpush3.bf16.msra.mxu1 %v7827_v8  ;;  %6726 = vmatprep.subr.bf16.mxu0 %v7828_v12  ;;  %v7880_v8 = vld [vmem:[#allocation7 + $0xc68] ss:$20 sps:$4 sm:$0xff]  }
 0x337   :  { %6748 = vmatprep.subr.bf16.mxu1 %v7829_v30  ;;  %v7881_v12 = vld [vmem:[#allocation7 + $0xee8] ss:$20 sps:$4 sm:$0xff]  }
 0x338   :  { %v7882_v30 = vld [vmem:[#allocation7 + $0xb28] ss:$20 sps:$4 sm:$0xff]  }
 0x339   :  { %6727 = vmatpush3.bf16.msra.mxu0 %v7830_v43  ;;  %v7883_v43 = vld [vmem:[#allocation7 + $0xda8] ss:$20 sps:$4 sm:$0xff]  }
 0x33a   :  { %6749 = vmatpush3.bf16.msra.mxu1 %v7831_v45  ;;  %6728 = vmatprep.subr.bf16.mxu0 %v7832_v42  ;;  %v7884_v45 = vld [vmem:[#allocation7 + $0x1050] ss:$20 sps:$4 sm:$0xff]  }
 0x33b   :  { %6750 = vmatprep.subr.bf16.mxu1 %v7833_v52  ;;  %v7885_v42 = vld [vmem:[#allocation7 + $0x12d0] ss:$20 sps:$4 sm:$0xff]  }
 0x33c   :  { %v7886_v52 = vld [vmem:[#allocation7 + $0xf10] ss:$20 sps:$4 sm:$0xff]  }
 0x33d   :  { %6729 = vmatpush3.bf16.msra.mxu0 %v7834_v18  ;;  %v7887_v18 = vld [vmem:[#allocation7 + $0x1190] ss:$20 sps:$4 sm:$0xff]  }
 0x33e   :  { %6751 = vmatpush3.bf16.msra.mxu1 %v7835_v58  ;;  %6730 = vmatprep.subr.bf16.mxu0 %v7836_v33  ;;  %v7888_v58 = vld [vmem:[#allocation7 + $0x1078] ss:$20 sps:$4 sm:$0xff]  }
 0x33f   :  { %6752 = vmatprep.subr.bf16.mxu1 %v7837_v19  ;;  %v7889_v33 = vld [vmem:[#allocation7 + $0x12f8] ss:$20 sps:$4 sm:$0xff]  }
 0x340   :  { %v7890_v19 = vld [vmem:[#allocation7 + $0xf38] ss:$20 sps:$4 sm:$0xff]  }
 0x341   :  { %6731 = vmatpush3.bf16.msra.mxu0 %v7838_v36  ;;  %v7891_v36 = vld [vmem:[#allocation7 + $0x11b8] ss:$20 sps:$4 sm:$0xff]  }
 0x342   :  { %6753 = vmatpush3.bf16.msra.mxu1 %v7839_v21  ;;  %6732 = vmatprep.subr.bf16.mxu0 %v7840_v23  ;;  %v7892_v21 = vld [vmem:[#allocation7 + $0x10a0] ss:$20 sps:$4 sm:$0xff]  }
 0x343   :  { %6754 = vmatprep.subr.bf16.mxu1 %v7841_v28  ;;  %v7893_v23 = vld [vmem:[#allocation7 + $0x1320] ss:$20 sps:$4 sm:$0xff]  }
 0x344   :  { %v7894_v28 = vld [vmem:[#allocation7 + $0xf60] ss:$20 sps:$4 sm:$0xff]  }
 0x345   :  { %6733 = vmatpush3.bf16.msra.mxu0 %v7842_v0  ;;  %v7896_v0 = vld [vmem:[#allocation7 + $0x10c8] ss:$20 sps:$4 sm:$0xff]  }
 0x346   :  { %6755 = vmatpush3.bf16.msra.mxu1 %v7843_v39  ;;  %6734 = vmatprep.subr.bf16.mxu0 %v7844_v25  ;;  %v7898_v39 = vld [vmem:[#allocation7 + $0xf88] ss:$20 sps:$4 sm:$0xff]   ;;  %v7900_v25 = vld [vmem:[#allocation7 + $0x10f0] ss:$20 sps:$4 sm:$0xff]  }
 0x347   :  { %6756 = vmatprep.subr.bf16.mxu1 %v7845_v16  ;;  %v7901_v16 = vld [vmem:[#allocation7 + $0x1370] ss:$20 sps:$4 sm:$0xff]  }
 0x349   :  { %6735 = vmatpush3.bf16.msra.mxu0 %v7846_v32  ;;  %v7903_v32 = vld [vmem:[#allocation7 + $0x1230] ss:$20 sps:$4 sm:$0xff]  }
 0x34a   :  { %6757 = vmatpush3.bf16.msra.mxu1 %v7847_v62  ;;  %6736 = vmatprep.subr.bf16.mxu0 %v7848_v34  ;;  %v7904_v62 = vld [vmem:[#allocation7 + $0x1118] ss:$20 sps:$4 sm:$0xff]  }
 0x34b   :  { %6758 = vmatprep.subr.bf16.mxu1 %v7849_v37  ;;  %v7905_v34 = vld [vmem:[#allocation7 + $0x1398] ss:$20 sps:$4 sm:$0xff]  }
 0x34c   :  { %v7906_v37 = vld [vmem:[#allocation7 + $0xfd8] ss:$20 sps:$4 sm:$0xff]  }
 0x34d   :  { %6737 = vmatpush3.bf16.msra.mxu0 %v7850_v41  ;;  %v7907_v41 = vld [vmem:[#allocation7 + $0x1258] ss:$20 sps:$4 sm:$0xff]  }
 0x34e   :  { %6759 = vmatpush3.bf16.msra.mxu1 %v7851_v38  ;;  %6766 = vmatprep.subr.bf16.mxu0 %v7852_v44  ;;  %v7908_v38 = vld [vmem:[#allocation7 + $0x1140] ss:$20 sps:$4 sm:$0xff]  }
 0x34f   :  { %6788 = vmatprep.subr.bf16.mxu1 %v7853_v40  ;;  %v7909_v44 = vld [vmem:[#allocation7 + $0x13c0] ss:$20 sps:$4 sm:$0xff]  }
 0x350   :  { %5767 = vmatmul.mubr.bf16.vlgmr.msra.gmra.mrb[16].mxu0 %v8316_v35  ;;  %v7863_v35 = vld [vmem:[#allocation7 + $0xce0] ss:$20 sps:$4 sm:$0xff]  }
 0x351   :  { %5807 = vmatmul.mubr.bf16.vlgmr.msra.gmra.mrb[16].mxu1 %v8333_v13  ;;  %6767 = vmatpush3.bf16.msra.mxu0 %v7854_v46  ;;  %v7865_v13 = vld [vmem:[#allocation7 + $0xe48] ss:$20 sps:$4 sm:$0xff]   ;;  %v7910_v40 = vld [vmem:[#allocation7 + $0x1000] ss:$20 sps:$4 sm:$0xff]  }
 0x352   :  { %5846 = vmatprep.mubr.bf16.mxu0 %v8335_v14  ;;  %6789 = vmatpush3.bf16.msra.mxu1 %v7855_v53  ;;  %v7867_v14 = vld [vmem:[#allocation7 + $0xd08] ss:$20 sps:$4 sm:$0xff]   ;;  %v7911_v46 = vld [vmem:[#allocation7 + $0x1280] ss:$20 sps:$4 sm:$0xff]  }
 0x353   :  { %5886 = vmatprep.mubr.bf16.mxu1 %v8347_v55  ;;  %6768 = vmatprep.subr.bf16.mxu0 %v7856_v31  ;;  %v7870_v55 = vld [vmem:[#allocation7 + $0xab0] ss:$20 sps:$4 sm:$0xff]   ;;  %v7912_v53 = vld [vmem:[#allocation7 + $0x1168] ss:$20 sps:$4 sm:$0xff]  }
 0x354   :  { %6790 = vmatprep.subr.bf16.mxu1 %v7857_v50  ;;  %v7913_v31 = vld [vmem:[#allocation7 + $0x13e8] ss:$20 sps:$4 sm:$0xff]  }
 0x355   :  { %6769 = vmatpush3.bf16.msra.mxu0 %v7858_v51  ;;  %v7914_v50 = vld [vmem:[#allocation7 + $0x1028] ss:$20 sps:$4 sm:$0xff]  }
 0x356   :  { %6791 = vmatpush3.bf16.msra.mxu1 %v7859_v10  ;;  %6770 = vmatprep.subr.bf16.mxu0 %v7860_v24  ;;  %v7915_v51 = vld [vmem:[#allocation7 + $0x12a8] ss:$20 sps:$4 sm:$0xff]   ;;  %v1643_v10 = vld [vmem:[#allocation8] sm:$0x1f] }
 0x357   :  { %6792 = vmatprep.subr.bf16.mxu1 %v7861_v47  ;;  %v1648_v24 = vrot.slane %v1643_v10, %v8222_v26  ;;  %v1656_v47 = vrot.slane %v1643_v10, %v8259_v59 }
 0x359   :  { %6771 = vmatpush3.bf16.msra.mxu0 %v7862_v17  ;;  %v1652_v17 = vrot.slane %v1643_v10, %v8225_v27 }
 0x35a   :  { %6793 = vmatpush3.bf16.msra.mxu1 %v7863_v35  ;;  %6772 = vmatprep.subr.bf16.mxu0 %v7864_v56  ;;  %v1660_v35 = vrot.slane %v1643_v10, %v8232_v29 }
 0x35b   :  { %6794 = vmatprep.subr.bf16.mxu1 %v7865_v13 }
 0x35d   :  { %6773 = vmatpush3.bf16.msra.mxu0 %v7866_v57 }
 0x35e   :  { %6795 = vmatpush3.bf16.msra.mxu1 %v7867_v14  ;;  %6774 = vmatprep.subr.bf16.mxu0 %v7868_v48 }
 0x35f   :  { %6796 = vmatprep.subr.bf16.mxu1 %v7869_v1 }
 0x361   :  { %6775 = vmatpush3.bf16.msra.mxu0 %v7870_v55 }
 0x362   :  { %6797 = vmatpush3.bf16.msra.mxu1 %v7871_v2  ;;  %6776 = vmatprep.subr.bf16.mxu0 %v7872_v63 }
 0x363   :  { %6798 = vmatprep.subr.bf16.mxu1 %v7873_v3 }
 0x365   :  { %6777 = vmatpush3.bf16.msra.mxu0 %v7874_v4  ;;  %v8398_v4 = vld [vmem:[#allocation10] sm:$0x1f] }
 0x366   :  { %6799 = vmatpush3.bf16.msra.mxu1 %v7875_v5  ;;  %6778 = vmatprep.subr.bf16.mxu0 %v7876_v6  ;;  %v5984_v5 = vrot.slane %v8398_v4, %v8222_v26  ;;  %v5988_v6 = vrot.slane %v8398_v4, %v8225_v27  ;;  %v1664_v27 = vrot.slane %v1643_v10, %v8272_v15 }
 0x367   :  { %6800 = vmatprep.subr.bf16.mxu1 %v7877_v7 }
 0x369   :  { %6779 = vmatpush3.bf16.msra.mxu0 %v7878_v9 }
 0x36a   :  { %6801 = vmatpush3.bf16.msra.mxu1 %v7879_v11  ;;  %6780 = vmatprep.subr.bf16.mxu0 %v7880_v8  ;;  %v5992_v11 = vrot.slane %v8398_v4, %v8259_v59 }
 0x36b   :  { %6802 = vmatprep.subr.bf16.mxu1 %v7881_v12 }
 0x36d   :  { %6781 = vmatpush3.bf16.msra.mxu0 %v7882_v30  ;;  %v5996_v30 = vrot.slane %v8398_v4, %v8232_v29 }
 0x36e   :  { %6803 = vmatpush3.bf16.msra.mxu1 %v7883_v43  ;;  %6810 = vmatprep.subr.bf16.mxu0 %v7884_v45 }
 0x36f   :  { %6832 = vmatprep.subr.bf16.mxu1 %v7885_v42 }
 0x370   :  { %5847 = vmatmul.mubr.bf16.vlgmr.msra.gmra.mrb[20].mxu0 %v8345_v54  ;;  %v7895_v54 = vld [vmem:[#allocation7 + $0x11e0] ss:$20 sps:$4 sm:$0xff]  }
 0x371   :  { %5887 = vmatmul.mubr.bf16.vlgmr.msra.gmra.mrb[20].mxu1 %v8355_v20  ;;  %6811 = vmatpush3.bf16.msra.mxu0 %v7886_v52  ;;  %v7897_v20 = vld [vmem:[#allocation7 + $0x1348] ss:$20 sps:$4 sm:$0xff]  }
 0x372   :  { %5926 = vmatprep.mubr.bf16.mxu0 %v8357_v22  ;;  %6833 = vmatpush3.bf16.msra.mxu1 %v7887_v18  ;;  %v7899_v22 = vld [vmem:[#allocation7 + $0x1208] ss:$20 sps:$4 sm:$0xff]  }
 0x373   :  { %5966 = vmatprep.mubr.bf16.mxu1 %v8367_v61  ;;  %6812 = vmatprep.subr.bf16.mxu0 %v7888_v58  ;;  %v7902_v61 = vld [vmem:[#allocation7 + $0xfb0] ss:$20 sps:$4 sm:$0xff]  }
 0x374   :  { %6834 = vmatprep.subr.bf16.mxu1 %v7889_v33 }
 0x375   :  { %6813 = vmatpush3.bf16.msra.mxu0 %v7890_v19 }
 0x376   :  { %6835 = vmatpush3.bf16.msra.mxu1 %v7891_v36  ;;  %6814 = vmatprep.subr.bf16.mxu0 %v7892_v21 }
 0x377   :  { %6836 = vmatprep.subr.bf16.mxu1 %v7893_v23 }
 0x379   :  { %6815 = vmatpush3.bf16.msra.mxu0 %v7894_v28 }
 0x37a   :  { %6837 = vmatpush3.bf16.msra.mxu1 %v7895_v54  ;;  %6816 = vmatprep.subr.bf16.mxu0 %v7896_v0 }
 0x37b   :  { %6838 = vmatprep.subr.bf16.mxu1 %v7897_v20 }
 0x37d   :  { %6817 = vmatpush3.bf16.msra.mxu0 %v7898_v39 }
 0x37e   :  { %6839 = vmatpush3.bf16.msra.mxu1 %v7899_v22  ;;  %6818 = vmatprep.subr.bf16.mxu0 %v7900_v25 }
 0x37f   :  { %6840 = vmatprep.subr.bf16.mxu1 %v7901_v16 }
 0x381   :  { %6819 = vmatpush3.bf16.msra.mxu0 %v7902_v61 }
 0x382   :  { %6841 = vmatpush3.bf16.msra.mxu1 %v7903_v32  ;;  %6820 = vmatprep.subr.bf16.mxu0 %v7904_v62 }
 0x383   :  { %6842 = vmatprep.subr.bf16.mxu1 %v7905_v34 }
 0x385   :  { %6821 = vmatpush3.bf16.msra.mxu0 %v7906_v37 }
 0x386   :  { %6843 = vmatpush3.bf16.msra.mxu1 %v7907_v41  ;;  %6822 = vmatprep.subr.bf16.mxu0 %v7908_v38 }
 0x387   :  { %6844 = vmatprep.subr.bf16.mxu1 %v7909_v44 }
 0x389   :  { %6823 = vmatpush3.bf16.msra.mxu0 %v7910_v40 }
 0x38a   :  { %6845 = vmatpush3.bf16.msra.mxu1 %v7911_v46  ;;  %6824 = vmatprep.subr.bf16.mxu0 %v7912_v53 }
 0x38b   :  { %6846 = vmatprep.subr.bf16.mxu1 %v7913_v31 }
 0x38d   :  { %6825 = vmatpush3.bf16.msra.mxu0 %v7914_v50 }
 0x38e   :  { %6847 = vmatpush3.bf16.msra.mxu1 %v7915_v51 }
 0x390   :  { %5927 = vmatmul.mubr.bf16.vlgmr.msra.gmra.mrb[24].mxu0 %v8365_v60 }
 0x391   :  { %5967 = vmatmul.mubr.bf16.vlgmr.msra.gmra.mrb[24].mxu1 %v8374_v49 }
 0x3e3   :  { %v5319_v56 = vpop.f32.mrb[8].mxu0 }
 0x3e4   :  { %v6950_v13 = vadd.f32 %v5319_v56, %v1648_v24  ;;  %v5647_v57 = vpop.f32.mrb[8].mxu1  ;;  %v5321_v14 = vpop.f32.mrb[9].mxu0 }
 0x3e5   :  { %v6952_v48 = vadd.f32 %v5647_v57, %v1656_v47  ;;  %v6951_v1 = vadd.f32 %v5321_v14, %v1652_v17  ;;  %v5649_v55 = vpop.f32.mrb[9].mxu1  ;;  %v5323_v2 = vpop.f32.mrb[10].mxu0 }
 0x3e6   :  { %7948 = vtanh.f32 %v6950_v13  ;;  %v6953_v60 = vadd.f32 %v5649_v55, %v1660_v35  ;;  %v5651_v49 = vpop.f32.mrb[10].mxu1  ;;  %v5324_v63 = vpop.f32.mrb[11].mxu0 }
 0x3e7   :  { %7950 = vtanh.f32 %v6952_v48  ;;  %v5652_v3 = vpop.f32.mrb[11].mxu1 }
 0x3e8   :  { %7952 = vtanh.f32 %v6951_v1 }
 0x3e9   :  { %7954 = vtanh.f32 %v6953_v60 }
 0x3f0   :  { %v7949_v7 = vpop.eup %7948 }
 0x3f1   :  { %v7951_v9 = vpop.eup %7950  ;;  %v6006_v8 = vmul.f32 %v7949_v7, %v5984_v5  ;;  %v6000_v7 = vrot.slane %v8398_v4, %v8272_v15 }
 0x3f2   :  { %v7953_v12 = vpop.eup %7952  ;;  %v6008_v42 = vmul.f32 %v7951_v9, %v5992_v11 }
 0x3f3   :  { %v6007_v43 = vmul.f32 %v7953_v12, %v5988_v6  ;;  %v7955_v45 = vpop.eup %7954  ;;  %v6018_v12 = vstv %s8423_s6 }
 0x3f4   :  { %v6009_v18 = vmul.f32 %v7955_v45, %v5996_v30 }
 0x3f5   :  { %v6011_v52 = vadd.f32 %v6007_v43, %v6006_v8 }
 0x3f7   :  { %v6012_v58 = vadd.f32 %v6011_v52, %v6008_v42 }
 0x3f9   :  { %v6013_v26 = vadd.f32 %v6012_v58, %v6009_v18 }
 0x403   :  { %v6694_v33 = vpop.f32.mrb[12].mxu0 }
 0x404   :  { %v6716_v19 = vpop.f32.mrb[12].mxu1  ;;  %v6695_v36 = vpop.f32.mrb[13].mxu0 }
 0x405   :  { %v6696_v21 = vadd.f32 %v6695_v36, %v6694_v33  ;;  %v6717_v23 = vpop.f32.mrb[13].mxu1  ;;  %v6697_v59 = vpop.f32.mrb[14].mxu0 }
 0x406   :  { %v6718_v28 = vadd.f32 %v6717_v23, %v6716_v19  ;;  %v6719_v54 = vpop.f32.mrb[14].mxu1  ;;  %v6698_v0 = vpop.f32.mrb[15].mxu0 }
 0x407   :  { %v5689_v20 = vadd.f32 %v6696_v21, %v1664_v27  ;;  %v6720_v29 = vpop.f32.mrb[15].mxu1 }
 0x409   :  { %v5729_v39 = vadd.f32 %v6718_v28, %v5689_v20 }
 0x423   :  { %v6738_v22 = vpop.f32.mrb[16].mxu0 }
 0x424   :  { %v6760_v25 = vpop.f32.mrb[16].mxu1  ;;  %v6739_v16 = vpop.f32.mrb[17].mxu0 }
 0x425   :  { %v6740_v61 = vadd.f32 %v6739_v16, %v6738_v22  ;;  %v6761_v32 = vpop.f32.mrb[17].mxu1  ;;  %v6741_v62 = vpop.f32.mrb[18].mxu0 }
 0x426   :  { %v6762_v34 = vadd.f32 %v6761_v32, %v6760_v25  ;;  %v6763_v37 = vpop.f32.mrb[18].mxu1  ;;  %v6742_v41 = vpop.f32.mrb[19].mxu0 }
 0x427   :  { %v5769_v38 = vadd.f32 %v6740_v61, %v5729_v39  ;;  %v6764_v44 = vpop.f32.mrb[19].mxu1 }
 0x429   :  { %v5809_v40 = vadd.f32 %v6762_v34, %v5769_v38 }
 0x443   :  { %v6782_v46 = vpop.f32.mrb[20].mxu0 }
 0x444   :  { %v6804_v53 = vpop.f32.mrb[20].mxu1  ;;  %v6783_v31 = vpop.f32.mrb[21].mxu0 }
 0x445   :  { %v6784_v50 = vadd.f32 %v6783_v31, %v6782_v46  ;;  %v6805_v51 = vpop.f32.mrb[21].mxu1  ;;  %v6785_v10 = vpop.f32.mrb[22].mxu0 }
 0x446   :  { %v6806_v24 = vadd.f32 %v6805_v51, %v6804_v53  ;;  %v6807_v47 = vpop.f32.mrb[22].mxu1  ;;  %v6786_v17 = vpop.f32.mrb[23].mxu0 }
 0x447   :  { %v5849_v35 = vadd.f32 %v6784_v50, %v5809_v40  ;;  %v6808_v56 = vpop.f32.mrb[23].mxu1 }
 0x449   :  { %v5889_v13 = vadd.f32 %v6806_v24, %v5849_v35 }
 0x463   :  { %v6826_v57 = vpop.f32.mrb[24].mxu0 }
 0x464   :  { %v6848_v14 = vpop.f32.mrb[24].mxu1  ;;  %v6827_v48 = vpop.f32.mrb[25].mxu0 }
 0x465   :  { %v6828_v1 = vadd.f32 %v6827_v48, %v6826_v57  ;;  %v6849_v55 = vpop.f32.mrb[25].mxu1  ;;  %v6829_v2 = vpop.f32.mrb[26].mxu0 }
 0x466   :  { %v6850_v60 = vadd.f32 %v6849_v55, %v6848_v14  ;;  %v6851_v49 = vpop.f32.mrb[26].mxu1  ;;  %v6830_v63 = vpop.f32.mrb[27].mxu0 }
 0x467   :  { %v5929_v3 = vadd.f32 %v6828_v1, %v5889_v13  ;;  %v6852_v5 = vpop.f32.mrb[27].mxu1 }
 0x469   :  { %v5969_v6 = vadd.f32 %v6850_v60, %v5929_v3 }
 0x46b   :  { %7956 = vtanh.f32 %v5969_v6 }
 0x475   :  { %v7957_v9 = vpop.eup %7956 }
 0x476   :  { %v6010_v11 = vmul.f32 %v7957_v9, %v6000_v7 }
 0x478   :  { %v6014_v8 = vadd.f32 %v6013_v26, %v6010_v11 }
 0x47a   :  { %6015 = vadd.xlane.f32.xlu0 %v6014_v8 }
 0x507   :  { %v6016_v30 = vpop.xlane.xlu0 %6015 }
 0x508   :  { %v6019_v43 = vadd.f32 %v6018_v12, %v6016_v30 }
 0x50a   :  { %7958 = vtanh.f32 %v6019_v43 }
 0x514   :  { %v7959_v45 = vpop.eup %7958 }
 0x515   :  { %6022 = vst.msk [vmem:[%s8424_s7] sm:$0xff] %vm6021_vm1, %v7959_v45 }
 0x516   :  { %6027 = vsyncpa [#allocation4], 1 }
 0x517   :  { %6028 = vsyncpa [#allocation6], 1 }
 0x518   :  { %6029 = vsyncpa [#allocation9], 1 }

</bundles_post_ra>
